<compile_context>
chip_gen: v6e
topology: v6e:2x2x1
jax: 0.10.0
libtpu: 0.0.40
codegen_flags: <defaults>
</compile_context>

<pallas_src>
import numpy as np

import jax
import jax.numpy as jnp
from jax.experimental import pallas as pl
from jax.experimental.pallas import tpu as pltpu

# ----------------------------- model sizes (small) -----------------------------
B = 2          # batch
P = 16         # number of "pixels" (flattened spatial, e.g. 4x4)
E = 32         # enc_dim (encoder feature dim)
M = 32         # lstm_memory (decoder hidden dim)
A = 32         # attention_size
EMB = 32       # emb_size
V = 64         # vocab_size
T = 8          # max_seqlen

VPAD = 128     # vocab padded to a full 128-lane width (lane-dense stores)
assert 4 * M == 128, "packed 128-wide slab assumes 4*M == 128"
assert A == M, "small packed slab assumes attention_size == lstm_memory"

# ----- packed slab row offsets: W_BIG (width 4*M = 128); bias rows 8-aligned -----
_R_LXE = 0               # W_lx rows for the embedding half of the LSTM input  (EMB x 4M)
_R_LXC = _R_LXE + EMB    # W_lx rows for the attention-context half            (E   x 4M)
_R_LH = _R_LXC + E       # W_lh                                                (M   x 4M)
_R_OUT = _R_LH + M       # W_out padded to VPAD columns                        (M   x VPAD)
_R_BL = 128              # b_l  row  (1 x 4M)      -- 8-row aligned
_R_BO = 136              # b_out row (1 x VPAD)    -- 8-row aligned
_BIG_ROWS = 144

# ----- packed slab row offsets: W_SMALL (width 32); bias rows 8-aligned -----
_S_IH = 0                # W_init_h (E x M)
_S_IC = 32               # W_init_c (E x M)
_S_IE = 64               # W_ie     (E x A)
_S_OE = 96               # W_oe     (M x A)
_S_BIH = 128             # b_init_h (1 x M)
_S_BIC = 136             # b_init_c
_S_BIE = 144             # b_ie
_S_BOE = 152             # b_oe
_S_ATT = 160             # w_att    (1 x A)
_SMALL_ROWS = 168


# ----------------------------- Pallas kernel -----------------------------------
def _captioning_kernel(
    cap_ref,     # (B, T) int32 in SMEM  (scalar prefetch)    caption token ids
    feat_ref,    # (B, P, E)                                  image features
    embtab_ref,  # (V, EMB)                                   embedding table
    wbig_ref,    # (_BIG_ROWS, 4M)   packed 128-wide weights (W_lx, W_lh, W_out_pad, b_l, b_out_pad)
    wsmall_ref,  # (_SMALL_ROWS, M)  packed 32-wide weights (init/attention weights + biases)
    out_ref,     # (T*B, VPAD)       lane-dense logits, row t*B + b
    embx_ref,    # scratch (T*B, EMB) gathered caption embeddings
    hs_ref,      # scratch (T*B, M)   per-step hidden states
):
    f32 = jnp.float32
    feat = feat_ref[...]                                     # (B, P, E)

    # ---- loop-invariant weights / biases (all slab offsets are multiples of 8) ----
    w_init_h = wsmall_ref[_S_IH:_S_IH + E, :]                # (E, M)
    w_init_c = wsmall_ref[_S_IC:_S_IC + E, :]                # (E, M)
    w_ie = wsmall_ref[_S_IE:_S_IE + E, :]                    # (E, A)
    w_oe = wsmall_ref[_S_OE:_S_OE + M, :]                    # (M, A)
    b_init_h = wsmall_ref[_S_BIH:_S_BIH + 1, :]              # (1, M)
    b_init_c = wsmall_ref[_S_BIC:_S_BIC + 1, :]              # (1, M)
    b_ie = wsmall_ref[_S_BIE:_S_BIE + 1, :]                  # (1, A)
    b_oe = wsmall_ref[_S_BOE:_S_BOE + 1, :]                  # (1, A)
    w_att = wsmall_ref[_S_ATT:_S_ATT + 1, :]                 # (1, A)

    w_lx_e = wbig_ref[_R_LXE:_R_LXE + EMB, :]                # (EMB, 4M)
    w_lx_c = wbig_ref[_R_LXC:_R_LXC + E, :]                  # (E, 4M)
    w_lh = wbig_ref[_R_LH:_R_LH + M, :]                      # (M, 4M)
    w_out = wbig_ref[_R_OUT:_R_OUT + M, :]                   # (M, VPAD) (cols >= V are zero)
    b_l = wbig_ref[_R_BL:_R_BL + 1, :]                       # (1, 4M)
    b_outp = wbig_ref[_R_BO:_R_BO + 1, :]                    # (1, VPAD)

    # ---- hoisted, timestep-invariant work (done once per forward) ----
    # 1) hidden/cell init from mean-pooled features
    mean_ft = jnp.mean(feat, axis=1)                                                 # (B, E)
    hn = jnp.dot(mean_ft, w_init_h, preferred_element_type=f32) + b_init_h           # (B, M)
    cn = jnp.dot(mean_ft, w_init_c, preferred_element_type=f32) + b_init_c           # (B, M)

    # 2) attention encoder projection (single hoisted MXU batched matmul); fold in b_oe,
    #    the (constant) decoder-projection bias, so the per-step path has no bias adds.
    out1 = (
        jnp.einsum("bpe,ea->bpa", feat, w_ie, preferred_element_type=f32)
        + (b_ie + b_oe)[None, :, :]
    )                                                                                # (B, P, A)

    # 3) fused embedding gather (SMEM scalar indices -> dynamic VMEM row loads) followed by
    #    the hoisted teacher-forced input projection: one (T*B, EMB) x (EMB, 4M) matmul + b_l.
    for t in range(T):
        for b in range(B):
            tok = cap_ref[b, t]                                                      # SMEM scalar
            r = t * B + b
            embx_ref[r:r + 1, :] = embtab_ref[pl.ds(tok, 1), :]                      # (1, EMB)
    emb_proj = (
        jnp.dot(embx_ref[...], w_lx_e, preferred_element_type=f32) + b_l
    )                                                                                # (T*B, 4M)

    # ---- fully unrolled timestep recurrence (T is a small static constant) ----
    for t in range(T):
        # soft attention over the P image locations
        out2 = jnp.dot(hn, w_oe, preferred_element_type=f32)                         # (B, A)
        pre = jnp.maximum(out1 + out2[:, None, :], 0.0)                              # (B, P, A)
        # NOTE: b_att intentionally dropped — softmax is shift-invariant, so the scalar
        # attention bias has no effect on alpha (bit-level difference is ~1 ulp).
        att = jnp.sum(pre * w_att[None, :, :], axis=-1)                              # (B, P)
        att_max = jnp.max(att, axis=1, keepdims=True)
        ex = jnp.exp(att - att_max)
        alpha = ex / jnp.sum(ex, axis=1, keepdims=True)                              # exact divide
        # attention pooling on the MXU (batched matvec), instead of mul + sublane reduce
        weighted = jnp.einsum(
            "bqp,bpe->bqe", alpha[:, None, :], feat, preferred_element_type=f32
        )[:, 0, :]                                                                   # (B, E)

        # LSTMCell step; the embedding contribution (+ b_l) was hoisted into emb_proj.
        gates = (
            emb_proj[t * B:(t + 1) * B, :]
            + jnp.dot(weighted, w_lx_c, preferred_element_type=f32)
            + jnp.dot(hn, w_lh, preferred_element_type=f32)
        )                                                                            # (B, 4M)
        sg = jax.nn.sigmoid(gates)                           # full-vreg transcendental (EUP)
        tg = jnp.tanh(gates)                                 # full-vreg transcendental (EUP)
        i_g = sg[:, 0 * M:1 * M]
        f_g = sg[:, 1 * M:2 * M]
        g_g = tg[:, 2 * M:3 * M]
        o_g = sg[:, 3 * M:4 * M]
        cn = f_g * cn + i_g * g_g
        hn = o_g * jnp.tanh(cn)

        hs_ref[t * B:(t + 1) * B, :] = hn                    # small scratch write; vocab proj deferred

    # ---- deferred vocab projection: one (T*B, M) x (M, VPAD) matmul + one dense 128-lane store ----
    logits = jnp.dot(hs_ref[...], w_out, preferred_element_type=f32) + b_outp        # (T*B, VPAD)
    out_ref[...] = logits.astype(out_ref.dtype)


# ----------------------------- parameter packing (one-time, off the hot path) ----
def pack_params(params):
    f32 = jnp.float32

    w_big = jnp.zeros((_BIG_ROWS, 4 * M), f32)
    w_big = w_big.at[_R_LXE:_R_LXE + EMB, :].set(params["W_lx"][:EMB])
    w_big = w_big.at[_R_LXC:_R_LXC + E, :].set(params["W_lx"][EMB:])
    w_big = w_big.at[_R_LH:_R_LH + M, :].set(params["W_lh"])
    w_big = w_big.at[_R_OUT:_R_OUT + M, :V].set(params["W_out"])      # zero-padded to VPAD cols
    w_big = w_big.at[_R_BL, :].set(params["b_l"][0])
    w_big = w_big.at[_R_BO, :V].set(params["b_out"][0])               # zero-padded to VPAD cols

    w_small = jnp.zeros((_SMALL_ROWS, M), f32)
    w_small = w_small.at[_S_IH:_S_IH + E, :].set(params["W_init_h"])
    w_small = w_small.at[_S_IC:_S_IC + E, :].set(params["W_init_c"])
    w_small = w_small.at[_S_IE:_S_IE + E, :].set(params["W_ie"])
    w_small = w_small.at[_S_OE:_S_OE + M, :].set(params["W_oe"])
    w_small = w_small.at[_S_BIH, :].set(params["b_init_h"][0])
    w_small = w_small.at[_S_BIC, :].set(params["b_init_c"][0])
    w_small = w_small.at[_S_BIE, :].set(params["b_ie"][0])
    w_small = w_small.at[_S_BOE, :].set(params["b_oe"][0])
    w_small = w_small.at[_S_ATT, :].set(params["w_att"][0])

    # b_att is intentionally NOT packed: it is mathematically dead in the forward
    # (softmax shift-invariance), so the kernel drops it entirely.
    return {
        "emb": params["emb"].astype(f32),
        "w_big": w_big,
        "w_small": w_small,
    }


# ----------------------------- wrapper ------------------------------------------
@jax.jit
def lstm_captioning_attention_forward(packed, image_feature, captions):
    """image_feature: (B, P, E) f32; captions: (B, T) int32 -> logits (B, V, T)."""
    out_flat = pl.pallas_call(
        _captioning_kernel,
        out_shape=jax.ShapeDtypeStruct((T * B, VPAD), jnp.float32),
        grid_spec=pltpu.PrefetchScalarGridSpec(
            num_scalar_prefetch=1,                           # captions -> SMEM (in-kernel gather)
            grid=(1,),                                       # single invocation; loop is in-kernel
            in_specs=[
                pl.BlockSpec((B, P, E), lambda i, cap: (0, 0, 0)),
                pl.BlockSpec((V, EMB), lambda i, cap: (0, 0)),
                pl.BlockSpec((_BIG_ROWS, 4 * M), lambda i, cap: (0, 0)),
                pl.BlockSpec((_SMALL_ROWS, M), lambda i, cap: (0, 0)),
            ],
            out_specs=pl.BlockSpec((T * B, VPAD), lambda i, cap: (0, 0)),
            scratch_shapes=[
                pltpu.VMEM((T * B, EMB), jnp.float32),       # gathered caption embeddings
                pltpu.VMEM((T * B, M), jnp.float32),         # collected hidden states
            ],
        ),
        compiler_params=pltpu.CompilerParams(
            dimension_semantics=("arbitrary",),
        ),
        # Advisory only: lets XLA overlap neighbors around this latency-bound kernel.
        cost_estimate=pl.CostEstimate(
            flops=650_000, transcendentals=5_000, bytes_accessed=120_000
        ),
    )(captions.astype(jnp.int32), image_feature, packed["emb"], packed["w_big"], packed["w_small"])

    # (T*B, VPAD) -> (T, B, V) -> (B, V, T); drop the zero-padded vocab lanes.
    logits_tbv = out_flat.reshape(T, B, VPAD)[:, :, :V]
    return jnp.transpose(logits_tbv, (1, 2, 0))


# ----------------------------- pure-JAX reference --------------------------------
def ref_forward(params, feature, captions):
    emb_seq = params["emb"][captions]                        # (B, T, EMB)
    mean_ft = feature.mean(axis=1)
    hn = mean_ft @ params["W_init_h"] + params["b_init_h"][0]
    cn = mean_ft @ params["W_init_c"] + params["b_init_c"][0]
    outs = []
    for t in range(T):
        out1 = jnp.einsum("bpe,ea->bpa", feature, params["W_ie"]) + params["b_ie"][0]
        out2 = hn @ params["W_oe"] + params["b_oe"][0]
        pre = jnp.maximum(out1 + out2[:, None, :], 0.0)
        att = jnp.sum(pre * params["w_att"][0], axis=-1) + params["b_att"][0, 0]
        alpha = jax.nn.softmax(att, axis=1)
        weighted = jnp.sum(feature * alpha[:, :, None], axis=1)
        x_t = jnp.concatenate([emb_seq[:, t], weighted], axis=-1)
        gates = x_t @ params["W_lx"] + hn @ params["W_lh"] + params["b_l"][0]
        i_g = jax.nn.sigmoid(gates[:, :M])
        f_g = jax.nn.sigmoid(gates[:, M:2 * M])
        g_g = jnp.tanh(gates[:, 2 * M:3 * M])
        o_g = jax.nn.sigmoid(gates[:, 3 * M:4 * M])
        cn = f_g * cn + i_g * g_g
        hn = o_g * jnp.tanh(cn)
        outs.append(hn @ params["W_out"] + params["b_out"][0])
    return jnp.stack(outs, axis=2)                           # (B, V, T)


# ----------------------------- parameter init ------------------------------------
def init_params(key):
    def uni(k, shape, fan_in):
        bound = 1.0 / np.sqrt(fan_in)
        return jax.random.uniform(k, shape, jnp.float32, -bound, bound)

    ks = jax.random.split(key, 20)
    params = {
        "emb":      jax.random.normal(ks[0], (V, EMB), jnp.float32) * 0.02,
        # init_h / init_c : Linear(enc_dim -> lstm_memory), stored as (in, out)
        "W_init_h": uni(ks[1], (E, M), E), "b_init_h": uni(ks[2], (1, M), E),
        "W_init_c": uni(ks[3], (E, M), E), "b_init_c": uni(ks[4], (1, M), E),
        # attention.input_enc : Linear(enc_dim -> attention_dim)
        "W_ie": uni(ks[5], (E, A), E), "b_ie": uni(ks[6], (1, A), E),
        # attention.output_enc : Linear(decoder_dim -> attention_dim)
        "W_oe": uni(ks[7], (M, A), M), "b_oe": uni(ks[8], (1, A), M),
        # attention.att : Linear(attention_dim -> 1), kept as a row vector
        "w_att": uni(ks[9], (1, A), A), "b_att": uni(ks[10], (1, 1), A),
        # LSTMCell(emb_size + enc_dim -> lstm_memory), weights transposed to (in, 4M)
        "W_lx": uni(ks[11], (EMB + E, 4 * M), M),
        "W_lh": uni(ks[12], (M, 4 * M), M),
        "b_l":  uni(ks[13], (1, 4 * M), M) + uni(ks[14], (1, 4 * M), M),  # b_ih + b_hh
        # outlinear : Linear(lstm_memory -> vocab_size)
        "W_out": uni(ks[15], (M, V), M), "b_out": uni(ks[16], (1, V), M),
    }
    return params


# ----------------------------- main ----------------------------------------------
if __name__ == "__main__":
    key = jax.random.PRNGKey(0)
    k_param, k_feat, k_cap = jax.random.split(key, 3)

    params = init_params(k_param)
    packed = pack_params(params)                             # one-time weight packing
    image_feature = jax.random.normal(k_feat, (B, P, E), jnp.float32)
    captions = jax.random.randint(k_cap, (B, T), 0, V, jnp.int32)

    out = lstm_captioning_attention_forward(packed, image_feature, captions)
    out = jax.block_until_ready(out)

    ref = jax.block_until_ready(ref_forward(params, image_feature, captions))

    assert out.shape == (B, V, T), out.shape
    # The approximate EUP reciprocal was removed (exact softmax divide), so the remaining
    # tolerance budget only covers MXU (bf16-input) rounding in the in-kernel matmul path —
    # in particular the attention pooling, which the pure-JAX reference computes as an exact
    # f32 elementwise reduce — accumulated over the 8-step recurrence. No algorithmic
    # approximation remains in the kernel.
    np.testing.assert_allclose(np.asarray(out), np.asarray(ref), rtol=2e-3, atol=2e-3)

    print("KERNEL_OK")
</pallas_src>

<mosaic_0001>
module attributes {stable_mosaic.version = 11 : i64} {
  func.func @_captioning_kernel(%arg0: i32, %arg1: memref<2x8xi32, #tpu.memory_space<smem>>, %arg2: memref<2x16x32xf32, #tpu.memory_space<vmem>>, %arg3: memref<64x32xf32, #tpu.memory_space<vmem>>, %arg4: memref<144x128xf32, #tpu.memory_space<vmem>>, %arg5: memref<168x32xf32, #tpu.memory_space<vmem>>, %arg6: memref<16x128xf32, #tpu.memory_space<vmem>>, %arg7: memref<16x32xf32, #tpu.memory_space<vmem>>, %arg8: memref<16x32xf32, #tpu.memory_space<vmem>>) attributes {dimension_semantics = [#tpu.dimension_semantics<arbitrary>], iteration_bounds = array<i64: 1>, scalar_prefetch = 1 : i64, scratch_operands = 2 : i64, tpu.core_type = #tpu.core_type<tc>, window_params = [{pipeline_mode = #tpu.pipeline_mode<synchronous>, transform_indices = @transform_0, window_bounds = array<i64: 2, 16, 32>}, {pipeline_mode = #tpu.pipeline_mode<synchronous>, transform_indices = @transform_1, window_bounds = array<i64: 64, 32>}, {pipeline_mode = #tpu.pipeline_mode<synchronous>, transform_indices = @transform_2, window_bounds = array<i64: 144, 128>}, {pipeline_mode = #tpu.pipeline_mode<synchronous>, transform_indices = @transform_3, window_bounds = array<i64: 168, 32>}, {pipeline_mode = #tpu.pipeline_mode<synchronous>, transform_indices = @transform_4, window_bounds = array<i64: 16, 128>}]} {
    %c0 = arith.constant 0 : index
    %c0_0 = arith.constant 0 : index
    %c0_1 = arith.constant 0 : index
    %0 = vector.load %arg2[%c0, %c0_0, %c0_1] : memref<2x16x32xf32, #tpu.memory_space<vmem>>, vector<2x16x32xf32>
    %c0_2 = arith.constant 0 : index
    %c0_3 = arith.constant 0 : index
    %1 = vector.load %arg5[%c0_2, %c0_3] : memref<168x32xf32, #tpu.memory_space<vmem>>, vector<32x32xf32>
    %c32 = arith.constant 32 : index
    %c0_4 = arith.constant 0 : index
    %2 = vector.load %arg5[%c32, %c0_4] : memref<168x32xf32, #tpu.memory_space<vmem>>, vector<32x32xf32>
    %c64 = arith.constant 64 : index
    %c0_5 = arith.constant 0 : index
    %3 = vector.load %arg5[%c64, %c0_5] : memref<168x32xf32, #tpu.memory_space<vmem>>, vector<32x32xf32>
    %c96 = arith.constant 96 : index
    %c0_6 = arith.constant 0 : index
    %4 = vector.load %arg5[%c96, %c0_6] : memref<168x32xf32, #tpu.memory_space<vmem>>, vector<32x32xf32>
    %c128 = arith.constant 128 : index
    %c0_7 = arith.constant 0 : index
    %5 = vector.load %arg5[%c128, %c0_7] : memref<168x32xf32, #tpu.memory_space<vmem>>, vector<1x32xf32>
    %c136 = arith.constant 136 : index
    %c0_8 = arith.constant 0 : index
    %6 = vector.load %arg5[%c136, %c0_8] : memref<168x32xf32, #tpu.memory_space<vmem>>, vector<1x32xf32>
    %c144 = arith.constant 144 : index
    %c0_9 = arith.constant 0 : index
    %7 = vector.load %arg5[%c144, %c0_9] : memref<168x32xf32, #tpu.memory_space<vmem>>, vector<1x32xf32>
    %c152 = arith.constant 152 : index
    %c0_10 = arith.constant 0 : index
    %8 = vector.load %arg5[%c152, %c0_10] : memref<168x32xf32, #tpu.memory_space<vmem>>, vector<1x32xf32>
    %c160 = arith.constant 160 : index
    %c0_11 = arith.constant 0 : index
    %9 = vector.load %arg5[%c160, %c0_11] : memref<168x32xf32, #tpu.memory_space<vmem>>, vector<1x32xf32>
    %c0_12 = arith.constant 0 : index
    %c0_13 = arith.constant 0 : index
    %10 = vector.load %arg4[%c0_12, %c0_13] : memref<144x128xf32, #tpu.memory_space<vmem>>, vector<32x128xf32>
    %c32_14 = arith.constant 32 : index
    %c0_15 = arith.constant 0 : index
    %11 = vector.load %arg4[%c32_14, %c0_15] : memref<144x128xf32, #tpu.memory_space<vmem>>, vector<32x128xf32>
    %c64_16 = arith.constant 64 : index
    %c0_17 = arith.constant 0 : index
    %12 = vector.load %arg4[%c64_16, %c0_17] : memref<144x128xf32, #tpu.memory_space<vmem>>, vector<32x128xf32>
    %c96_18 = arith.constant 96 : index
    %c0_19 = arith.constant 0 : index
    %13 = vector.load %arg4[%c96_18, %c0_19] : memref<144x128xf32, #tpu.memory_space<vmem>>, vector<32x128xf32>
    %c128_20 = arith.constant 128 : index
    %c0_21 = arith.constant 0 : index
    %14 = vector.load %arg4[%c128_20, %c0_21] : memref<144x128xf32, #tpu.memory_space<vmem>>, vector<1x128xf32>
    %c136_22 = arith.constant 136 : index
    %c0_23 = arith.constant 0 : index
    %15 = vector.load %arg4[%c136_22, %c0_23] : memref<144x128xf32, #tpu.memory_space<vmem>>, vector<1x128xf32>
    %cst = arith.constant dense<0.000000e+00> : vector<2x32xf32>
    %16 = vector.multi_reduction <add>, %0, %cst [1] : vector<2x16x32xf32> to vector<2x32xf32>
    %cst_24 = arith.constant 1.600000e+01 : f32
    %17 = vector.broadcast %cst_24 : f32 to vector<2x32xf32>
    %18 = arith.divf %16, %17 : vector<2x32xf32>
    %cst_25 = arith.constant dense<0.000000e+00> : vector<2x32xf32>
    %19 = tpu.matmul %18, %1, %cst_25 {dimension_numbers = #tpu.dot_dimension_numbers<[1], [0], [0], [1], [0, 0, 1, 1], [], []>} : vector<2x32xf32>, vector<32x32xf32>, vector<2x32xf32> -> vector<2x32xf32>
    %20 = vector.broadcast %5 : vector<1x32xf32> to vector<2x32xf32>
    %21 = arith.addf %19, %20 : vector<2x32xf32>
    %cst_26 = arith.constant dense<0.000000e+00> : vector<2x32xf32>
    %22 = tpu.matmul %18, %2, %cst_26 {dimension_numbers = #tpu.dot_dimension_numbers<[1], [0], [0], [1], [0, 0, 1, 1], [], []>} : vector<2x32xf32>, vector<32x32xf32>, vector<2x32xf32> -> vector<2x32xf32>
    %23 = vector.broadcast %6 : vector<1x32xf32> to vector<2x32xf32>
    %24 = arith.addf %22, %23 : vector<2x32xf32>
    "tpu.trace_start"() <{level = 10 : i32, message = "bpe,ea->bpa"}> : () -> ()
    %cst_27 = arith.constant dense<0.000000e+00> : vector<2x16x32xf32>
    %25 = tpu.matmul %0, %3, %cst_27 {dimension_numbers = #tpu.dot_dimension_numbers<[2], [0], [0, 1], [1], [0, 0, 0, 1, 1, 1], [], []>} : vector<2x16x32xf32>, vector<32x32xf32>, vector<2x16x32xf32> -> vector<2x16x32xf32>
    "tpu.trace_stop"() : () -> ()
    %26 = arith.addf %7, %8 : vector<1x32xf32>
    %27 = vector.shape_cast %26 : vector<1x32xf32> to vector<1x1x32xf32>
    %28 = vector.broadcast %27 : vector<1x1x32xf32> to vector<2x16x32xf32>
    %29 = arith.addf %25, %28 : vector<2x16x32xf32>
    %c0_28 = arith.constant 0 : index
    %c0_29 = arith.constant 0 : index
    %30 = memref.load %arg1[%c0_28, %c0_29] : memref<2x8xi32, #tpu.memory_space<smem>>
    %31 = arith.index_cast %30 : i32 to index
    %c0_30 = arith.constant 0 : index
    %32 = vector.load %arg3[%31, %c0_30] : memref<64x32xf32, #tpu.memory_space<vmem>>, vector<1x32xf32>
    %c0_31 = arith.constant 0 : index
    %c0_32 = arith.constant 0 : index
    %33 = vector.load %arg7[%c0_31, %c0_32] : memref<16x32xf32, #tpu.memory_space<vmem>>, vector<1x32xf32>
    tpu.vector_store %arg7[%c0_31, %c0_32], %32 {strides = array<i32>} : memref<16x32xf32, #tpu.memory_space<vmem>>, vector<1x32xf32>,
    %c1 = arith.constant 1 : index
    %c0_33 = arith.constant 0 : index
    %34 = memref.load %arg1[%c1, %c0_33] : memref<2x8xi32, #tpu.memory_space<smem>>
    %35 = arith.index_cast %34 : i32 to index
    %c0_34 = arith.constant 0 : index
    %36 = vector.load %arg3[%35, %c0_34] : memref<64x32xf32, #tpu.memory_space<vmem>>, vector<1x32xf32>
    %c1_35 = arith.constant 1 : index
    %c0_36 = arith.constant 0 : index
    %37 = vector.load %arg7[%c1_35, %c0_36] : memref<16x32xf32, #tpu.memory_space<vmem>>, vector<1x32xf32>
    tpu.vector_store %arg7[%c1_35, %c0_36], %36 {strides = array<i32>} : memref<16x32xf32, #tpu.memory_space<vmem>>, vector<1x32xf32>,
    %c0_37 = arith.constant 0 : index
    %c1_38 = arith.constant 1 : index
    %38 = memref.load %arg1[%c0_37, %c1_38] : memref<2x8xi32, #tpu.memory_space<smem>>
    %39 = arith.index_cast %38 : i32 to index
    %c0_39 = arith.constant 0 : index
    %40 = vector.load %arg3[%39, %c0_39] : memref<64x32xf32, #tpu.memory_space<vmem>>, vector<1x32xf32>
    %c2 = arith.constant 2 : index
    %c0_40 = arith.constant 0 : index
    %41 = vector.load %arg7[%c2, %c0_40] : memref<16x32xf32, #tpu.memory_space<vmem>>, vector<1x32xf32>
    tpu.vector_store %arg7[%c2, %c0_40], %40 {strides = array<i32>} : memref<16x32xf32, #tpu.memory_space<vmem>>, vector<1x32xf32>,
    %c1_41 = arith.constant 1 : index
    %c1_42 = arith.constant 1 : index
    %42 = memref.load %arg1[%c1_41, %c1_42] : memref<2x8xi32, #tpu.memory_space<smem>>
    %43 = arith.index_cast %42 : i32 to index
    %c0_43 = arith.constant 0 : index
    %44 = vector.load %arg3[%43, %c0_43] : memref<64x32xf32, #tpu.memory_space<vmem>>, vector<1x32xf32>
    %c3 = arith.constant 3 : index
    %c0_44 = arith.constant 0 : index
    %45 = vector.load %arg7[%c3, %c0_44] : memref<16x32xf32, #tpu.memory_space<vmem>>, vector<1x32xf32>
    tpu.vector_store %arg7[%c3, %c0_44], %44 {strides = array<i32>} : memref<16x32xf32, #tpu.memory_space<vmem>>, vector<1x32xf32>,
    %c0_45 = arith.constant 0 : index
    %c2_46 = arith.constant 2 : index
    %46 = memref.load %arg1[%c0_45, %c2_46] : memref<2x8xi32, #tpu.memory_space<smem>>
    %47 = arith.index_cast %46 : i32 to index
    %c0_47 = arith.constant 0 : index
    %48 = vector.load %arg3[%47, %c0_47] : memref<64x32xf32, #tpu.memory_space<vmem>>, vector<1x32xf32>
    %c4 = arith.constant 4 : index
    %c0_48 = arith.constant 0 : index
    %49 = vector.load %arg7[%c4, %c0_48] : memref<16x32xf32, #tpu.memory_space<vmem>>, vector<1x32xf32>
    tpu.vector_store %arg7[%c4, %c0_48], %48 {strides = array<i32>} : memref<16x32xf32, #tpu.memory_space<vmem>>, vector<1x32xf32>,
    %c1_49 = arith.constant 1 : index
    %c2_50 = arith.constant 2 : index
    %50 = memref.load %arg1[%c1_49, %c2_50] : memref<2x8xi32, #tpu.memory_space<smem>>
    %51 = arith.index_cast %50 : i32 to index
    %c0_51 = arith.constant 0 : index
    %52 = vector.load %arg3[%51, %c0_51] : memref<64x32xf32, #tpu.memory_space<vmem>>, vector<1x32xf32>
    %c5 = arith.constant 5 : index
    %c0_52 = arith.constant 0 : index
    %53 = vector.load %arg7[%c5, %c0_52] : memref<16x32xf32, #tpu.memory_space<vmem>>, vector<1x32xf32>
    tpu.vector_store %arg7[%c5, %c0_52], %52 {strides = array<i32>} : memref<16x32xf32, #tpu.memory_space<vmem>>, vector<1x32xf32>,
    %c0_53 = arith.constant 0 : index
    %c3_54 = arith.constant 3 : index
    %54 = memref.load %arg1[%c0_53, %c3_54] : memref<2x8xi32, #tpu.memory_space<smem>>
    %55 = arith.index_cast %54 : i32 to index
    %c0_55 = arith.constant 0 : index
    %56 = vector.load %arg3[%55, %c0_55] : memref<64x32xf32, #tpu.memory_space<vmem>>, vector<1x32xf32>
    %c6 = arith.constant 6 : index
    %c0_56 = arith.constant 0 : index
    %57 = vector.load %arg7[%c6, %c0_56] : memref<16x32xf32, #tpu.memory_space<vmem>>, vector<1x32xf32>
    tpu.vector_store %arg7[%c6, %c0_56], %56 {strides = array<i32>} : memref<16x32xf32, #tpu.memory_space<vmem>>, vector<1x32xf32>,
    %c1_57 = arith.constant 1 : index
    %c3_58 = arith.constant 3 : index
    %58 = memref.load %arg1[%c1_57, %c3_58] : memref<2x8xi32, #tpu.memory_space<smem>>
    %59 = arith.index_cast %58 : i32 to index
    %c0_59 = arith.constant 0 : index
    %60 = vector.load %arg3[%59, %c0_59] : memref<64x32xf32, #tpu.memory_space<vmem>>, vector<1x32xf32>
    %c7 = arith.constant 7 : index
    %c0_60 = arith.constant 0 : index
    %61 = vector.load %arg7[%c7, %c0_60] : memref<16x32xf32, #tpu.memory_space<vmem>>, vector<1x32xf32>
    tpu.vector_store %arg7[%c7, %c0_60], %60 {strides = array<i32>} : memref<16x32xf32, #tpu.memory_space<vmem>>, vector<1x32xf32>,
    %c0_61 = arith.constant 0 : index
    %c4_62 = arith.constant 4 : index
    %62 = memref.load %arg1[%c0_61, %c4_62] : memref<2x8xi32, #tpu.memory_space<smem>>
    %63 = arith.index_cast %62 : i32 to index
    %c0_63 = arith.constant 0 : index
    %64 = vector.load %arg3[%63, %c0_63] : memref<64x32xf32, #tpu.memory_space<vmem>>, vector<1x32xf32>
    %c8 = arith.constant 8 : index
    %c0_64 = arith.constant 0 : index
    %65 = vector.load %arg7[%c8, %c0_64] : memref<16x32xf32, #tpu.memory_space<vmem>>, vector<1x32xf32>
    tpu.vector_store %arg7[%c8, %c0_64], %64 {strides = array<i32>} : memref<16x32xf32, #tpu.memory_space<vmem>>, vector<1x32xf32>,
    %c1_65 = arith.constant 1 : index
    %c4_66 = arith.constant 4 : index
    %66 = memref.load %arg1[%c1_65, %c4_66] : memref<2x8xi32, #tpu.memory_space<smem>>
    %67 = arith.index_cast %66 : i32 to index
    %c0_67 = arith.constant 0 : index
    %68 = vector.load %arg3[%67, %c0_67] : memref<64x32xf32, #tpu.memory_space<vmem>>, vector<1x32xf32>
    %c9 = arith.constant 9 : index
    %c0_68 = arith.constant 0 : index
    %69 = vector.load %arg7[%c9, %c0_68] : memref<16x32xf32, #tpu.memory_space<vmem>>, vector<1x32xf32>
    tpu.vector_store %arg7[%c9, %c0_68], %68 {strides = array<i32>} : memref<16x32xf32, #tpu.memory_space<vmem>>, vector<1x32xf32>,
    %c0_69 = arith.constant 0 : index
    %c5_70 = arith.constant 5 : index
    %70 = memref.load %arg1[%c0_69, %c5_70] : memref<2x8xi32, #tpu.memory_space<smem>>
    %71 = arith.index_cast %70 : i32 to index
    %c0_71 = arith.constant 0 : index
    %72 = vector.load %arg3[%71, %c0_71] : memref<64x32xf32, #tpu.memory_space<vmem>>, vector<1x32xf32>
    %c10 = arith.constant 10 : index
    %c0_72 = arith.constant 0 : index
    %73 = vector.load %arg7[%c10, %c0_72] : memref<16x32xf32, #tpu.memory_space<vmem>>, vector<1x32xf32>
    tpu.vector_store %arg7[%c10, %c0_72], %72 {strides = array<i32>} : memref<16x32xf32, #tpu.memory_space<vmem>>, vector<1x32xf32>,
    %c1_73 = arith.constant 1 : index
    %c5_74 = arith.constant 5 : index
    %74 = memref.load %arg1[%c1_73, %c5_74] : memref<2x8xi32, #tpu.memory_space<smem>>
    %75 = arith.index_cast %74 : i32 to index
    %c0_75 = arith.constant 0 : index
    %76 = vector.load %arg3[%75, %c0_75] : memref<64x32xf32, #tpu.memory_space<vmem>>, vector<1x32xf32>
    %c11 = arith.constant 11 : index
    %c0_76 = arith.constant 0 : index
    %77 = vector.load %arg7[%c11, %c0_76] : memref<16x32xf32, #tpu.memory_space<vmem>>, vector<1x32xf32>
    tpu.vector_store %arg7[%c11, %c0_76], %76 {strides = array<i32>} : memref<16x32xf32, #tpu.memory_space<vmem>>, vector<1x32xf32>,
    %c0_77 = arith.constant 0 : index
    %c6_78 = arith.constant 6 : index
    %78 = memref.load %arg1[%c0_77, %c6_78] : memref<2x8xi32, #tpu.memory_space<smem>>
    %79 = arith.index_cast %78 : i32 to index
    %c0_79 = arith.constant 0 : index
    %80 = vector.load %arg3[%79, %c0_79] : memref<64x32xf32, #tpu.memory_space<vmem>>, vector<1x32xf32>
    %c12 = arith.constant 12 : index
    %c0_80 = arith.constant 0 : index
    %81 = vector.load %arg7[%c12, %c0_80] : memref<16x32xf32, #tpu.memory_space<vmem>>, vector<1x32xf32>
    tpu.vector_store %arg7[%c12, %c0_80], %80 {strides = array<i32>} : memref<16x32xf32, #tpu.memory_space<vmem>>, vector<1x32xf32>,
    %c1_81 = arith.constant 1 : index
    %c6_82 = arith.constant 6 : index
    %82 = memref.load %arg1[%c1_81, %c6_82] : memref<2x8xi32, #tpu.memory_space<smem>>
    %83 = arith.index_cast %82 : i32 to index
    %c0_83 = arith.constant 0 : index
    %84 = vector.load %arg3[%83, %c0_83] : memref<64x32xf32, #tpu.memory_space<vmem>>, vector<1x32xf32>
    %c13 = arith.constant 13 : index
    %c0_84 = arith.constant 0 : index
    %85 = vector.load %arg7[%c13, %c0_84] : memref<16x32xf32, #tpu.memory_space<vmem>>, vector<1x32xf32>
    tpu.vector_store %arg7[%c13, %c0_84], %84 {strides = array<i32>} : memref<16x32xf32, #tpu.memory_space<vmem>>, vector<1x32xf32>,
    %c0_85 = arith.constant 0 : index
    %c7_86 = arith.constant 7 : index
    %86 = memref.load %arg1[%c0_85, %c7_86] : memref<2x8xi32, #tpu.memory_space<smem>>
    %87 = arith.index_cast %86 : i32 to index
    %c0_87 = arith.constant 0 : index
    %88 = vector.load %arg3[%87, %c0_87] : memref<64x32xf32, #tpu.memory_space<vmem>>, vector<1x32xf32>
    %c14 = arith.constant 14 : index
    %c0_88 = arith.constant 0 : index
    %89 = vector.load %arg7[%c14, %c0_88] : memref<16x32xf32, #tpu.memory_space<vmem>>, vector<1x32xf32>
    tpu.vector_store %arg7[%c14, %c0_88], %88 {strides = array<i32>} : memref<16x32xf32, #tpu.memory_space<vmem>>, vector<1x32xf32>,
    %c1_89 = arith.constant 1 : index
    %c7_90 = arith.constant 7 : index
    %90 = memref.load %arg1[%c1_89, %c7_90] : memref<2x8xi32, #tpu.memory_space<smem>>
    %91 = arith.index_cast %90 : i32 to index
    %c0_91 = arith.constant 0 : index
    %92 = vector.load %arg3[%91, %c0_91] : memref<64x32xf32, #tpu.memory_space<vmem>>, vector<1x32xf32>
    %c15 = arith.constant 15 : index
    %c0_92 = arith.constant 0 : index
    %93 = vector.load %arg7[%c15, %c0_92] : memref<16x32xf32, #tpu.memory_space<vmem>>, vector<1x32xf32>
    tpu.vector_store %arg7[%c15, %c0_92], %92 {strides = array<i32>} : memref<16x32xf32, #tpu.memory_space<vmem>>, vector<1x32xf32>,
    %c0_93 = arith.constant 0 : index
    %c0_94 = arith.constant 0 : index
    %94 = vector.load %arg7[%c0_93, %c0_94] : memref<16x32xf32, #tpu.memory_space<vmem>>, vector<16x32xf32>
    %cst_95 = arith.constant dense<0.000000e+00> : vector<16x128xf32>
    %95 = tpu.matmul %94, %10, %cst_95 {dimension_numbers = #tpu.dot_dimension_numbers<[1], [0], [0], [1], [0, 0, 1, 1], [], []>} : vector<16x32xf32>, vector<32x128xf32>, vector<16x128xf32> -> vector<16x128xf32>
    %96 = vector.broadcast %14 : vector<1x128xf32> to vector<16x128xf32>
    %97 = arith.addf %95, %96 : vector<16x128xf32>
    %cst_96 = arith.constant dense<0.000000e+00> : vector<2x32xf32>
    %98 = tpu.matmul %21, %4, %cst_96 {dimension_numbers = #tpu.dot_dimension_numbers<[1], [0], [0], [1], [0, 0, 1, 1], [], []>} : vector<2x32xf32>, vector<32x32xf32>, vector<2x32xf32> -> vector<2x32xf32>
    %99 = vector.shape_cast %98 : vector<2x32xf32> to vector<2x1x32xf32>
    %100 = vector.broadcast %99 : vector<2x1x32xf32> to vector<2x16x32xf32>
    %101 = arith.addf %29, %100 : vector<2x16x32xf32>
    %cst_97 = arith.constant 0.000000e+00 : f32
    %102 = vector.broadcast %cst_97 : f32 to vector<2x16x32xf32>
    %103 = arith.maximumf %101, %102 : vector<2x16x32xf32>
    %104 = vector.shape_cast %9 : vector<1x32xf32> to vector<1x1x32xf32>
    %105 = vector.broadcast %104 : vector<1x1x32xf32> to vector<2x16x32xf32>
    %106 = arith.mulf %103, %105 : vector<2x16x32xf32>
    %cst_98 = arith.constant dense<0.000000e+00> : vector<2x16xf32>
    %107 = vector.multi_reduction <add>, %106, %cst_98 [2] : vector<2x16x32xf32> to vector<2x16xf32>
    %cst_99 = arith.constant dense<0xFF800000> : vector<2xf32>
    %108 = vector.multi_reduction <maximumf>, %107, %cst_99 [1] : vector<2x16xf32> to vector<2xf32>
    %109 = vector.shape_cast %108 : vector<2xf32> to vector<2x1xf32>
    %110 = vector.broadcast %109 : vector<2x1xf32> to vector<2x16xf32>
    %111 = arith.subf %107, %110 : vector<2x16xf32>
    %112 = math.exp %111 : vector<2x16xf32>
    %cst_100 = arith.constant dense<0.000000e+00> : vector<2xf32>
    %113 = vector.multi_reduction <add>, %112, %cst_100 [1] : vector<2x16xf32> to vector<2xf32>
    %114 = vector.shape_cast %113 : vector<2xf32> to vector<2x1xf32>
    %115 = vector.broadcast %114 : vector<2x1xf32> to vector<2x16xf32>
    %116 = arith.divf %112, %115 : vector<2x16xf32>
    %117 = vector.shape_cast %116 : vector<2x16xf32> to vector<2x1x16xf32>
    "tpu.trace_start"() <{level = 10 : i32, message = "bqp,bpe->bqe"}> : () -> ()
    %cst_101 = arith.constant dense<0.000000e+00> : vector<2x1x32xf32>
    %118 = tpu.matmul %117, %0, %cst_101 {dimension_numbers = #tpu.dot_dimension_numbers<[2], [1], [1], [2], [0, 0, 0, 1, 1, 2], [0], [0]>} : vector<2x1x16xf32>, vector<2x16x32xf32>, vector<2x1x32xf32> -> vector<2x1x32xf32>
    "tpu.trace_stop"() : () -> ()
    %119 = vector.shape_cast %118 : vector<2x1x32xf32> to vector<2x32xf32>
    %120 = vector.extract_strided_slice %97 {offsets = [0, 0], sizes = [2, 128], strides = [1, 1]} : vector<16x128xf32> to vector<2x128xf32>
    %cst_102 = arith.constant dense<0.000000e+00> : vector<2x128xf32>
    %121 = tpu.matmul %119, %11, %cst_102 {dimension_numbers = #tpu.dot_dimension_numbers<[1], [0], [0], [1], [0, 0, 1, 1], [], []>} : vector<2x32xf32>, vector<32x128xf32>, vector<2x128xf32> -> vector<2x128xf32>
    %122 = arith.addf %120, %121 : vector<2x128xf32>
    %cst_103 = arith.constant dense<0.000000e+00> : vector<2x128xf32>
    %123 = tpu.matmul %21, %12, %cst_103 {dimension_numbers = #tpu.dot_dimension_numbers<[1], [0], [0], [1], [0, 0, 1, 1], [], []>} : vector<2x32xf32>, vector<32x128xf32>, vector<2x128xf32> -> vector<2x128xf32>
    %124 = arith.addf %122, %123 : vector<2x128xf32>
    %125 = arith.negf %124 : vector<2x128xf32>
    %126 = math.exp %125 : vector<2x128xf32>
    %cst_104 = arith.constant 1.000000e+00 : f32
    %127 = vector.broadcast %cst_104 : f32 to vector<2x128xf32>
    %128 = arith.addf %127, %126 : vector<2x128xf32>
    %129 = arith.divf %127, %128 : vector<2x128xf32>
    %130 = math.tanh %124 : vector<2x128xf32>
    %131 = vector.extract_strided_slice %129 {offsets = [0, 0], sizes = [2, 32], strides = [1, 1]} : vector<2x128xf32> to vector<2x32xf32>
    %132 = vector.extract_strided_slice %129 {offsets = [0, 32], sizes = [2, 32], strides = [1, 1]} : vector<2x128xf32> to vector<2x32xf32>
    %133 = vector.extract_strided_slice %130 {offsets = [0, 64], sizes = [2, 32], strides = [1, 1]} : vector<2x128xf32> to vector<2x32xf32>
    %134 = vector.extract_strided_slice %129 {offsets = [0, 96], sizes = [2, 32], strides = [1, 1]} : vector<2x128xf32> to vector<2x32xf32>
    %135 = arith.mulf %132, %24 : vector<2x32xf32>
    %136 = arith.mulf %131, %133 : vector<2x32xf32>
    %137 = arith.addf %135, %136 : vector<2x32xf32>
    %138 = math.tanh %137 : vector<2x32xf32>
    %139 = arith.mulf %134, %138 : vector<2x32xf32>
    %c0_105 = arith.constant 0 : index
    %c0_106 = arith.constant 0 : index
    %140 = vector.load %arg8[%c0_105, %c0_106] : memref<16x32xf32, #tpu.memory_space<vmem>>, vector<2x32xf32>
    tpu.vector_store %arg8[%c0_105, %c0_106], %139 {strides = array<i32>} : memref<16x32xf32, #tpu.memory_space<vmem>>, vector<2x32xf32>,
    %cst_107 = arith.constant dense<0.000000e+00> : vector<2x32xf32>
    %141 = tpu.matmul %139, %4, %cst_107 {dimension_numbers = #tpu.dot_dimension_numbers<[1], [0], [0], [1], [0, 0, 1, 1], [], []>} : vector<2x32xf32>, vector<32x32xf32>, vector<2x32xf32> -> vector<2x32xf32>
    %142 = vector.shape_cast %141 : vector<2x32xf32> to vector<2x1x32xf32>
    %143 = vector.broadcast %142 : vector<2x1x32xf32> to vector<2x16x32xf32>
    %144 = arith.addf %29, %143 : vector<2x16x32xf32>
    %cst_108 = arith.constant 0.000000e+00 : f32
    %145 = vector.broadcast %cst_108 : f32 to vector<2x16x32xf32>
    %146 = arith.maximumf %144, %145 : vector<2x16x32xf32>
    %147 = vector.shape_cast %9 : vector<1x32xf32> to vector<1x1x32xf32>
    %148 = vector.broadcast %147 : vector<1x1x32xf32> to vector<2x16x32xf32>
    %149 = arith.mulf %146, %148 : vector<2x16x32xf32>
    %cst_109 = arith.constant dense<0.000000e+00> : vector<2x16xf32>
    %150 = vector.multi_reduction <add>, %149, %cst_109 [2] : vector<2x16x32xf32> to vector<2x16xf32>
    %cst_110 = arith.constant dense<0xFF800000> : vector<2xf32>
    %151 = vector.multi_reduction <maximumf>, %150, %cst_110 [1] : vector<2x16xf32> to vector<2xf32>
    %152 = vector.shape_cast %151 : vector<2xf32> to vector<2x1xf32>
    %153 = vector.broadcast %152 : vector<2x1xf32> to vector<2x16xf32>
    %154 = arith.subf %150, %153 : vector<2x16xf32>
    %155 = math.exp %154 : vector<2x16xf32>
    %cst_111 = arith.constant dense<0.000000e+00> : vector<2xf32>
    %156 = vector.multi_reduction <add>, %155, %cst_111 [1] : vector<2x16xf32> to vector<2xf32>
    %157 = vector.shape_cast %156 : vector<2xf32> to vector<2x1xf32>
    %158 = vector.broadcast %157 : vector<2x1xf32> to vector<2x16xf32>
    %159 = arith.divf %155, %158 : vector<2x16xf32>
    %160 = vector.shape_cast %159 : vector<2x16xf32> to vector<2x1x16xf32>
    "tpu.trace_start"() <{level = 10 : i32, message = "bqp,bpe->bqe"}> : () -> ()
    %cst_112 = arith.constant dense<0.000000e+00> : vector<2x1x32xf32>
    %161 = tpu.matmul %160, %0, %cst_112 {dimension_numbers = #tpu.dot_dimension_numbers<[2], [1], [1], [2], [0, 0, 0, 1, 1, 2], [0], [0]>} : vector<2x1x16xf32>, vector<2x16x32xf32>, vector<2x1x32xf32> -> vector<2x1x32xf32>
    "tpu.trace_stop"() : () -> ()
    %162 = vector.shape_cast %161 : vector<2x1x32xf32> to vector<2x32xf32>
    %163 = vector.extract_strided_slice %97 {offsets = [2, 0], sizes = [2, 128], strides = [1, 1]} : vector<16x128xf32> to vector<2x128xf32>
    %cst_113 = arith.constant dense<0.000000e+00> : vector<2x128xf32>
    %164 = tpu.matmul %162, %11, %cst_113 {dimension_numbers = #tpu.dot_dimension_numbers<[1], [0], [0], [1], [0, 0, 1, 1], [], []>} : vector<2x32xf32>, vector<32x128xf32>, vector<2x128xf32> -> vector<2x128xf32>
    %165 = arith.addf %163, %164 : vector<2x128xf32>
    %cst_114 = arith.constant dense<0.000000e+00> : vector<2x128xf32>
    %166 = tpu.matmul %139, %12, %cst_114 {dimension_numbers = #tpu.dot_dimension_numbers<[1], [0], [0], [1], [0, 0, 1, 1], [], []>} : vector<2x32xf32>, vector<32x128xf32>, vector<2x128xf32> -> vector<2x128xf32>
    %167 = arith.addf %165, %166 : vector<2x128xf32>
    %168 = arith.negf %167 : vector<2x128xf32>
    %169 = math.exp %168 : vector<2x128xf32>
    %cst_115 = arith.constant 1.000000e+00 : f32
    %170 = vector.broadcast %cst_115 : f32 to vector<2x128xf32>
    %171 = arith.addf %170, %169 : vector<2x128xf32>
    %172 = arith.divf %170, %171 : vector<2x128xf32>
    %173 = math.tanh %167 : vector<2x128xf32>
    %174 = vector.extract_strided_slice %172 {offsets = [0, 0], sizes = [2, 32], strides = [1, 1]} : vector<2x128xf32> to vector<2x32xf32>
    %175 = vector.extract_strided_slice %172 {offsets = [0, 32], sizes = [2, 32], strides = [1, 1]} : vector<2x128xf32> to vector<2x32xf32>
    %176 = vector.extract_strided_slice %173 {offsets = [0, 64], sizes = [2, 32], strides = [1, 1]} : vector<2x128xf32> to vector<2x32xf32>
    %177 = vector.extract_strided_slice %172 {offsets = [0, 96], sizes = [2, 32], strides = [1, 1]} : vector<2x128xf32> to vector<2x32xf32>
    %178 = arith.mulf %175, %137 : vector<2x32xf32>
    %179 = arith.mulf %174, %176 : vector<2x32xf32>
    %180 = arith.addf %178, %179 : vector<2x32xf32>
    %181 = math.tanh %180 : vector<2x32xf32>
    %182 = arith.mulf %177, %181 : vector<2x32xf32>
    %c2_116 = arith.constant 2 : index
    %c0_117 = arith.constant 0 : index
    %183 = vector.load %arg8[%c2_116, %c0_117] : memref<16x32xf32, #tpu.memory_space<vmem>>, vector<2x32xf32>
    tpu.vector_store %arg8[%c2_116, %c0_117], %182 {strides = array<i32>} : memref<16x32xf32, #tpu.memory_space<vmem>>, vector<2x32xf32>,
    %cst_118 = arith.constant dense<0.000000e+00> : vector<2x32xf32>
    %184 = tpu.matmul %182, %4, %cst_118 {dimension_numbers = #tpu.dot_dimension_numbers<[1], [0], [0], [1], [0, 0, 1, 1], [], []>} : vector<2x32xf32>, vector<32x32xf32>, vector<2x32xf32> -> vector<2x32xf32>
    %185 = vector.shape_cast %184 : vector<2x32xf32> to vector<2x1x32xf32>
    %186 = vector.broadcast %185 : vector<2x1x32xf32> to vector<2x16x32xf32>
    %187 = arith.addf %29, %186 : vector<2x16x32xf32>
    %cst_119 = arith.constant 0.000000e+00 : f32
    %188 = vector.broadcast %cst_119 : f32 to vector<2x16x32xf32>
    %189 = arith.maximumf %187, %188 : vector<2x16x32xf32>
    %190 = vector.shape_cast %9 : vector<1x32xf32> to vector<1x1x32xf32>
    %191 = vector.broadcast %190 : vector<1x1x32xf32> to vector<2x16x32xf32>
    %192 = arith.mulf %189, %191 : vector<2x16x32xf32>
    %cst_120 = arith.constant dense<0.000000e+00> : vector<2x16xf32>
    %193 = vector.multi_reduction <add>, %192, %cst_120 [2] : vector<2x16x32xf32> to vector<2x16xf32>
    %cst_121 = arith.constant dense<0xFF800000> : vector<2xf32>
    %194 = vector.multi_reduction <maximumf>, %193, %cst_121 [1] : vector<2x16xf32> to vector<2xf32>
    %195 = vector.shape_cast %194 : vector<2xf32> to vector<2x1xf32>
    %196 = vector.broadcast %195 : vector<2x1xf32> to vector<2x16xf32>
    %197 = arith.subf %193, %196 : vector<2x16xf32>
    %198 = math.exp %197 : vector<2x16xf32>
    %cst_122 = arith.constant dense<0.000000e+00> : vector<2xf32>
    %199 = vector.multi_reduction <add>, %198, %cst_122 [1] : vector<2x16xf32> to vector<2xf32>
    %200 = vector.shape_cast %199 : vector<2xf32> to vector<2x1xf32>
    %201 = vector.broadcast %200 : vector<2x1xf32> to vector<2x16xf32>
    %202 = arith.divf %198, %201 : vector<2x16xf32>
    %203 = vector.shape_cast %202 : vector<2x16xf32> to vector<2x1x16xf32>
    "tpu.trace_start"() <{level = 10 : i32, message = "bqp,bpe->bqe"}> : () -> ()
    %cst_123 = arith.constant dense<0.000000e+00> : vector<2x1x32xf32>
    %204 = tpu.matmul %203, %0, %cst_123 {dimension_numbers = #tpu.dot_dimension_numbers<[2], [1], [1], [2], [0, 0, 0, 1, 1, 2], [0], [0]>} : vector<2x1x16xf32>, vector<2x16x32xf32>, vector<2x1x32xf32> -> vector<2x1x32xf32>
    "tpu.trace_stop"() : () -> ()
    %205 = vector.shape_cast %204 : vector<2x1x32xf32> to vector<2x32xf32>
    %206 = vector.extract_strided_slice %97 {offsets = [4, 0], sizes = [2, 128], strides = [1, 1]} : vector<16x128xf32> to vector<2x128xf32>
    %cst_124 = arith.constant dense<0.000000e+00> : vector<2x128xf32>
    %207 = tpu.matmul %205, %11, %cst_124 {dimension_numbers = #tpu.dot_dimension_numbers<[1], [0], [0], [1], [0, 0, 1, 1], [], []>} : vector<2x32xf32>, vector<32x128xf32>, vector<2x128xf32> -> vector<2x128xf32>
    %208 = arith.addf %206, %207 : vector<2x128xf32>
    %cst_125 = arith.constant dense<0.000000e+00> : vector<2x128xf32>
    %209 = tpu.matmul %182, %12, %cst_125 {dimension_numbers = #tpu.dot_dimension_numbers<[1], [0], [0], [1], [0, 0, 1, 1], [], []>} : vector<2x32xf32>, vector<32x128xf32>, vector<2x128xf32> -> vector<2x128xf32>
    %210 = arith.addf %208, %209 : vector<2x128xf32>
    %211 = arith.negf %210 : vector<2x128xf32>
    %212 = math.exp %211 : vector<2x128xf32>
    %cst_126 = arith.constant 1.000000e+00 : f32
    %213 = vector.broadcast %cst_126 : f32 to vector<2x128xf32>
    %214 = arith.addf %213, %212 : vector<2x128xf32>
    %215 = arith.divf %213, %214 : vector<2x128xf32>
    %216 = math.tanh %210 : vector<2x128xf32>
    %217 = vector.extract_strided_slice %215 {offsets = [0, 0], sizes = [2, 32], strides = [1, 1]} : vector<2x128xf32> to vector<2x32xf32>
    %218 = vector.extract_strided_slice %215 {offsets = [0, 32], sizes = [2, 32], strides = [1, 1]} : vector<2x128xf32> to vector<2x32xf32>
    %219 = vector.extract_strided_slice %216 {offsets = [0, 64], sizes = [2, 32], strides = [1, 1]} : vector<2x128xf32> to vector<2x32xf32>
    %220 = vector.extract_strided_slice %215 {offsets = [0, 96], sizes = [2, 32], strides = [1, 1]} : vector<2x128xf32> to vector<2x32xf32>
    %221 = arith.mulf %218, %180 : vector<2x32xf32>
    %222 = arith.mulf %217, %219 : vector<2x32xf32>
    %223 = arith.addf %221, %222 : vector<2x32xf32>
    %224 = math.tanh %223 : vector<2x32xf32>
    %225 = arith.mulf %220, %224 : vector<2x32xf32>
    %c4_127 = arith.constant 4 : index
    %c0_128 = arith.constant 0 : index
    %226 = vector.load %arg8[%c4_127, %c0_128] : memref<16x32xf32, #tpu.memory_space<vmem>>, vector<2x32xf32>
    tpu.vector_store %arg8[%c4_127, %c0_128], %225 {strides = array<i32>} : memref<16x32xf32, #tpu.memory_space<vmem>>, vector<2x32xf32>,
    %cst_129 = arith.constant dense<0.000000e+00> : vector<2x32xf32>
    %227 = tpu.matmul %225, %4, %cst_129 {dimension_numbers = #tpu.dot_dimension_numbers<[1], [0], [0], [1], [0, 0, 1, 1], [], []>} : vector<2x32xf32>, vector<32x32xf32>, vector<2x32xf32> -> vector<2x32xf32>
    %228 = vector.shape_cast %227 : vector<2x32xf32> to vector<2x1x32xf32>
    %229 = vector.broadcast %228 : vector<2x1x32xf32> to vector<2x16x32xf32>
    %230 = arith.addf %29, %229 : vector<2x16x32xf32>
    %cst_130 = arith.constant 0.000000e+00 : f32
    %231 = vector.broadcast %cst_130 : f32 to vector<2x16x32xf32>
    %232 = arith.maximumf %230, %231 : vector<2x16x32xf32>
    %233 = vector.shape_cast %9 : vector<1x32xf32> to vector<1x1x32xf32>
    %234 = vector.broadcast %233 : vector<1x1x32xf32> to vector<2x16x32xf32>
    %235 = arith.mulf %232, %234 : vector<2x16x32xf32>
    %cst_131 = arith.constant dense<0.000000e+00> : vector<2x16xf32>
    %236 = vector.multi_reduction <add>, %235, %cst_131 [2] : vector<2x16x32xf32> to vector<2x16xf32>
    %cst_132 = arith.constant dense<0xFF800000> : vector<2xf32>
    %237 = vector.multi_reduction <maximumf>, %236, %cst_132 [1] : vector<2x16xf32> to vector<2xf32>
    %238 = vector.shape_cast %237 : vector<2xf32> to vector<2x1xf32>
    %239 = vector.broadcast %238 : vector<2x1xf32> to vector<2x16xf32>
    %240 = arith.subf %236, %239 : vector<2x16xf32>
    %241 = math.exp %240 : vector<2x16xf32>
    %cst_133 = arith.constant dense<0.000000e+00> : vector<2xf32>
    %242 = vector.multi_reduction <add>, %241, %cst_133 [1] : vector<2x16xf32> to vector<2xf32>
    %243 = vector.shape_cast %242 : vector<2xf32> to vector<2x1xf32>
    %244 = vector.broadcast %243 : vector<2x1xf32> to vector<2x16xf32>
    %245 = arith.divf %241, %244 : vector<2x16xf32>
    %246 = vector.shape_cast %245 : vector<2x16xf32> to vector<2x1x16xf32>
    "tpu.trace_start"() <{level = 10 : i32, message = "bqp,bpe->bqe"}> : () -> ()
    %cst_134 = arith.constant dense<0.000000e+00> : vector<2x1x32xf32>
    %247 = tpu.matmul %246, %0, %cst_134 {dimension_numbers = #tpu.dot_dimension_numbers<[2], [1], [1], [2], [0, 0, 0, 1, 1, 2], [0], [0]>} : vector<2x1x16xf32>, vector<2x16x32xf32>, vector<2x1x32xf32> -> vector<2x1x32xf32>
    "tpu.trace_stop"() : () -> ()
    %248 = vector.shape_cast %247 : vector<2x1x32xf32> to vector<2x32xf32>
    %249 = vector.extract_strided_slice %97 {offsets = [6, 0], sizes = [2, 128], strides = [1, 1]} : vector<16x128xf32> to vector<2x128xf32>
    %cst_135 = arith.constant dense<0.000000e+00> : vector<2x128xf32>
    %250 = tpu.matmul %248, %11, %cst_135 {dimension_numbers = #tpu.dot_dimension_numbers<[1], [0], [0], [1], [0, 0, 1, 1], [], []>} : vector<2x32xf32>, vector<32x128xf32>, vector<2x128xf32> -> vector<2x128xf32>
    %251 = arith.addf %249, %250 : vector<2x128xf32>
    %cst_136 = arith.constant dense<0.000000e+00> : vector<2x128xf32>
    %252 = tpu.matmul %225, %12, %cst_136 {dimension_numbers = #tpu.dot_dimension_numbers<[1], [0], [0], [1], [0, 0, 1, 1], [], []>} : vector<2x32xf32>, vector<32x128xf32>, vector<2x128xf32> -> vector<2x128xf32>
    %253 = arith.addf %251, %252 : vector<2x128xf32>
    %254 = arith.negf %253 : vector<2x128xf32>
    %255 = math.exp %254 : vector<2x128xf32>
    %cst_137 = arith.constant 1.000000e+00 : f32
    %256 = vector.broadcast %cst_137 : f32 to vector<2x128xf32>
    %257 = arith.addf %256, %255 : vector<2x128xf32>
    %258 = arith.divf %256, %257 : vector<2x128xf32>
    %259 = math.tanh %253 : vector<2x128xf32>
    %260 = vector.extract_strided_slice %258 {offsets = [0, 0], sizes = [2, 32], strides = [1, 1]} : vector<2x128xf32> to vector<2x32xf32>
    %261 = vector.extract_strided_slice %258 {offsets = [0, 32], sizes = [2, 32], strides = [1, 1]} : vector<2x128xf32> to vector<2x32xf32>
    %262 = vector.extract_strided_slice %259 {offsets = [0, 64], sizes = [2, 32], strides = [1, 1]} : vector<2x128xf32> to vector<2x32xf32>
    %263 = vector.extract_strided_slice %258 {offsets = [0, 96], sizes = [2, 32], strides = [1, 1]} : vector<2x128xf32> to vector<2x32xf32>
    %264 = arith.mulf %261, %223 : vector<2x32xf32>
    %265 = arith.mulf %260, %262 : vector<2x32xf32>
    %266 = arith.addf %264, %265 : vector<2x32xf32>
    %267 = math.tanh %266 : vector<2x32xf32>
    %268 = arith.mulf %263, %267 : vector<2x32xf32>
    %c6_138 = arith.constant 6 : index
    %c0_139 = arith.constant 0 : index
    %269 = vector.load %arg8[%c6_138, %c0_139] : memref<16x32xf32, #tpu.memory_space<vmem>>, vector<2x32xf32>
    tpu.vector_store %arg8[%c6_138, %c0_139], %268 {strides = array<i32>} : memref<16x32xf32, #tpu.memory_space<vmem>>, vector<2x32xf32>,
    %cst_140 = arith.constant dense<0.000000e+00> : vector<2x32xf32>
    %270 = tpu.matmul %268, %4, %cst_140 {dimension_numbers = #tpu.dot_dimension_numbers<[1], [0], [0], [1], [0, 0, 1, 1], [], []>} : vector<2x32xf32>, vector<32x32xf32>, vector<2x32xf32> -> vector<2x32xf32>
    %271 = vector.shape_cast %270 : vector<2x32xf32> to vector<2x1x32xf32>
    %272 = vector.broadcast %271 : vector<2x1x32xf32> to vector<2x16x32xf32>
    %273 = arith.addf %29, %272 : vector<2x16x32xf32>
    %cst_141 = arith.constant 0.000000e+00 : f32
    %274 = vector.broadcast %cst_141 : f32 to vector<2x16x32xf32>
    %275 = arith.maximumf %273, %274 : vector<2x16x32xf32>
    %276 = vector.shape_cast %9 : vector<1x32xf32> to vector<1x1x32xf32>
    %277 = vector.broadcast %276 : vector<1x1x32xf32> to vector<2x16x32xf32>
    %278 = arith.mulf %275, %277 : vector<2x16x32xf32>
    %cst_142 = arith.constant dense<0.000000e+00> : vector<2x16xf32>
    %279 = vector.multi_reduction <add>, %278, %cst_142 [2] : vector<2x16x32xf32> to vector<2x16xf32>
    %cst_143 = arith.constant dense<0xFF800000> : vector<2xf32>
    %280 = vector.multi_reduction <maximumf>, %279, %cst_143 [1] : vector<2x16xf32> to vector<2xf32>
    %281 = vector.shape_cast %280 : vector<2xf32> to vector<2x1xf32>
    %282 = vector.broadcast %281 : vector<2x1xf32> to vector<2x16xf32>
    %283 = arith.subf %279, %282 : vector<2x16xf32>
    %284 = math.exp %283 : vector<2x16xf32>
    %cst_144 = arith.constant dense<0.000000e+00> : vector<2xf32>
    %285 = vector.multi_reduction <add>, %284, %cst_144 [1] : vector<2x16xf32> to vector<2xf32>
    %286 = vector.shape_cast %285 : vector<2xf32> to vector<2x1xf32>
    %287 = vector.broadcast %286 : vector<2x1xf32> to vector<2x16xf32>
    %288 = arith.divf %284, %287 : vector<2x16xf32>
    %289 = vector.shape_cast %288 : vector<2x16xf32> to vector<2x1x16xf32>
    "tpu.trace_start"() <{level = 10 : i32, message = "bqp,bpe->bqe"}> : () -> ()
    %cst_145 = arith.constant dense<0.000000e+00> : vector<2x1x32xf32>
    %290 = tpu.matmul %289, %0, %cst_145 {dimension_numbers = #tpu.dot_dimension_numbers<[2], [1], [1], [2], [0, 0, 0, 1, 1, 2], [0], [0]>} : vector<2x1x16xf32>, vector<2x16x32xf32>, vector<2x1x32xf32> -> vector<2x1x32xf32>
    "tpu.trace_stop"() : () -> ()
    %291 = vector.shape_cast %290 : vector<2x1x32xf32> to vector<2x32xf32>
    %292 = vector.extract_strided_slice %97 {offsets = [8, 0], sizes = [2, 128], strides = [1, 1]} : vector<16x128xf32> to vector<2x128xf32>
    %cst_146 = arith.constant dense<0.000000e+00> : vector<2x128xf32>
    %293 = tpu.matmul %291, %11, %cst_146 {dimension_numbers = #tpu.dot_dimension_numbers<[1], [0], [0], [1], [0, 0, 1, 1], [], []>} : vector<2x32xf32>, vector<32x128xf32>, vector<2x128xf32> -> vector<2x128xf32>
    %294 = arith.addf %292, %293 : vector<2x128xf32>
    %cst_147 = arith.constant dense<0.000000e+00> : vector<2x128xf32>
    %295 = tpu.matmul %268, %12, %cst_147 {dimension_numbers = #tpu.dot_dimension_numbers<[1], [0], [0], [1], [0, 0, 1, 1], [], []>} : vector<2x32xf32>, vector<32x128xf32>, vector<2x128xf32> -> vector<2x128xf32>
    %296 = arith.addf %294, %295 : vector<2x128xf32>
    %297 = arith.negf %296 : vector<2x128xf32>
    %298 = math.exp %297 : vector<2x128xf32>
    %cst_148 = arith.constant 1.000000e+00 : f32
    %299 = vector.broadcast %cst_148 : f32 to vector<2x128xf32>
    %300 = arith.addf %299, %298 : vector<2x128xf32>
    %301 = arith.divf %299, %300 : vector<2x128xf32>
    %302 = math.tanh %296 : vector<2x128xf32>
    %303 = vector.extract_strided_slice %301 {offsets = [0, 0], sizes = [2, 32], strides = [1, 1]} : vector<2x128xf32> to vector<2x32xf32>
    %304 = vector.extract_strided_slice %301 {offsets = [0, 32], sizes = [2, 32], strides = [1, 1]} : vector<2x128xf32> to vector<2x32xf32>
    %305 = vector.extract_strided_slice %302 {offsets = [0, 64], sizes = [2, 32], strides = [1, 1]} : vector<2x128xf32> to vector<2x32xf32>
    %306 = vector.extract_strided_slice %301 {offsets = [0, 96], sizes = [2, 32], strides = [1, 1]} : vector<2x128xf32> to vector<2x32xf32>
    %307 = arith.mulf %304, %266 : vector<2x32xf32>
    %308 = arith.mulf %303, %305 : vector<2x32xf32>
    %309 = arith.addf %307, %308 : vector<2x32xf32>
    %310 = math.tanh %309 : vector<2x32xf32>
    %311 = arith.mulf %306, %310 : vector<2x32xf32>
    %c8_149 = arith.constant 8 : index
    %c0_150 = arith.constant 0 : index
    %312 = vector.load %arg8[%c8_149, %c0_150] : memref<16x32xf32, #tpu.memory_space<vmem>>, vector<2x32xf32>
    tpu.vector_store %arg8[%c8_149, %c0_150], %311 {strides = array<i32>} : memref<16x32xf32, #tpu.memory_space<vmem>>, vector<2x32xf32>,
    %cst_151 = arith.constant dense<0.000000e+00> : vector<2x32xf32>
    %313 = tpu.matmul %311, %4, %cst_151 {dimension_numbers = #tpu.dot_dimension_numbers<[1], [0], [0], [1], [0, 0, 1, 1], [], []>} : vector<2x32xf32>, vector<32x32xf32>, vector<2x32xf32> -> vector<2x32xf32>
    %314 = vector.shape_cast %313 : vector<2x32xf32> to vector<2x1x32xf32>
    %315 = vector.broadcast %314 : vector<2x1x32xf32> to vector<2x16x32xf32>
    %316 = arith.addf %29, %315 : vector<2x16x32xf32>
    %cst_152 = arith.constant 0.000000e+00 : f32
    %317 = vector.broadcast %cst_152 : f32 to vector<2x16x32xf32>
    %318 = arith.maximumf %316, %317 : vector<2x16x32xf32>
    %319 = vector.shape_cast %9 : vector<1x32xf32> to vector<1x1x32xf32>
    %320 = vector.broadcast %319 : vector<1x1x32xf32> to vector<2x16x32xf32>
    %321 = arith.mulf %318, %320 : vector<2x16x32xf32>
    %cst_153 = arith.constant dense<0.000000e+00> : vector<2x16xf32>
    %322 = vector.multi_reduction <add>, %321, %cst_153 [2] : vector<2x16x32xf32> to vector<2x16xf32>
    %cst_154 = arith.constant dense<0xFF800000> : vector<2xf32>
    %323 = vector.multi_reduction <maximumf>, %322, %cst_154 [1] : vector<2x16xf32> to vector<2xf32>
    %324 = vector.shape_cast %323 : vector<2xf32> to vector<2x1xf32>
    %325 = vector.broadcast %324 : vector<2x1xf32> to vector<2x16xf32>
    %326 = arith.subf %322, %325 : vector<2x16xf32>
    %327 = math.exp %326 : vector<2x16xf32>
    %cst_155 = arith.constant dense<0.000000e+00> : vector<2xf32>
    %328 = vector.multi_reduction <add>, %327, %cst_155 [1] : vector<2x16xf32> to vector<2xf32>
    %329 = vector.shape_cast %328 : vector<2xf32> to vector<2x1xf32>
    %330 = vector.broadcast %329 : vector<2x1xf32> to vector<2x16xf32>
    %331 = arith.divf %327, %330 : vector<2x16xf32>
    %332 = vector.shape_cast %331 : vector<2x16xf32> to vector<2x1x16xf32>
    "tpu.trace_start"() <{level = 10 : i32, message = "bqp,bpe->bqe"}> : () -> ()
    %cst_156 = arith.constant dense<0.000000e+00> : vector<2x1x32xf32>
    %333 = tpu.matmul %332, %0, %cst_156 {dimension_numbers = #tpu.dot_dimension_numbers<[2], [1], [1], [2], [0, 0, 0, 1, 1, 2], [0], [0]>} : vector<2x1x16xf32>, vector<2x16x32xf32>, vector<2x1x32xf32> -> vector<2x1x32xf32>
    "tpu.trace_stop"() : () -> ()
    %334 = vector.shape_cast %333 : vector<2x1x32xf32> to vector<2x32xf32>
    %335 = vector.extract_strided_slice %97 {offsets = [10, 0], sizes = [2, 128], strides = [1, 1]} : vector<16x128xf32> to vector<2x128xf32>
    %cst_157 = arith.constant dense<0.000000e+00> : vector<2x128xf32>
    %336 = tpu.matmul %334, %11, %cst_157 {dimension_numbers = #tpu.dot_dimension_numbers<[1], [0], [0], [1], [0, 0, 1, 1], [], []>} : vector<2x32xf32>, vector<32x128xf32>, vector<2x128xf32> -> vector<2x128xf32>
    %337 = arith.addf %335, %336 : vector<2x128xf32>
    %cst_158 = arith.constant dense<0.000000e+00> : vector<2x128xf32>
    %338 = tpu.matmul %311, %12, %cst_158 {dimension_numbers = #tpu.dot_dimension_numbers<[1], [0], [0], [1], [0, 0, 1, 1], [], []>} : vector<2x32xf32>, vector<32x128xf32>, vector<2x128xf32> -> vector<2x128xf32>
    %339 = arith.addf %337, %338 : vector<2x128xf32>
    %340 = arith.negf %339 : vector<2x128xf32>
    %341 = math.exp %340 : vector<2x128xf32>
    %cst_159 = arith.constant 1.000000e+00 : f32
    %342 = vector.broadcast %cst_159 : f32 to vector<2x128xf32>
    %343 = arith.addf %342, %341 : vector<2x128xf32>
    %344 = arith.divf %342, %343 : vector<2x128xf32>
    %345 = math.tanh %339 : vector<2x128xf32>
    %346 = vector.extract_strided_slice %344 {offsets = [0, 0], sizes = [2, 32], strides = [1, 1]} : vector<2x128xf32> to vector<2x32xf32>
    %347 = vector.extract_strided_slice %344 {offsets = [0, 32], sizes = [2, 32], strides = [1, 1]} : vector<2x128xf32> to vector<2x32xf32>
    %348 = vector.extract_strided_slice %345 {offsets = [0, 64], sizes = [2, 32], strides = [1, 1]} : vector<2x128xf32> to vector<2x32xf32>
    %349 = vector.extract_strided_slice %344 {offsets = [0, 96], sizes = [2, 32], strides = [1, 1]} : vector<2x128xf32> to vector<2x32xf32>
    %350 = arith.mulf %347, %309 : vector<2x32xf32>
    %351 = arith.mulf %346, %348 : vector<2x32xf32>
    %352 = arith.addf %350, %351 : vector<2x32xf32>
    %353 = math.tanh %352 : vector<2x32xf32>
    %354 = arith.mulf %349, %353 : vector<2x32xf32>
    %c10_160 = arith.constant 10 : index
    %c0_161 = arith.constant 0 : index
    %355 = vector.load %arg8[%c10_160, %c0_161] : memref<16x32xf32, #tpu.memory_space<vmem>>, vector<2x32xf32>
    tpu.vector_store %arg8[%c10_160, %c0_161], %354 {strides = array<i32>} : memref<16x32xf32, #tpu.memory_space<vmem>>, vector<2x32xf32>,
    %cst_162 = arith.constant dense<0.000000e+00> : vector<2x32xf32>
    %356 = tpu.matmul %354, %4, %cst_162 {dimension_numbers = #tpu.dot_dimension_numbers<[1], [0], [0], [1], [0, 0, 1, 1], [], []>} : vector<2x32xf32>, vector<32x32xf32>, vector<2x32xf32> -> vector<2x32xf32>
    %357 = vector.shape_cast %356 : vector<2x32xf32> to vector<2x1x32xf32>
    %358 = vector.broadcast %357 : vector<2x1x32xf32> to vector<2x16x32xf32>
    %359 = arith.addf %29, %358 : vector<2x16x32xf32>
    %cst_163 = arith.constant 0.000000e+00 : f32
    %360 = vector.broadcast %cst_163 : f32 to vector<2x16x32xf32>
    %361 = arith.maximumf %359, %360 : vector<2x16x32xf32>
    %362 = vector.shape_cast %9 : vector<1x32xf32> to vector<1x1x32xf32>
    %363 = vector.broadcast %362 : vector<1x1x32xf32> to vector<2x16x32xf32>
    %364 = arith.mulf %361, %363 : vector<2x16x32xf32>
    %cst_164 = arith.constant dense<0.000000e+00> : vector<2x16xf32>
    %365 = vector.multi_reduction <add>, %364, %cst_164 [2] : vector<2x16x32xf32> to vector<2x16xf32>
    %cst_165 = arith.constant dense<0xFF800000> : vector<2xf32>
    %366 = vector.multi_reduction <maximumf>, %365, %cst_165 [1] : vector<2x16xf32> to vector<2xf32>
    %367 = vector.shape_cast %366 : vector<2xf32> to vector<2x1xf32>
    %368 = vector.broadcast %367 : vector<2x1xf32> to vector<2x16xf32>
    %369 = arith.subf %365, %368 : vector<2x16xf32>
    %370 = math.exp %369 : vector<2x16xf32>
    %cst_166 = arith.constant dense<0.000000e+00> : vector<2xf32>
    %371 = vector.multi_reduction <add>, %370, %cst_166 [1] : vector<2x16xf32> to vector<2xf32>
    %372 = vector.shape_cast %371 : vector<2xf32> to vector<2x1xf32>
    %373 = vector.broadcast %372 : vector<2x1xf32> to vector<2x16xf32>
    %374 = arith.divf %370, %373 : vector<2x16xf32>
    %375 = vector.shape_cast %374 : vector<2x16xf32> to vector<2x1x16xf32>
    "tpu.trace_start"() <{level = 10 : i32, message = "bqp,bpe->bqe"}> : () -> ()
    %cst_167 = arith.constant dense<0.000000e+00> : vector<2x1x32xf32>
    %376 = tpu.matmul %375, %0, %cst_167 {dimension_numbers = #tpu.dot_dimension_numbers<[2], [1], [1], [2], [0, 0, 0, 1, 1, 2], [0], [0]>} : vector<2x1x16xf32>, vector<2x16x32xf32>, vector<2x1x32xf32> -> vector<2x1x32xf32>
    "tpu.trace_stop"() : () -> ()
    %377 = vector.shape_cast %376 : vector<2x1x32xf32> to vector<2x32xf32>
    %378 = vector.extract_strided_slice %97 {offsets = [12, 0], sizes = [2, 128], strides = [1, 1]} : vector<16x128xf32> to vector<2x128xf32>
    %cst_168 = arith.constant dense<0.000000e+00> : vector<2x128xf32>
    %379 = tpu.matmul %377, %11, %cst_168 {dimension_numbers = #tpu.dot_dimension_numbers<[1], [0], [0], [1], [0, 0, 1, 1], [], []>} : vector<2x32xf32>, vector<32x128xf32>, vector<2x128xf32> -> vector<2x128xf32>
    %380 = arith.addf %378, %379 : vector<2x128xf32>
    %cst_169 = arith.constant dense<0.000000e+00> : vector<2x128xf32>
    %381 = tpu.matmul %354, %12, %cst_169 {dimension_numbers = #tpu.dot_dimension_numbers<[1], [0], [0], [1], [0, 0, 1, 1], [], []>} : vector<2x32xf32>, vector<32x128xf32>, vector<2x128xf32> -> vector<2x128xf32>
    %382 = arith.addf %380, %381 : vector<2x128xf32>
    %383 = arith.negf %382 : vector<2x128xf32>
    %384 = math.exp %383 : vector<2x128xf32>
    %cst_170 = arith.constant 1.000000e+00 : f32
    %385 = vector.broadcast %cst_170 : f32 to vector<2x128xf32>
    %386 = arith.addf %385, %384 : vector<2x128xf32>
    %387 = arith.divf %385, %386 : vector<2x128xf32>
    %388 = math.tanh %382 : vector<2x128xf32>
    %389 = vector.extract_strided_slice %387 {offsets = [0, 0], sizes = [2, 32], strides = [1, 1]} : vector<2x128xf32> to vector<2x32xf32>
    %390 = vector.extract_strided_slice %387 {offsets = [0, 32], sizes = [2, 32], strides = [1, 1]} : vector<2x128xf32> to vector<2x32xf32>
    %391 = vector.extract_strided_slice %388 {offsets = [0, 64], sizes = [2, 32], strides = [1, 1]} : vector<2x128xf32> to vector<2x32xf32>
    %392 = vector.extract_strided_slice %387 {offsets = [0, 96], sizes = [2, 32], strides = [1, 1]} : vector<2x128xf32> to vector<2x32xf32>
    %393 = arith.mulf %390, %352 : vector<2x32xf32>
    %394 = arith.mulf %389, %391 : vector<2x32xf32>
    %395 = arith.addf %393, %394 : vector<2x32xf32>
    %396 = math.tanh %395 : vector<2x32xf32>
    %397 = arith.mulf %392, %396 : vector<2x32xf32>
    %c12_171 = arith.constant 12 : index
    %c0_172 = arith.constant 0 : index
    %398 = vector.load %arg8[%c12_171, %c0_172] : memref<16x32xf32, #tpu.memory_space<vmem>>, vector<2x32xf32>
    tpu.vector_store %arg8[%c12_171, %c0_172], %397 {strides = array<i32>} : memref<16x32xf32, #tpu.memory_space<vmem>>, vector<2x32xf32>,
    %cst_173 = arith.constant dense<0.000000e+00> : vector<2x32xf32>
    %399 = tpu.matmul %397, %4, %cst_173 {dimension_numbers = #tpu.dot_dimension_numbers<[1], [0], [0], [1], [0, 0, 1, 1], [], []>} : vector<2x32xf32>, vector<32x32xf32>, vector<2x32xf32> -> vector<2x32xf32>
    %400 = vector.shape_cast %399 : vector<2x32xf32> to vector<2x1x32xf32>
    %401 = vector.broadcast %400 : vector<2x1x32xf32> to vector<2x16x32xf32>
    %402 = arith.addf %29, %401 : vector<2x16x32xf32>
    %cst_174 = arith.constant 0.000000e+00 : f32
    %403 = vector.broadcast %cst_174 : f32 to vector<2x16x32xf32>
    %404 = arith.maximumf %402, %403 : vector<2x16x32xf32>
    %405 = vector.shape_cast %9 : vector<1x32xf32> to vector<1x1x32xf32>
    %406 = vector.broadcast %405 : vector<1x1x32xf32> to vector<2x16x32xf32>
    %407 = arith.mulf %404, %406 : vector<2x16x32xf32>
    %cst_175 = arith.constant dense<0.000000e+00> : vector<2x16xf32>
    %408 = vector.multi_reduction <add>, %407, %cst_175 [2] : vector<2x16x32xf32> to vector<2x16xf32>
    %cst_176 = arith.constant dense<0xFF800000> : vector<2xf32>
    %409 = vector.multi_reduction <maximumf>, %408, %cst_176 [1] : vector<2x16xf32> to vector<2xf32>
    %410 = vector.shape_cast %409 : vector<2xf32> to vector<2x1xf32>
    %411 = vector.broadcast %410 : vector<2x1xf32> to vector<2x16xf32>
    %412 = arith.subf %408, %411 : vector<2x16xf32>
    %413 = math.exp %412 : vector<2x16xf32>
    %cst_177 = arith.constant dense<0.000000e+00> : vector<2xf32>
    %414 = vector.multi_reduction <add>, %413, %cst_177 [1] : vector<2x16xf32> to vector<2xf32>
    %415 = vector.shape_cast %414 : vector<2xf32> to vector<2x1xf32>
    %416 = vector.broadcast %415 : vector<2x1xf32> to vector<2x16xf32>
    %417 = arith.divf %413, %416 : vector<2x16xf32>
    %418 = vector.shape_cast %417 : vector<2x16xf32> to vector<2x1x16xf32>
    "tpu.trace_start"() <{level = 10 : i32, message = "bqp,bpe->bqe"}> : () -> ()
    %cst_178 = arith.constant dense<0.000000e+00> : vector<2x1x32xf32>
    %419 = tpu.matmul %418, %0, %cst_178 {dimension_numbers = #tpu.dot_dimension_numbers<[2], [1], [1], [2], [0, 0, 0, 1, 1, 2], [0], [0]>} : vector<2x1x16xf32>, vector<2x16x32xf32>, vector<2x1x32xf32> -> vector<2x1x32xf32>
    "tpu.trace_stop"() : () -> ()
    %420 = vector.shape_cast %419 : vector<2x1x32xf32> to vector<2x32xf32>
    %421 = vector.extract_strided_slice %97 {offsets = [14, 0], sizes = [2, 128], strides = [1, 1]} : vector<16x128xf32> to vector<2x128xf32>
    %cst_179 = arith.constant dense<0.000000e+00> : vector<2x128xf32>
    %422 = tpu.matmul %420, %11, %cst_179 {dimension_numbers = #tpu.dot_dimension_numbers<[1], [0], [0], [1], [0, 0, 1, 1], [], []>} : vector<2x32xf32>, vector<32x128xf32>, vector<2x128xf32> -> vector<2x128xf32>
    %423 = arith.addf %421, %422 : vector<2x128xf32>
    %cst_180 = arith.constant dense<0.000000e+00> : vector<2x128xf32>
    %424 = tpu.matmul %397, %12, %cst_180 {dimension_numbers = #tpu.dot_dimension_numbers<[1], [0], [0], [1], [0, 0, 1, 1], [], []>} : vector<2x32xf32>, vector<32x128xf32>, vector<2x128xf32> -> vector<2x128xf32>
    %425 = arith.addf %423, %424 : vector<2x128xf32>
    %426 = arith.negf %425 : vector<2x128xf32>
    %427 = math.exp %426 : vector<2x128xf32>
    %cst_181 = arith.constant 1.000000e+00 : f32
    %428 = vector.broadcast %cst_181 : f32 to vector<2x128xf32>
    %429 = arith.addf %428, %427 : vector<2x128xf32>
    %430 = arith.divf %428, %429 : vector<2x128xf32>
    %431 = math.tanh %425 : vector<2x128xf32>
    %432 = vector.extract_strided_slice %430 {offsets = [0, 0], sizes = [2, 32], strides = [1, 1]} : vector<2x128xf32> to vector<2x32xf32>
    %433 = vector.extract_strided_slice %430 {offsets = [0, 32], sizes = [2, 32], strides = [1, 1]} : vector<2x128xf32> to vector<2x32xf32>
    %434 = vector.extract_strided_slice %431 {offsets = [0, 64], sizes = [2, 32], strides = [1, 1]} : vector<2x128xf32> to vector<2x32xf32>
    %435 = vector.extract_strided_slice %430 {offsets = [0, 96], sizes = [2, 32], strides = [1, 1]} : vector<2x128xf32> to vector<2x32xf32>
    %436 = arith.mulf %433, %395 : vector<2x32xf32>
    %437 = arith.mulf %432, %434 : vector<2x32xf32>
    %438 = arith.addf %436, %437 : vector<2x32xf32>
    %439 = math.tanh %438 : vector<2x32xf32>
    %440 = arith.mulf %435, %439 : vector<2x32xf32>
    %c14_182 = arith.constant 14 : index
    %c0_183 = arith.constant 0 : index
    %441 = vector.load %arg8[%c14_182, %c0_183] : memref<16x32xf32, #tpu.memory_space<vmem>>, vector<2x32xf32>
    tpu.vector_store %arg8[%c14_182, %c0_183], %440 {strides = array<i32>} : memref<16x32xf32, #tpu.memory_space<vmem>>, vector<2x32xf32>,
    %c0_184 = arith.constant 0 : index
    %c0_185 = arith.constant 0 : index
    %442 = vector.load %arg8[%c0_184, %c0_185] : memref<16x32xf32, #tpu.memory_space<vmem>>, vector<16x32xf32>
    %cst_186 = arith.constant dense<0.000000e+00> : vector<16x128xf32>
    %443 = tpu.matmul %442, %13, %cst_186 {dimension_numbers = #tpu.dot_dimension_numbers<[1], [0], [0], [1], [0, 0, 1, 1], [], []>} : vector<16x32xf32>, vector<32x128xf32>, vector<16x128xf32> -> vector<16x128xf32>
    %444 = vector.broadcast %15 : vector<1x128xf32> to vector<16x128xf32>
    %445 = arith.addf %443, %444 : vector<16x128xf32>
    %c0_187 = arith.constant 0 : index
    %c0_188 = arith.constant 0 : index
    %446 = vector.load %arg6[%c0_187, %c0_188] : memref<16x128xf32, #tpu.memory_space<vmem>>, vector<16x128xf32>
    tpu.vector_store %arg6[%c0_187, %c0_188], %445 {strides = array<i32>} : memref<16x128xf32, #tpu.memory_space<vmem>>, vector<16x128xf32>,
    return
  }
  func.func @transform_0(%arg0: i32, %arg1: memref<2x8xi32, #tpu.memory_space<smem>>) -> (i32, i32, i32) {
    %c0_i32 = arith.constant 0 : i32
    %c0_i32_0 = arith.constant 0 : i32
    %c0_i32_1 = arith.constant 0 : i32
    %c0_i32_2 = arith.constant 0 : i32
    return %c0_i32, %c0_i32_0, %c0_i32_1 : i32, i32, i32
  }
  func.func @transform_1(%arg0: i32, %arg1: memref<2x8xi32, #tpu.memory_space<smem>>) -> (i32, i32) {
    %c0_i32 = arith.constant 0 : i32
    %c0_i32_0 = arith.constant 0 : i32
    %c0_i32_1 = arith.constant 0 : i32
    return %c0_i32, %c0_i32_0 : i32, i32
  }
  func.func @transform_2(%arg0: i32, %arg1: memref<2x8xi32, #tpu.memory_space<smem>>) -> (i32, i32) {
    %c0_i32 = arith.constant 0 : i32
    %c0_i32_0 = arith.constant 0 : i32
    %c0_i32_1 = arith.constant 0 : i32
    return %c0_i32, %c0_i32_0 : i32, i32
  }
  func.func @transform_3(%arg0: i32, %arg1: memref<2x8xi32, #tpu.memory_space<smem>>) -> (i32, i32) {
    %c0_i32 = arith.constant 0 : i32
    %c0_i32_0 = arith.constant 0 : i32
    %c0_i32_1 = arith.constant 0 : i32
    return %c0_i32, %c0_i32_0 : i32, i32
  }
  func.func @transform_4(%arg0: i32, %arg1: memref<2x8xi32, #tpu.memory_space<smem>>) -> (i32, i32) {
    %c0_i32 = arith.constant 0 : i32
    %c0_i32_0 = arith.constant 0 : i32
    %c0_i32_1 = arith.constant 0 : i32
    return %c0_i32, %c0_i32_0 : i32, i32
  }
}

</mosaic_0001>

<bundles_post_ra>
// kernel: lstm_captioning_attention_forward.1
= control target key start
LH: loop header
LB: loop body
LE: loop exit
PB: predicated region body
PF: predicated region fallthrough
CT: control target
= control target key end

     0   :  { %s7744_s0 = inlined_call_operand.vmem [shape: s32[2,8], index: 0, kind: input, shape index: {}]   ;;  %s7745_s1 = inlined_call_operand.vmem [shape: f32[2,16,32], index: 1, kind: input, shape index: {}]   ;;  %s7746_s2 = inlined_call_operand.vmem [shape: f32[64,32], index: 2, kind: input, shape index: {}]   ;;  %s7747_s3 = inlined_call_operand.vmem [shape: f32[144,128], index: 3, kind: input, shape index: {}]   ;;  %s7748_s4 = inlined_call_operand.vmem [shape: f32[168,32], index: 4, kind: input, shape index: {}]   ;;  %s7749_s5 = inlined_call_operand.vmem [shape: f32[16,128], index: 5, kind: output, shape index: {}]  }
   0x1   :  { %s10_s20 = sshll.u32 %s7744_s0, 4  ;;  %s11_s20 = int_to_ptr.vmem [resolvable:$true] %s10_s20 }
   0x2   :  { %s6331_s21 = scalar_lea.vmem %s11_s20, 32  ;;  %p6336_p1 = scmp.lt.s32.totalorder %s11_s20, %s11_s20 }
   0x3   :  { %p6332_p0 = scmp.ne.s32.totalorder %s11_s20, %s6331_s21  ;;  %p6337_p2 = scmp.lt.s32.totalorder %s6331_s21, %s6331_s21 }
   0x5   :  { %p6338_p3 = por %p6337_p2, %p6336_p1 }
   0x7   :  { %p6339_p4 = pnand %p6338_p3, %p6332_p0 }
   0x9   :  { %6342 = shalt.err (!%p6339_p4)  }
   0xa   :  { %s6345_s22 = smov [#allocation5]  }
   0xb   :  { %13 = dma.vmem_to_smem %s11_s20, 32, %s6345_s22, [#allocation4] }
   0xc   :  { %6343 = dma.done.wait [#allocation4], 32 }
   0xd   :  { %6344 = vsyncadd [#allocation4], 4294967264 }
   0xe   :  { %15 = sfence }
   0xf   :  { %v31_v0 = vld [vmem:[%s7748_s4 + $0x18] sm:$0xff]  ;;  %vm67_vm0 = vcmask 261120   ;;  %v6346_v1 = vmov 0.0   ;;  %v30_v2 = vld [vmem:[%s7748_s4 + $0x10] sm:$0xff]  ;;  %vm6347_vm1 = vmmov 0   ;;  %v6397_v3 = vld [vmem:[%s7745_s1] sm:$0xff]  ;;  %v244_v43 = vlaneseq }
  0x10   :  { %5693 = vmatprep.subr.mxu0 %v6346_v1  ;;  %5701 = vmatprep.mubr.msk.f32.mxu0 %vm6347_vm1, %v6346_v1  ;;  %v6402_v4 = vld [vmem:[%s7745_s1 + $0x8] sm:$0xff]  ;;  %v6407_v5 = vld [vmem:[%s7745_s1 + $0x10] sm:$0xff]  ;;  %v6412_v6 = vld [vmem:[%s7745_s1 + $0x18] sm:$0xff]  ;;  %v68_v7 = vsel %vm67_vm0, %v6397_v3, 0.0  ;;  %vm95_vm2 = vcmask 1041409   ;;  %vm646_vm3 = vcmask 130112  }
  0x11   :  { %5694 = vmatpush3.msra.mxu0 %v31_v0  ;;  %v69_v8 = vsel %vm67_vm0, %v6402_v4, 0.0  ;;  %5704 = vmatprep.subr.mxu1 %v6346_v1  ;;  %v29_v9 = vld [vmem:[%s7748_s4 + $0x8] sm:$0xff]  ;;  %v77_v11 = vsel %vm67_vm0, %v6407_v5, 0.0  ;;  %v78_v12 = vsel %vm67_vm0, %v6412_v6, 0.0  ;;  %v28_v14 = vld [vmem:[%s7748_s4] sm:$0xff]  ;;  %v39_v17 = vld [vmem:[%s7748_s4 + $0x58] sm:$0xff] }
  0x12   :  { %5695 = vmatprep.subr.mxu0 %v6346_v1  ;;  %v70_v10 = vadd.f32 %v69_v8, %v68_v7  ;;  %5712 = vmatprep.mubr.msk.f32.mxu1 %vm6347_vm1, %v6346_v1  ;;  %v79_v13 = vadd.f32 %v78_v12, %v77_v11  ;;  %v38_v31 = vld [vmem:[%s7748_s4 + $0x50] sm:$0xff]  ;;  %v37_v32 = vld [vmem:[%s7748_s4 + $0x48] sm:$0xff]  ;;  %v36_v33 = vld [vmem:[%s7748_s4 + $0x40] sm:$0xff]  ;;  %v6348_v44 = vmov 1966171168   ;;  %v6499_v47 = vshrl.u32 %v244_v43, 7 }
  0x13   :  { %5696 = vmatpush3.msra.mxu0 %v30_v2  ;;  %v6456_v34 = vld [vmem:[%s7748_s4 + $0x78] sm:$0xff]  ;;  %v6464_v35 = vld [vmem:[%s7748_s4 + $0x70] sm:$0xff]  ;;  %v6473_v36 = vld [vmem:[%s7748_s4 + $0x68] sm:$0xff]  ;;  %v572_v45 = vunpack.c.l.s4 %v6348_v44  ;;  %vm659_vm4 = vcmask 123904   ;;  %s345_s0 = sld [smem:[#allocation5]]  ;;  %vm348_vm5 = vcmask 253952  }
  0x14   :  { %5697 = vmatprep.subr.mxu0 %v6346_v1  ;;  %v71_v15 = vrot.slane %v70_v10, 4  ;;  %v80_v16 = vrot.slane %v79_v13, 4  ;;  %v6486_v37 = vld [vmem:[%s7748_s4 + $0x60] sm:$0xff]  ;;  %v46_v49 = vld [vmem:[%s7748_s4 + $0x90] sm:$0x1]  ;;  %v6508_v53 = vsub.s32 0, %v6499_v47 }
  0x15   :  { %5698 = vmatpush3.msra.mxu0 %v29_v9  ;;  %v5417_v38 = vld [vmem:[%s7748_s4 + $0x80] ss:$0 sm:$0xff]  ;;  %v573_v48 = vunpack.c.0.s8 %v572_v45  ;;  %v47_v50 = vld [vmem:[%s7748_s4 + $0x98] sm:$0x1]  ;;  %s5425_s25 = sld [smem:[#allocation5 + $0x80]]  ;;  %vm759_vm6 = vcmask 130048  }
  0x16   :  { %5699 = vmatprep.subr.mxu0 %v6346_v1  ;;  %v72_v18 = vadd.f32 %v71_v15, %v70_v10  ;;  %v81_v19 = vadd.f32 %v80_v16, %v79_v13  ;;  %v243_v52 = vadd.f32 %v47_v50, %v46_v49  ;;  %v6532_v12 = vld [vmem:[%s7748_s4 + $0xa0] ss:$0 sm:$0xff]  ;;  %v6349_v50 = vmov 0   ;;  %s5426_s26 = sld [smem:[#allocation5 + $0x1]] }
  0x17   :  { %5700 = vmatpush3.msra.mxu0 %v28_v14  ;;  %v6511_v54 = vsub.s32 %v573_v48, %v6499_v47  ;;  %6135 = vset.pattern.permute.xlu0 %v6349_v50  ;;  %s5427_s27 = sld [smem:[#allocation5 + $0x81]]  ;;  %vm1101_vm7 = vcmask 254976   ;;  %vm2907_vm8 = vcmask 261126   ;;  %vm1701_vm9 = vcmask 257026  }
  0x18   :  { %v73_v20 = vrot.slane %v72_v18, 2  ;;  %5715 = vmatprep.subr.mxu0 %v39_v17  ;;  %v82_v21 = vrot.slane %v81_v19, 2  ;;  %v247_v57 = vrot.slane %v243_v52, %v6508_v53  ;;  %6134 = vset.pattern.permute.xlu1 %v6349_v50  ;;  %s5428_s28 = sld [smem:[#allocation5 + $0x2]]  ;;  %vm2304_vm10 = vcmask 259076  }
  0x19   :  { %s5429_s29 = sld [smem:[#allocation5 + $0x82]]  ;;  %s346_s7 = scalar_lea.vmem %s7746_s2, %s345_s0 }
  0x1a   :  { %v74_v22 = vadd.f32 %v73_v20, %v72_v18  ;;  %v83_v23 = vadd.f32 %v82_v21, %v81_v19  ;;  %s6614_s8 = sld [smem:[#allocation5 + $0x3]] }
  0x1b   :  { %s351_s11 = scalar_lea.vmem %s7746_s2, %s5425_s25  ;;  %s6619_s12 = sld [smem:[#allocation5 + $0x83]] }
  0x1c   :  { %v75_v24 = vrot.slane %v74_v22, 1  ;;  %v84_v25 = vrot.slane %v83_v23, 1  ;;  %s355_s15 = scalar_lea.vmem %s7746_s2, %s5426_s26  ;;  %s6625_s16 = sld [smem:[#allocation5 + $0x4]] }
  0x1d   :  { %s359_s19 = scalar_lea.vmem %s7746_s2, %s5427_s27  ;;  %s6631_s20 = sld [smem:[#allocation5 + $0x84]] }
  0x1e   :  { %v76_v26 = vadd.f32 %v75_v24, %v74_v22  ;;  %v85_v27 = vadd.f32 %v84_v25, %v83_v23  ;;  %s363_s23 = scalar_lea.vmem %s7746_s2, %s5428_s28  ;;  %s6637_s24 = sld [smem:[#allocation5 + $0x5]] }
  0x1f   :  { %s367_s30 = scalar_lea.vmem %s7746_s2, %s5429_s29  ;;  %s6646_s6 = sld [smem:[#allocation5 + $0x85]] }
  0x20   :  { %v87_v28 = vmul.f32 0.0625, %v76_v26  ;;  %v88_v29 = vmul.f32 0.0625, %v85_v27  ;;  %v636_v27 = vand.u32 127, %v244_v43  ;;  %s371_s9 = scalar_lea.vmem %s7746_s2, %s6614_s8  ;;  %s6653_s10 = sld [smem:[#allocation5 + $0x6]] }
  0x21   :  { %s375_s13 = scalar_lea.vmem %s7746_s2, %s6619_s12  ;;  %s5437_s14 = sld [smem:[#allocation5 + $0x86]] }
  0x22   :  { %v6438_v30 = vsel %vm95_vm2, %v88_v29, %v87_v28  ;;  %v641_v28 = vadd.s32 4294967288, %v636_v27  ;;  %s379_s17 = scalar_lea.vmem %s7746_s2, %s6625_s16  ;;  %s5438_s18 = sld [smem:[#allocation5 + $0x7]] }
  0x23   :  { %5702 = vmatmul.mubr.msk.f32.vlgmr.msra.gmra.mxu0 %vm67_vm0, %v6438_v30  ;;  %s383_s12 = scalar_lea.vmem %s7746_s2, %s6631_s20  ;;  %s5439_s22 = sld [smem:[#allocation5 + $0x87]] }
  0x24   :  { %5716 = vmatpush3.msra.mxu0 %v39_v17  ;;  %5723 = vmatprep.mubr.msk.f32.mxu0 %vm67_vm0, %v6397_v3  ;;  %s387_s16 = scalar_lea.vmem %s7746_s2, %s6637_s24 }
  0x25   :  { %5717 = vmatprep.subr.mxu0 %v38_v31  ;;  %s391_s27 = scalar_lea.vmem %s7746_s2, %s6646_s6  ;;  %s6351_s6 = smov 64  }
  0x26   :  { %5718 = vmatpush3.msra.mxu0 %v38_v31  ;;  %v6545_v31 = vsub.s32 %v641_v28, %v6499_v47  ;;  %v33_v28 = vld [vmem:[%s7748_s4 + $0x28] sm:$0xff]  ;;  %s395_s28 = scalar_lea.vmem %s7746_s2, %s6653_s10 }
  0x27   :  { %5719 = vmatprep.subr.mxu0 %v37_v32 }
  0x28   :  { %5720 = vmatpush3.msra.mxu0 %v37_v32 }
  0x29   :  { %5721 = vmatprep.subr.mxu0 %v36_v33  ;;  %s407_s8 = scalar_lea.vmem %s7746_s2, %s5439_s22 }
  0x2a   :  { %5722 = vmatpush3.msra.mxu0 %v36_v33  ;;  %v6548_v33 = vsub.s32 %v636_v27, %v6499_v47  ;;  %v34_v27 = vld [vmem:[%s7748_s4 + $0x30] sm:$0xff] }
  0x2b   :  { %5724 = vmatmul.mubr.msk.f32.vlgmr.msra.gmra.mxu0 %vm67_vm0, %v6402_v4  ;;  %5740 = vmatprep.subr.mxu0 %v6346_v1 }
  0x2c   :  { %5741 = vmatpush3.msra.mxu0 %v6456_v34  ;;  %5726 = vmatprep.mubr.msk.f32.mxu0 %vm67_vm0, %v6407_v5 }
  0x2d   :  { %5742 = vmatprep.subr.mxu0 %v6346_v1 }
  0x2e   :  { %5743 = vmatpush3.msra.mxu0 %v6464_v35 }
  0x2f   :  { %5727 = vmatmul.mubr.msk.f32.gmra.mxu0 %vm67_vm0, %v6412_v6  ;;  %5744 = vmatprep.subr.mxu0 %v6346_v1 }
  0x30   :  { %5745 = vmatpush3.msra.mxu0 %v6473_v36  ;;  %5748 = vmatprep.mubr.msk.f32.mxu0 %vm6347_vm1, %v6346_v1 }
  0x31   :  { %5746 = vmatprep.subr.mxu0 %v6346_v1 }
  0x32   :  { %5747 = vmatpush3.msra.mxu0 %v6486_v37 }
  0x33   :  { %5765 = vmatprep.subr.mxu0 %v6346_v1 }
  0xe3   :  { %v165_v39 = vpop.f32.mrf.mxu0 }
  0xe4   :  { %v6493_v40 = vadd.f32 %v5417_v38, %v165_v39 }
  0xe5   :  { %v5703_v41 = vpop.f32.mrf.mxu0 }
  0xe6   :  { %5749 = vmatmul.mubr.msk.f32.vlgmr.msra.gmra.mxu0 %vm67_vm0, %v6493_v40 }
  0xe7   :  { %5773 = vmatprep.mubr.msk.f32.mxu0 %vm6347_vm1, %v6346_v1 }
  0xeb   :  { %v5725_v42 = vpop.f32.mrf.mxu0 }
  0xec   :  { %v6516_v62 = vadd.f32 %v5725_v42, %v247_v57 }
  0xed   :  { %v326_v46 = vpop.f32.mrf.mxu0 }
  0xee   :  { %v6518_v63 = vadd.f32 %v326_v46, %v247_v57 }
  0xef   :  { %v5728_v51 = vpop.f32.mrf.mxu0 }
  0xf0   :  { %v6522_v7 = vadd.f32 %v5728_v51, %v247_v57  ;;  %v6559_v51 = vsub.s32 1, %v6499_v47 }
  0xf1   :  { %v336_v55 = vpop.f32.mrf.mxu0 }
  0xf2   :  { %v6524_v8 = vadd.f32 %v336_v55, %v247_v57 }
 0x1a6   :  { %v566_v56 = vpop.f32.mrf.mxu0 }
 0x1a7   :  { %v577_v58 = vrot.slane %v566_v56, %v6511_v54 }
 0x1a8   :  { %v5750_v59 = vpop.f32.mrf.mxu0 }
 0x1a9   :  { %v578_v60 = vcombine.high %v577_v58, %v577_v58  ;;  %v585_v61 = vrot.slane %v577_v58, %v6511_v54 }
 0x1ab   :  { %v592_v0 = vrot.slane %v578_v60, %v6511_v54  ;;  %v596_v2 = vrot.slane %v585_v61, %v6508_v53 }
 0x1ad   :  { %v603_v9 = vadd.f32 %v596_v2, %v6518_v63  ;;  %v600_v10 = vrot.slane %v592_v0, %v6508_v53  ;;  %v604_v11 = vadd.f32 %v596_v2, %v6516_v62 }
 0x1af   :  { %v607_v13 = vmax.f32 %v603_v9, 0.0  ;;  %v605_v14 = vadd.f32 %v600_v10, %v6524_v8  ;;  %v608_v15 = vmax.f32 %v604_v11, 0.0  ;;  %v606_v16 = vadd.f32 %v600_v10, %v6522_v7 }
 0x1b1   :  { %v615_v17 = vmul.f32 %v6532_v12, %v607_v13  ;;  %v609_v18 = vmax.f32 %v605_v14, 0.0  ;;  %v610_v19 = vmax.f32 %v606_v16, 0.0  ;;  %v616_v22 = vmul.f32 %v6532_v12, %v608_v15 }
 0x1b3   :  { %v619_v20 = vsel %vm67_vm0, %v615_v17, 0.0  ;;  %v617_v21 = vmul.f32 %v6532_v12, %v609_v18  ;;  %v618_v24 = vmul.f32 %v6532_v12, %v610_v19  ;;  %v622_v25 = vsel %vm67_vm0, %v616_v22, 0.0 }
 0x1b4   :  { %620 = vadd.xlane.f32.xlu0 %v619_v20 }
 0x1b5   :  { %v625_v23 = vsel %vm67_vm0, %v617_v21, 0.0  ;;  %v628_v26 = vsel %vm67_vm0, %v618_v24, 0.0 }
 0x1b6   :  { %626 = vadd.xlane.f32.xlu1 %v625_v23 }
 0x1b8   :  { %623 = vadd.xlane.f32.xlu0 %v622_v25 }
 0x1ba   :  { %629 = vadd.xlane.f32.xlu1 %v628_v26  ;;  %v35_v26 = vld [vmem:[%s7748_s4 + $0x38] sm:$0xff] }
 0x1bb   :  { %5705 = vmatpush3.msra.mxu1 %v35_v26 }
 0x1bc   :  { %5706 = vmatprep.subr.mxu1 %v6346_v1 }
 0x1bd   :  { %5707 = vmatpush3.msra.mxu1 %v34_v27 }
 0x1be   :  { %5708 = vmatprep.subr.mxu1 %v6346_v1 }
 0x1bf   :  { %5709 = vmatpush3.msra.mxu1 %v33_v28 }
 0x1c0   :  { %5710 = vmatprep.subr.mxu1 %v6346_v1 }
 0x23d   :  { %v621_v29 = vpop.xlane.xlu0 %620 }
 0x23e   :  { %v640_v42 = vrot.slane %v621_v29, %v6548_v33 }
 0x23f   :  { %v627_v32 = vpop.xlane.xlu1 %626 }
 0x240   :  { %v651_v44 = vrot.slane %v627_v32, %v6548_v33 }
 0x241   :  { %v624_v38 = vpop.xlane.xlu0 %623 }
 0x242   :  { %v645_v39 = vrot.slane %v624_v38, %v6545_v31 }
 0x243   :  { %v630_v41 = vpop.xlane.xlu1 %629 }
 0x244   :  { %v655_v43 = vrot.slane %v630_v41, %v6545_v31  ;;  %v647_v45 = vsel %vm646_vm3, %v645_v39, %v640_v42  ;;  %v50_v39 = vld [vmem:[%s7747_s3 + $0x8] sm:$0xff] }
 0x246   :  { %v656_v46 = vsel %vm646_vm3, %v655_v43, %v651_v44  ;;  %v352_v43 = vld [vmem:[%s351_s11] sm:$0x1]  ;;  %s403_s11 = scalar_lea.vmem %s7746_s2, %s5438_s18 }
 0x247   :  { %v657_v48 = vsel %vm95_vm2, %v656_v46, %v647_v45  ;;  %353 = vst.msk [vmem:[#allocation2 + $0x1] sm:$0x1] %vm348_vm5, %v352_v43  ;;  %v356_v45 = vld [vmem:[%s355_s15] sm:$0x1]  ;;  %s6350_s15 = smov 32  }
 0x248   :  { %v660_v49 = vsel %vm659_vm4, %v657_v48, -inf  ;;  %357 = vst.msk [vmem:[#allocation2 + $0x2] sm:$0x1] %vm348_vm5, %v356_v45  ;;  %v360_v46 = vld [vmem:[%s359_s19] sm:$0x1] }
 0x249   :  { %661 = vmax.xlane.f32.xlu0 %v660_v49  ;;  %v49_v48 = vld [vmem:[%s7747_s3] sm:$0xff]  ;;  %361 = vst.msk [vmem:[#allocation2 + $0x3] sm:$0x1] %vm348_vm5, %v360_v46 }
 0x24a   :  { %v364_v49 = vld [vmem:[%s363_s23] sm:$0x1] }
 0x24b   :  { %365 = vst.msk [vmem:[#allocation2 + $0x4] sm:$0x1] %vm348_vm5, %v364_v49 }
 0x2d2   :  { %v662_v52 = vpop.xlane.xlu0 %661 }
 0x2d3   :  { %v667_v55 = vrot.slane %v662_v52, %v6508_v53  ;;  %v671_v56 = vrot.slane %v662_v52, %v6559_v51  ;;  %v368_v52 = vld [vmem:[%s367_s30] sm:$0x1] }
 0x2d4   :  { %369 = vst.msk [vmem:[#allocation2 + $0x5] sm:$0x1] %vm348_vm5, %v368_v52 }
 0x2d5   :  { %v674_v57 = vsub.f32 %v621_v29, %v667_v55  ;;  %v675_v58 = vsub.f32 %v624_v38, %v667_v55  ;;  %v676_v59 = vsub.f32 %v627_v32, %v671_v56  ;;  %v677_v0 = vsub.f32 %v630_v41, %v671_v56  ;;  %v32_v29 = vld [vmem:[%s7748_s4 + $0x20] sm:$0xff]  ;;  %v52_v32 = vld [vmem:[%s7747_s3 + $0x18] sm:$0xff]  ;;  %v51_v38 = vld [vmem:[%s7747_s3 + $0x10] sm:$0xff] }
 0x2d6   :  { %5711 = vmatpush3.msra.mxu1 %v32_v29  ;;  %v372_v56 = vld [vmem:[%s371_s9] sm:$0x1]  ;;  %s399_s9 = scalar_lea.vmem %s7746_s2, %s5437_s14 }
 0x2d7   :  { %v678_v60 = vmul.f32 1.442695, %v674_v57  ;;  %v680_v61 = vmul.f32 1.442695, %v675_v58  ;;  %v682_v2 = vmul.f32 1.442695, %v676_v59  ;;  %5729 = vmatprep.subr.mxu1 %v52_v32  ;;  %5713 = vmatmul.mubr.msk.f32.vlgmr.msra.gmra.mxu1 %vm67_vm0, %v6438_v30 }
 0x2d8   :  { %v684_v9 = vmul.f32 1.442695, %v677_v0  ;;  %5730 = vmatpush3.msra.mxu1 %v52_v32  ;;  %v347_v30 = vld [vmem:[%s346_s7] sm:$0x1]  ;;  %373 = vst.msk [vmem:[#allocation2 + $0x6] sm:$0x1] %vm348_vm5, %v372_v56 }
 0x2d9   :  { %6136 = vpow2.f32 %v678_v60  ;;  %5731 = vmatprep.subr.mxu1 %v51_v38  ;;  %349 = vst.msk [vmem:[#allocation2] sm:$0x1] %vm348_vm5, %v347_v30  ;;  %v376_v57 = vld [vmem:[%s375_s13] sm:$0x1]  ;;  %v6731_v32 = vld [vmem:[%s7747_s3 + $0x58] sm:$0xff] }
 0x2da   :  { %6138 = vpow2.f32 %v680_v61  ;;  %5732 = vmatpush3.msra.mxu1 %v51_v38  ;;  %377 = vst.msk [vmem:[#allocation2 + $0x7] sm:$0x1] %vm348_vm5, %v376_v57  ;;  %v380_v58 = vld [vmem:[%s379_s17] sm:$0x1] }
 0x2db   :  { %6140 = vpow2.f32 %v682_v2  ;;  %5733 = vmatprep.subr.mxu1 %v50_v39  ;;  %381 = vst.msk [vmem:[#allocation2 + $0x8] sm:$0x1] %vm348_vm5, %v380_v58  ;;  %v384_v59 = vld [vmem:[%s383_s12] sm:$0x1] }
 0x2dc   :  { %6142 = vpow2.f32 %v684_v9  ;;  %5734 = vmatpush3.msra.mxu1 %v50_v39  ;;  %385 = vst.msk [vmem:[#allocation2 + $0x9] sm:$0x1] %vm348_vm5, %v384_v59  ;;  %v388_v61 = vld [vmem:[%s387_s16] sm:$0x1]  ;;  %v6747_v39 = vld [vmem:[%s7747_s3 + $0x48] sm:$0xff] }
 0x2dd   :  { %5735 = vmatprep.subr.mxu1 %v49_v48  ;;  %389 = vst.msk [vmem:[#allocation2 + $0xa] sm:$0x1] %vm348_vm5, %v388_v61  ;;  %v392_v2 = vld [vmem:[%s391_s27] sm:$0x1] }
 0x2de   :  { %5736 = vmatpush3.msra.mxu1 %v49_v48  ;;  %393 = vst.msk [vmem:[#allocation2 + $0xb] sm:$0x1] %vm348_vm5, %v392_v2  ;;  %v396_v9 = vld [vmem:[%s395_s28] sm:$0x1] }
 0x2df   :  { %5751 = vmatprep.subr.mxu1 %v6346_v1  ;;  %397 = vst.msk [vmem:[#allocation2 + $0xc] sm:$0x1] %vm348_vm5, %v396_v9 }
 0x2e6   :  { %v6563_v10 = vpop.eup %6136 }
 0x2e7   :  { %v6565_v47 = vpop.eup %6138  ;;  %691 = vperm.xlu1 %6134, %v6563_v10  }
 0x2e8   :  { %694 = vperm.xlu0 %6135, %v6565_v47   ;;  %v6569_v11 = vpop.eup %6140 }
 0x2e9   :  { %v6572_v13 = vpop.eup %6142 }
 0x2eb   :  { %697 = vperm.xlu1 %6134, %v6569_v11  }
 0x2ef   :  { %700 = vperm.xlu1 %6134, %v6572_v13  }
 0x362   :  { %v692_v14 = vpop.permute.xlu1 %691 }
 0x363   :  { %v695_v15 = vpop.permute.xlu0 %694  ;;  %v705_v18 = vrot.slane %v692_v14, %v6548_v33  ;;  %v404_v14 = vld [vmem:[%s403_s11] sm:$0x1] }
 0x364   :  { %v709_v17 = vrot.slane %v695_v15, %v6545_v31  ;;  %v410_v15 = vld [vmem:[#allocation2] sm:$0xff]  ;;  %405 = vst.msk [vmem:[#allocation2 + $0xe] sm:$0x1] %vm348_vm5, %v404_v14 }
 0x365   :  { %5737 = vmatprep.mubr.msk.f32.mxu1 %vm67_vm0, %v410_v15 }
 0x366   :  { %v698_v16 = vpop.permute.xlu1 %697  ;;  %v710_v22 = vsel %vm646_vm3, %v709_v17, %v705_v18  ;;  %v5419_v18 = vld [vmem:[%s7748_s4 + $0x88] ss:$0 sm:$0xff] }
 0x367   :  { %v714_v20 = vrot.slane %v698_v16, %v6548_v33  ;;  %v408_v16 = vld [vmem:[%s407_s8] sm:$0x1] }
 0x368   :  { %409 = vst.msk [vmem:[#allocation2 + $0xf] sm:$0x1] %vm348_vm5, %v408_v16 }
 0x36a   :  { %v701_v19 = vpop.permute.xlu1 %700 }
 0x36b   :  { %v718_v21 = vrot.slane %v701_v19, %v6545_v31 }
 0x36d   :  { %v719_v23 = vsel %vm646_vm3, %v718_v21, %v714_v20 }
 0x36e   :  { %v720_v24 = vsel %vm95_vm2, %v719_v23, %v710_v22 }
 0x36f   :  { %v722_v25 = vsel %vm659_vm4, %v720_v24, 0.0 }
 0x370   :  { %723 = vadd.xlane.f32.xlu1 %v722_v25 }
 0x3f9   :  { %v724_v41 = vpop.xlane.xlu1 %723 }
 0x3fa   :  { %v729_v42 = vrot.slane %v724_v41, %v6508_v53  ;;  %v733_v44 = vrot.slane %v724_v41, %v6559_v51  ;;  %v6754_v41 = vld [vmem:[%s7747_s3 + $0x40] sm:$0xff] }
 0x3fc   :  { %6144 = vrcp.f32 %v729_v42  ;;  %v6771_v42 = vld [vmem:[%s7747_s3 + $0x38] sm:$0xff] }
 0x3fd   :  { %6146 = vrcp.f32 %v733_v44  ;;  %5766 = vmatpush3.msra.mxu0 %v6771_v42  ;;  %v6793_v44 = vld [vmem:[%s7747_s3 + $0x20] sm:$0xff] }
 0x3fe   :  { %5767 = vmatprep.subr.mxu0 %v6346_v1 }
 0x409   :  { %v6145_v50 = vpop.eup %6144 }
 0x40a   :  { %v737_v55 = vmul.f32 %v6145_v50, %v6563_v10  ;;  %v738_v60 = vmul.f32 %v6145_v50, %v6565_v47  ;;  %v6147_v0 = vpop.eup %6146  ;;  %v400_v10 = vld [vmem:[%s399_s9] sm:$0x1] }
 0x40b   :  { %v740_v47 = vmul.f32 %v6147_v0, %v6569_v11  ;;  %401 = vst.msk [vmem:[#allocation2 + $0xd] sm:$0x1] %vm348_vm5, %v400_v10  ;;  %v741_v17 = vmul.f32 %v6147_v0, %v6572_v13  ;;  %v239_v13 = vpop.f32.mrf.mxu1 }
 0x40c   :  { %745 = vperm.xlu0 %6135, %v737_v55   ;;  %v240_v19 = vadd.f32 %v5419_v18, %v239_v13 }
 0x40d   :  { %v5714_v20 = vpop.f32.mrf.mxu1 }
 0x410   :  { %748 = vperm.xlu0 %6135, %v738_v60  }
 0x412   :  { %v411_v11 = vld [vmem:[#allocation2 + $0x8] sm:$0xff] }
 0x413   :  { %5738 = vmatmul.mubr.msk.f32.vlgmr.msra.gmra.mxu1 %vm67_vm0, %v411_v11 }
 0x414   :  { %835 = vperm.xlu0 %6135, %v740_v47   ;;  %5752 = vmatpush3.msra.mxu1 %v6402_v4 }
 0x415   :  { %5755 = vmatprep.mubr.msk.f32.mxu1 %vm6347_vm1, %v6346_v1  ;;  %5753 = vmatprep.subr.mxu1 %v6346_v1 }
 0x416   :  { %5754 = vmatpush3.msra.mxu1 %v6397_v3 }
 0x417   :  { %5758 = vmatprep.subr.mxu1 %v6346_v1 }
 0x418   :  { %838 = vperm.xlu0 %6135, %v741_v17  }
 0x41c   :  { %1077 = vrot.lane.b32.xlu0 %v240_v19, %s6350_s15 }
 0x487   :  { %v746_v21 = vpop.permute.xlu0 %745 }
 0x488   :  { %v753_v23 = vrot.slane %v746_v21, %v6548_v33 }
 0x48b   :  { %v749_v22 = vpop.permute.xlu0 %748 }
 0x48c   :  { %v757_v24 = vrot.slane %v749_v22, %v6545_v31 }
 0x48e   :  { %v758_v25 = vsel %vm646_vm3, %v757_v24, %v753_v23 }
 0x48f   :  { %5756 = vmatmul.mubr.msk.f32.vlgmr.msra.gmra.mxu1 %vm759_vm6, %v758_v25  ;;  %v836_v26 = vpop.permute.xlu0 %835 }
 0x490   :  { %5759 = vmatpush3.msra.mxu1 %v6412_v6  ;;  %5762 = vmatprep.mubr.msk.f32.mxu1 %vm6347_vm1, %v6346_v1  ;;  %v843_v28 = vrot.slane %v836_v26, %v6548_v33 }
 0x491   :  { %5760 = vmatprep.subr.mxu1 %v6346_v1 }
 0x492   :  { %5761 = vmatpush3.msra.mxu1 %v6407_v5  ;;  %v6738_v5 = vld [vmem:[%s7747_s3 + $0x50] sm:$0xff] }
 0x493   :  { %v839_v27 = vpop.permute.xlu0 %838  ;;  %5776 = vmatprep.subr.mxu1 %v6346_v1 }
 0x494   :  { %v847_v29 = vrot.slane %v839_v27, %v6545_v31 }
 0x496   :  { %v848_v38 = vsel %vm646_vm3, %v847_v29, %v843_v28 }
 0x497   :  { %5763 = vmatmul.mubr.msk.f32.vlgmr.msra.gmra.mxu1 %vm759_vm6, %v848_v38  ;;  %v1078_v17 = vpop.permute.xlu0 %1077 }
 0x498   :  { %5777 = vmatpush3.msra.mxu1 %v6731_v32  ;;  %5784 = vmatprep.mubr.msk.f32.mxu1 %vm6347_vm1, %v6346_v1 }
 0x499   :  { %5778 = vmatprep.subr.mxu1 %v6346_v1 }
 0x49a   :  { %5779 = vmatpush3.msra.mxu1 %v6738_v5 }
 0x49b   :  { %5780 = vmatprep.subr.mxu1 %v6346_v1 }
 0x49c   :  { %5781 = vmatpush3.msra.mxu1 %v6747_v39 }
 0x49d   :  { %5782 = vmatprep.subr.mxu1 %v6346_v1 }
 0x49e   :  { %5783 = vmatpush3.msra.mxu1 %v6754_v41 }
 0x49f   :  { %5785 = vmatmul.mubr.msk.f32.vlgmr.msra.gmra.mxu1 %vm67_vm0, %v6493_v40  ;;  %5798 = vmatprep.subr.mxu1 %v6346_v1  ;;  %v6776_v40 = vld [vmem:[%s7747_s3 + $0x30] sm:$0xff] }
 0x4a0   :  { %5799 = vmatpush3.msra.mxu1 %v6402_v4  ;;  %5802 = vmatprep.mubr.msk.f32.mxu1 %vm6347_vm1, %v6346_v1  ;;  %v6788_v4 = vld [vmem:[%s7747_s3 + $0x28] sm:$0xff] }
 0x4a1   :  { %5800 = vmatprep.subr.mxu1 %v6346_v1  ;;  %5768 = vmatpush3.msra.mxu0 %v6776_v40 }
 0x4a2   :  { %5801 = vmatpush3.msra.mxu1 %v6397_v3  ;;  %5769 = vmatprep.subr.mxu0 %v6346_v1  ;;  %v5440_v3 = vld [vmem:[%s7747_s3 + $0x80] ss:$0 sm:$0xff] }
 0x4a3   :  { %5805 = vmatprep.subr.mxu1 %v6346_v1  ;;  %5770 = vmatpush3.msra.mxu0 %v6788_v4 }
 0x4a4   :  { %5771 = vmatprep.subr.mxu0 %v6346_v1 }
 0x4a5   :  { %5772 = vmatpush3.msra.mxu0 %v6793_v44 }
 0x4a6   :  { %5787 = vmatprep.subr.mxu0 %v6346_v1 }
 0x4d3   :  { %v5739_v30 = vpop.f32.mrf.mxu1 }
 0x4d4   :  { %v6797_v43 = vadd.f32 %v5739_v30, %v5440_v3 }
 0x4d5   :  { %v488_v45 = vpop.f32.mrf.mxu1 }
 0x4d6   :  { %v6813_v58 = vadd.f32 %v5440_v3, %v488_v45 }
 0x54f   :  { %v828_v46 = vpop.f32.mrf.mxu1 }
 0x551   :  { %v5757_v48 = vpop.f32.mrf.mxu1 }
 0x557   :  { %v917_v49 = vpop.f32.mrf.mxu1 }
 0x558   :  { %v923_v50 = vrot.slane %v917_v49, 7 }
 0x559   :  { %v5764_v52 = vpop.f32.mrf.mxu1 }
 0x55a   :  { %v924_v55 = vsel %vm95_vm2, %v923_v50, %v828_v46 }
 0x55b   :  { %5774 = vmatmul.mubr.msk.f32.vlgmr.msra.gmra.mxu0 %vm67_vm0, %v924_v55 }
 0x55c   :  { %5788 = vmatpush3.msra.mxu0 %v6456_v34  ;;  %5795 = vmatprep.mubr.msk.f32.mxu0 %vm6347_vm1, %v6346_v1 }
 0x55d   :  { %5789 = vmatprep.subr.mxu0 %v6346_v1 }
 0x55e   :  { %5790 = vmatpush3.msra.mxu0 %v6464_v35 }
 0x55f   :  { %v1064_v56 = vpop.f32.mrf.mxu1  ;;  %5791 = vmatprep.subr.mxu0 %v6346_v1 }
 0x560   :  { %5792 = vmatpush3.msra.mxu0 %v6473_v36 }
 0x561   :  { %v5786_v57 = vpop.f32.mrf.mxu1  ;;  %5793 = vmatprep.subr.mxu0 %v6346_v1 }
 0x562   :  { %5794 = vmatpush3.msra.mxu0 %v6486_v37 }
 0x563   :  { %5812 = vmatprep.subr.mxu0 %v6346_v1 }
 0x61b   :  { %v993_v59 = vpop.f32.mrf.mxu0 }
 0x61c   :  { %v997_v60 = vadd.f32 %v993_v59, %v6813_v58 }
 0x61d   :  { %v5775_v61 = vpop.f32.mrf.mxu0 }
 0x61e   :  { %v1068_v0 = vadd.f32 %v1064_v56, %v997_v60 }
 0x620   :  { %6148 = vtanh.f32 %v1068_v0  ;;  %v5449_v9 = vmul.f32 -1.442695, %v1068_v0 }
 0x622   :  { %6150 = vpow2.f32 %v5449_v9 }
 0x62d   :  { %v6149_v2 = vpop.eup %6148 }
 0x62e   :  { %1082 = vrot.lane.b32.xlu1 %v6149_v2, %s6351_s6 }
 0x62f   :  { %v6151_v10 = vpop.eup %6150 }
 0x630   :  { %v1072_v47 = vadd.f32 1.0, %v6151_v10 }
 0x632   :  { %6152 = vrcp.f32 %v1072_v47 }
 0x63f   :  { %v6153_v14 = vpop.eup %6152 }
 0x640   :  { %v1080_v11 = vmul.f32 %v6153_v14, %v1078_v17 }
 0x6a0   :  { %v1083_v15 = vpop.permute.xlu1 %1082 }
 0x6a1   :  { %v1085_v16 = vmul.f32 %v6153_v14, %v1083_v15 }
 0x6a3   :  { %1087 = vrot.lane.b32.xlu0 %v1085_v16, %s6350_s15 }
 0x715   :  { %v1088_v18 = vpop.permute.xlu0 %1087 }
 0x716   :  { %v6818_v13 = vadd.f32 %v1088_v18, %v1080_v11 }
 0x718   :  { %6154 = vtanh.f32 %v6818_v13 }
 0x725   :  { %v6155_v19 = vpop.eup %6154 }
 0x726   :  { %1093 = vrot.lane.b32.xlu0 %v6155_v19, %s6351_s6 }
 0x798   :  { %v1094_v20 = vpop.permute.xlu0 %1093 }
 0x799   :  { %v1096_v21 = vmul.f32 %v6153_v14, %v1094_v20 }
 0x79b   :  { %1098 = vrot.lane.b32.xlu0 %v1096_v21, %s6350_s15 }
 0x80d   :  { %v6823_v22 = vpop.permute.xlu0 %1098 }
 0x80e   :  { %5796 = vmatmul.mubr.msk.f32.vlgmr.msra.gmra.mxu0 %vm67_vm0, %v6823_v22  ;;  %1102 = vst.msk [vmem:[#allocation3] sm:$0x3] %vm1101_vm7, %v6823_v22 }
 0x80f   :  { %5813 = vmatpush3.msra.mxu0 %v6771_v42  ;;  %5820 = vmatprep.mubr.msk.f32.mxu0 %vm6347_vm1, %v6346_v1 }
 0x810   :  { %5814 = vmatprep.subr.mxu0 %v6346_v1 }
 0x811   :  { %5815 = vmatpush3.msra.mxu0 %v6776_v40 }
 0x812   :  { %5816 = vmatprep.subr.mxu0 %v6346_v1 }
 0x813   :  { %5817 = vmatpush3.msra.mxu0 %v6788_v4 }
 0x814   :  { %5818 = vmatprep.subr.mxu0 %v6346_v1 }
 0x815   :  { %5819 = vmatpush3.msra.mxu0 %v6793_v44 }
 0x816   :  { %5834 = vmatprep.subr.mxu0 %v6346_v1 }
 0x8ce   :  { %v1171_v23 = vpop.f32.mrf.mxu0 }
 0x8cf   :  { %v1182_v24 = vrot.slane %v1171_v23, %v6511_v54 }
 0x8d0   :  { %v5797_v25 = vpop.f32.mrf.mxu0 }
 0x8d1   :  { %v1183_v26 = vcombine.high %v1182_v24, %v1182_v24  ;;  %v1190_v27 = vrot.slane %v1182_v24, %v6511_v54 }
 0x8d3   :  { %v1197_v28 = vrot.slane %v1183_v26, %v6511_v54  ;;  %v1201_v29 = vrot.slane %v1190_v27, %v6508_v53 }
 0x8d5   :  { %v1205_v38 = vrot.slane %v1197_v28, %v6508_v53  ;;  %v1209_v3 = vadd.f32 %v1201_v29, %v6516_v62  ;;  %v1208_v30 = vadd.f32 %v1201_v29, %v6518_v63 }
 0x8d7   :  { %v1213_v45 = vmax.f32 %v1209_v3, 0.0  ;;  %v1212_v46 = vmax.f32 %v1208_v30, 0.0  ;;  %v1211_v48 = vadd.f32 %v1205_v38, %v6522_v7  ;;  %v1210_v49 = vadd.f32 %v1205_v38, %v6524_v8 }
 0x8d9   :  { %v1217_v50 = vmul.f32 %v6532_v12, %v1213_v45  ;;  %v1216_v52 = vmul.f32 %v6532_v12, %v1212_v46  ;;  %v1215_v55 = vmax.f32 %v1211_v48, 0.0  ;;  %v1214_v56 = vmax.f32 %v1210_v49, 0.0 }
 0x8db   :  { %v1223_v57 = vsel %vm67_vm0, %v1217_v50, 0.0  ;;  %v1220_v59 = vsel %vm67_vm0, %v1216_v52, 0.0  ;;  %v1219_v60 = vmul.f32 %v6532_v12, %v1215_v55  ;;  %v1218_v61 = vmul.f32 %v6532_v12, %v1214_v56 }
 0x8dc   :  { %1224 = vadd.xlane.f32.xlu0 %v1223_v57  ;;  %1221 = vadd.xlane.f32.xlu1 %v1220_v59 }
 0x8dd   :  { %v1229_v0 = vsel %vm67_vm0, %v1219_v60, 0.0  ;;  %v1226_v2 = vsel %vm67_vm0, %v1218_v61, 0.0 }
 0x8e0   :  { %1230 = vadd.xlane.f32.xlu1 %v1229_v0  ;;  %1227 = vadd.xlane.f32.xlu0 %v1226_v2 }
 0x965   :  { %v1225_v9 = vpop.xlane.xlu0 %1224  ;;  %v1222_v10 = vpop.xlane.xlu1 %1221 }
 0x966   :  { %v1243_v47 = vrot.slane %v1225_v9, %v6545_v31  ;;  %v1239_v14 = vrot.slane %v1222_v10, %v6548_v33 }
 0x968   :  { %v1244_v18 = vsel %vm646_vm3, %v1243_v47, %v1239_v14 }
 0x969   :  { %v1231_v15 = vpop.xlane.xlu1 %1230  ;;  %v1228_v16 = vpop.xlane.xlu0 %1227 }
 0x96a   :  { %v1252_v17 = vrot.slane %v1231_v15, %v6545_v31  ;;  %v1248_v11 = vrot.slane %v1228_v16, %v6548_v33 }
 0x96c   :  { %v1253_v19 = vsel %vm646_vm3, %v1252_v17, %v1248_v11 }
 0x96d   :  { %v1254_v20 = vsel %vm95_vm2, %v1253_v19, %v1244_v18 }
 0x96e   :  { %v1256_v21 = vsel %vm659_vm4, %v1254_v20, -inf }
 0x96f   :  { %1257 = vmax.xlane.f32.xlu0 %v1256_v21 }
 0x9f8   :  { %v1258_v23 = vpop.xlane.xlu0 %1257 }
 0x9f9   :  { %v1263_v24 = vrot.slane %v1258_v23, %v6508_v53  ;;  %v1267_v25 = vrot.slane %v1258_v23, %v6559_v51 }
 0x9fb   :  { %v1270_v26 = vsub.f32 %v1222_v10, %v1263_v24  ;;  %v1271_v27 = vsub.f32 %v1225_v9, %v1263_v24  ;;  %v1272_v28 = vsub.f32 %v1228_v16, %v1267_v25  ;;  %v1273_v3 = vsub.f32 %v1231_v15, %v1267_v25 }
 0x9fd   :  { %v1274_v29 = vmul.f32 1.442695, %v1270_v26  ;;  %v1276_v38 = vmul.f32 1.442695, %v1271_v27  ;;  %v1278_v30 = vmul.f32 1.442695, %v1272_v28 }
 0x9fe   :  { %v1280_v45 = vmul.f32 1.442695, %v1273_v3 }
 0x9ff   :  { %6156 = vpow2.f32 %v1274_v29  ;;  %v6887_v29 = vld [vmem:[%s7745_s1 + $0x10] sm:$0xff] }
 0xa00   :  { %6158 = vpow2.f32 %v1276_v38 }
 0xa01   :  { %6160 = vpow2.f32 %v1278_v30 }
 0xa02   :  { %6162 = vpow2.f32 %v1280_v45  ;;  %v6910_v45 = vld [vmem:[%s7745_s1 + $0x8] sm:$0xff] }
 0xa0c   :  { %v6157_v46 = vpop.eup %6156 }
 0xa0d   :  { %v6159_v48 = vpop.eup %6158  ;;  %1287 = vperm.xlu1 %6134, %v6157_v46  }
 0xa0e   :  { %1290 = vperm.xlu0 %6135, %v6159_v48   ;;  %v6161_v49 = vpop.eup %6160 }
 0xa0f   :  { %v6163_v50 = vpop.eup %6162 }
 0xa11   :  { %1293 = vperm.xlu1 %6134, %v6161_v49  }
 0xa15   :  { %1296 = vperm.xlu1 %6134, %v6163_v50  }
 0xa88   :  { %v1288_v52 = vpop.permute.xlu1 %1287 }
 0xa89   :  { %v1291_v55 = vpop.permute.xlu0 %1290  ;;  %v1301_v59 = vrot.slane %v1288_v52, %v6548_v33 }
 0xa8a   :  { %v1305_v57 = vrot.slane %v1291_v55, %v6545_v31 }
 0xa8c   :  { %v1294_v56 = vpop.permute.xlu1 %1293  ;;  %v1306_v2 = vsel %vm646_vm3, %v1305_v57, %v1301_v59 }
 0xa8d   :  { %v1310_v61 = vrot.slane %v1294_v56, %v6548_v33 }
 0xa90   :  { %v1297_v60 = vpop.permute.xlu1 %1296 }
 0xa91   :  { %v1314_v0 = vrot.slane %v1297_v60, %v6545_v31 }
 0xa93   :  { %v1315_v9 = vsel %vm646_vm3, %v1314_v0, %v1310_v61 }
 0xa94   :  { %v1316_v10 = vsel %vm95_vm2, %v1315_v9, %v1306_v2 }
 0xa95   :  { %v1318_v47 = vsel %vm659_vm4, %v1316_v10, 0.0 }
 0xa96   :  { %1319 = vadd.xlane.f32.xlu0 %v1318_v47 }
 0xb1f   :  { %v1320_v14 = vpop.xlane.xlu0 %1319 }
 0xb20   :  { %v1325_v15 = vrot.slane %v1320_v14, %v6508_v53  ;;  %v1329_v16 = vrot.slane %v1320_v14, %v6559_v51 }
 0xb22   :  { %6164 = vrcp.f32 %v1325_v15  ;;  %v1678_v15 = vrot.slane %v6818_v13, 6 }
 0xb23   :  { %6166 = vrcp.f32 %v1329_v16 }
 0xb2f   :  { %v6165_v17 = vpop.eup %6164 }
 0xb30   :  { %v1333_v11 = vmul.f32 %v6165_v17, %v6157_v46  ;;  %v1334_v18 = vmul.f32 %v6165_v17, %v6159_v48  ;;  %v6167_v19 = vpop.eup %6166  ;;  %v6919_v46 = vld [vmem:[%s7745_s1] sm:$0xff] }
 0xb31   :  { %v1336_v20 = vmul.f32 %v6167_v19, %v6161_v49  ;;  %v1337_v21 = vmul.f32 %v6167_v19, %v6163_v50 }
 0xb32   :  { %1341 = vperm.xlu1 %6134, %v1333_v11  }
 0xb36   :  { %1344 = vperm.xlu1 %6134, %v1334_v18  }
 0xb3a   :  { %1430 = vperm.xlu1 %6134, %v1336_v20  }
 0xb3e   :  { %1433 = vperm.xlu1 %6134, %v1337_v21  }
 0xbad   :  { %v1342_v23 = vpop.permute.xlu1 %1341 }
 0xbae   :  { %v1349_v25 = vrot.slane %v1342_v23, %v6548_v33 }
 0xbb1   :  { %v1345_v24 = vpop.permute.xlu1 %1344 }
 0xbb2   :  { %v1353_v26 = vrot.slane %v1345_v24, %v6545_v31 }
 0xbb4   :  { %v1354_v27 = vsel %vm646_vm3, %v1353_v26, %v1349_v25 }
 0xbb5   :  { %5803 = vmatmul.mubr.msk.f32.vlgmr.msra.gmra.mxu1 %vm759_vm6, %v1354_v27  ;;  %v1431_v28 = vpop.permute.xlu1 %1430 }
 0xbb6   :  { %5806 = vmatpush3.msra.mxu1 %v6412_v6  ;;  %5809 = vmatprep.mubr.msk.f32.mxu1 %vm6347_vm1, %v6346_v1  ;;  %v1438_v3 = vrot.slane %v1431_v28, %v6548_v33 }
 0xbb7   :  { %5807 = vmatprep.subr.mxu1 %v6346_v1 }
 0xbb8   :  { %5808 = vmatpush3.msra.mxu1 %v6887_v29 }
 0xbb9   :  { %v1434_v38 = vpop.permute.xlu1 %1433  ;;  %5823 = vmatprep.subr.mxu1 %v6346_v1 }
 0xbba   :  { %v1442_v30 = vrot.slane %v1434_v38, %v6545_v31 }
 0xbbc   :  { %v1443_v6 = vsel %vm646_vm3, %v1442_v30, %v1438_v3 }
 0xbbd   :  { %5810 = vmatmul.mubr.msk.f32.vlgmr.msra.gmra.mxu1 %vm759_vm6, %v1443_v6 }
 0xbbe   :  { %5824 = vmatpush3.msra.mxu1 %v6731_v32  ;;  %5831 = vmatprep.mubr.msk.f32.mxu1 %vm6347_vm1, %v6346_v1 }
 0xbbf   :  { %5825 = vmatprep.subr.mxu1 %v6346_v1 }
 0xbc0   :  { %5826 = vmatpush3.msra.mxu1 %v6738_v5 }
 0xbc1   :  { %5827 = vmatprep.subr.mxu1 %v6346_v1 }
 0xbc2   :  { %5828 = vmatpush3.msra.mxu1 %v6747_v39 }
 0xbc3   :  { %5829 = vmatprep.subr.mxu1 %v6346_v1 }
 0xbc4   :  { %5830 = vmatpush3.msra.mxu1 %v6754_v41 }
 0xbc5   :  { %5832 = vmatmul.mubr.msk.f32.vlgmr.msra.gmra.mxu1 %vm67_vm0, %v6823_v22  ;;  %5845 = vmatprep.subr.mxu1 %v6346_v1 }
 0xbc6   :  { %5846 = vmatpush3.msra.mxu1 %v6910_v45  ;;  %5849 = vmatprep.mubr.msk.f32.mxu1 %vm6347_vm1, %v6346_v1 }
 0xbc7   :  { %5847 = vmatprep.subr.mxu1 %v6346_v1 }
 0xbc8   :  { %5848 = vmatpush3.msra.mxu1 %v6919_v46 }
 0xbc9   :  { %5852 = vmatprep.subr.mxu1 %v6346_v1 }
 0xc75   :  { %v1423_v22 = vpop.f32.mrf.mxu1 }
 0xc77   :  { %v5804_v48 = vpop.f32.mrf.mxu1 }
 0xc7d   :  { %v1512_v49 = vpop.f32.mrf.mxu1 }
 0xc7e   :  { %v1518_v50 = vrot.slane %v1512_v49, 7 }
 0xc7f   :  { %v5811_v52 = vpop.f32.mrf.mxu1 }
 0xc80   :  { %v1519_v55 = vsel %vm95_vm2, %v1518_v50, %v1423_v22 }
 0xc81   :  { %5821 = vmatmul.mubr.msk.f32.vlgmr.msra.gmra.mxu0 %vm67_vm0, %v1519_v55 }
 0xc82   :  { %5835 = vmatpush3.msra.mxu0 %v6456_v34  ;;  %5842 = vmatprep.mubr.msk.f32.mxu0 %vm6347_vm1, %v6346_v1 }
 0xc83   :  { %5836 = vmatprep.subr.mxu0 %v6346_v1 }
 0xc84   :  { %5837 = vmatpush3.msra.mxu0 %v6464_v35 }
 0xc85   :  { %v1662_v56 = vpop.f32.mrf.mxu1  ;;  %5838 = vmatprep.subr.mxu0 %v6346_v1 }
 0xc86   :  { %5839 = vmatpush3.msra.mxu0 %v6473_v36  ;;  %v1667_v61 = vrot.slane %v1662_v56, 6 }
 0xc87   :  { %v5833_v57 = vpop.f32.mrf.mxu1  ;;  %5840 = vmatprep.subr.mxu0 %v6346_v1 }
 0xc88   :  { %5841 = vmatpush3.msra.mxu0 %v6486_v37 }
 0xc89   :  { %5859 = vmatprep.subr.mxu0 %v6346_v1 }
 0xd41   :  { %v1588_v34 = vpop.f32.mrf.mxu0 }
 0xd42   :  { %v1593_v59 = vrot.slane %v1588_v34, 6 }
 0xd43   :  { %v5822_v60 = vpop.f32.mrf.mxu0 }
 0xd44   :  { %v1595_v0 = vadd.f32 %v1593_v59, %v6813_v58 }
 0xd46   :  { %v1669_v2 = vadd.f32 %v1667_v61, %v1595_v0  ;;  %v6979_v0 = vld [vmem:[%s7748_s4 + $0xa0] ss:$0 sm:$0xff] }
 0xd48   :  { %6168 = vtanh.f32 %v1669_v2  ;;  %v5455_v9 = vmul.f32 -1.442695, %v1669_v2 }
 0xd4a   :  { %6170 = vpow2.f32 %v5455_v9 }
 0xd55   :  { %v6169_v35 = vpop.eup %6168 }
 0xd56   :  { %1682 = vrot.lane.b32.xlu1 %v6169_v35, %s6351_s6 }
 0xd57   :  { %v6171_v36 = vpop.eup %6170 }
 0xd58   :  { %v1673_v10 = vadd.f32 1.0, %v6171_v36 }
 0xd5a   :  { %6172 = vrcp.f32 %v1673_v10 }
 0xd67   :  { %v6173_v47 = vpop.eup %6172 }
 0xd68   :  { %v1680_v16 = vmul.f32 %v6173_v47, %v1678_v15 }
 0xdc8   :  { %v1683_v37 = vpop.permute.xlu1 %1682 }
 0xdc9   :  { %v1685_v14 = vmul.f32 %v6173_v47, %v1683_v37 }
 0xdcb   :  { %1687 = vrot.lane.b32.xlu1 %v1685_v14, %s6350_s15 }
 0xe3d   :  { %v1688_v17 = vpop.permute.xlu1 %1687 }
 0xe3e   :  { %v6939_v11 = vadd.f32 %v1688_v17, %v1680_v16 }
 0xe40   :  { %6174 = vtanh.f32 %v6939_v11 }
 0xe4d   :  { %v6175_v18 = vpop.eup %6174 }
 0xe4e   :  { %1693 = vrot.lane.b32.xlu1 %v6175_v18, %s6351_s6 }
 0xec0   :  { %v1694_v19 = vpop.permute.xlu1 %1693 }
 0xec1   :  { %v6943_v20 = vmul.f32 %v6173_v47, %v1694_v19 }
 0xec3   :  { %v1703_v21 = vrot.slane %v6943_v20, 2 }
 0xec5   :  { %1704 = vrot.lane.b32.xlu1 %v1703_v21, %s6350_s15 }
 0xf37   :  { %v6947_v23 = vpop.permute.xlu1 %1704 }
 0xf38   :  { %5843 = vmatmul.mubr.msk.f32.vlgmr.msra.gmra.mxu0 %vm67_vm0, %v6947_v23 }
 0xf39   :  { %5860 = vmatpush3.msra.mxu0 %v6771_v42  ;;  %5867 = vmatprep.mubr.msk.f32.mxu0 %vm6347_vm1, %v6346_v1 }
 0xf3a   :  { %5861 = vmatprep.subr.mxu0 %v6346_v1 }
 0xf3b   :  { %5862 = vmatpush3.msra.mxu0 %v6776_v40 }
 0xf3c   :  { %5863 = vmatprep.subr.mxu0 %v6346_v1 }
 0xf3d   :  { %5864 = vmatpush3.msra.mxu0 %v6788_v4 }
 0xf3e   :  { %5865 = vmatprep.subr.mxu0 %v6346_v1 }
 0xf3f   :  { %5866 = vmatpush3.msra.mxu0 %v6793_v44 }
 0xf40   :  { %5881 = vmatprep.subr.mxu0 %v6346_v1 }
 0xff8   :  { %v1774_v13 = vpop.f32.mrf.mxu0 }
 0xff9   :  { %v1785_v24 = vrot.slane %v1774_v13, %v6511_v54 }
 0xffa   :  { %v5844_v25 = vpop.f32.mrf.mxu0 }
 0xffb   :  { %v1786_v26 = vcombine.high %v1785_v24, %v1785_v24  ;;  %v1793_v27 = vrot.slane %v1785_v24, %v6511_v54 }
 0xffd   :  { %v1800_v28 = vrot.slane %v1786_v26, %v6511_v54  ;;  %v1804_v38 = vrot.slane %v1793_v27, %v6508_v53 }
 0xfff   :  { %v1808_v3 = vrot.slane %v1800_v28, %v6508_v53  ;;  %v1812_v30 = vadd.f32 %v1804_v38, %v6516_v62  ;;  %v1811_v6 = vadd.f32 %v1804_v38, %v6518_v63 }
0x1001   :  { %v1816_v22 = vmax.f32 %v1812_v30, 0.0  ;;  %v1815_v48 = vmax.f32 %v1811_v6, 0.0  ;;  %v1813_v49 = vadd.f32 %v1808_v3, %v6524_v8  ;;  %v1814_v50 = vadd.f32 %v1808_v3, %v6522_v7 }
0x1003   :  { %v1820_v52 = vmul.f32 %v6532_v12, %v1816_v22  ;;  %v1819_v55 = vmul.f32 %v6532_v12, %v1815_v48  ;;  %v1817_v56 = vmax.f32 %v1813_v49, 0.0  ;;  %v1818_v60 = vmax.f32 %v1814_v50, 0.0 }
0x1005   :  { %v1826_v57 = vsel %vm67_vm0, %v1820_v52, 0.0  ;;  %v1823_v34 = vsel %vm67_vm0, %v1819_v55, 0.0  ;;  %v1821_v59 = vmul.f32 %v6532_v12, %v1817_v56  ;;  %v1822_v2 = vmul.f32 %v6979_v0, %v1818_v60 }
0x1006   :  { %1827 = vadd.xlane.f32.xlu1 %v1826_v57  ;;  %1824 = vadd.xlane.f32.xlu0 %v1823_v34 }
0x1007   :  { %v1829_v61 = vsel %vm67_vm0, %v1821_v59, 0.0  ;;  %v1832_v35 = vsel %vm67_vm0, %v1822_v2, 0.0 }
0x100a   :  { %1830 = vadd.xlane.f32.xlu0 %v1829_v61 }
0x100e   :  { %1833 = vadd.xlane.f32.xlu0 %v1832_v35 }
0x108f   :  { %v1825_v9 = vpop.xlane.xlu0 %1824  ;;  %v1828_v36 = vpop.xlane.xlu1 %1827 }
0x1090   :  { %v1846_v12 = vrot.slane %v1828_v36, %v6545_v31  ;;  %v1842_v47 = vrot.slane %v1825_v9, %v6548_v33 }
0x1092   :  { %v1847_v16 = vsel %vm646_vm3, %v1846_v12, %v1842_v47 }
0x1093   :  { %v1831_v10 = vpop.xlane.xlu0 %1830 }
0x1094   :  { %v1851_v14 = vrot.slane %v1831_v10, %v6548_v33 }
0x1097   :  { %v1834_v37 = vpop.xlane.xlu0 %1833 }
0x1098   :  { %v1855_v15 = vrot.slane %v1834_v37, %v6545_v31 }
0x109a   :  { %v1856_v17 = vsel %vm646_vm3, %v1855_v15, %v1851_v14 }
0x109b   :  { %v1857_v18 = vsel %vm95_vm2, %v1856_v17, %v1847_v16 }
0x109c   :  { %v1859_v19 = vsel %vm659_vm4, %v1857_v18, -inf }
0x109d   :  { %1860 = vmax.xlane.f32.xlu0 %v1859_v19 }
0x1126   :  { %v1861_v21 = vpop.xlane.xlu0 %1860 }
0x1127   :  { %v1866_v13 = vrot.slane %v1861_v21, %v6508_v53  ;;  %v1870_v24 = vrot.slane %v1861_v21, %v6559_v51 }
0x1129   :  { %v1873_v25 = vsub.f32 %v1825_v9, %v1866_v13  ;;  %v1874_v26 = vsub.f32 %v1828_v36, %v1866_v13  ;;  %v1875_v27 = vsub.f32 %v1831_v10, %v1870_v24  ;;  %v1876_v3 = vsub.f32 %v1834_v37, %v1870_v24 }
0x112b   :  { %v1877_v28 = vmul.f32 1.442695, %v1873_v25  ;;  %v1881_v38 = vmul.f32 1.442695, %v1875_v27  ;;  %v1879_v30 = vmul.f32 1.442695, %v1874_v26 }
0x112c   :  { %v1883_v6 = vmul.f32 1.442695, %v1876_v3  ;;  %v7010_v27 = vld [vmem:[%s7745_s1 + $0x18] sm:$0xff] }
0x112d   :  { %6176 = vpow2.f32 %v1877_v28 }
0x112e   :  { %6178 = vpow2.f32 %v1881_v38 }
0x112f   :  { %6180 = vpow2.f32 %v1879_v30 }
0x1130   :  { %6182 = vpow2.f32 %v1883_v6 }
0x113a   :  { %v6177_v22 = vpop.eup %6176 }
0x113b   :  { %1890 = vperm.xlu0 %6135, %v6177_v22   ;;  %v6179_v48 = vpop.eup %6178 }
0x113c   :  { %1896 = vperm.xlu1 %6134, %v6179_v48   ;;  %v6181_v49 = vpop.eup %6180 }
0x113d   :  { %v6183_v50 = vpop.eup %6182 }
0x113f   :  { %1893 = vperm.xlu0 %6135, %v6181_v49  }
0x1143   :  { %1899 = vperm.xlu0 %6135, %v6183_v50  }
0x11b6   :  { %v1891_v52 = vpop.permute.xlu0 %1890 }
0x11b7   :  { %v1897_v56 = vpop.permute.xlu1 %1896  ;;  %v1904_v60 = vrot.slane %v1891_v52, %v6548_v33 }
0x11b8   :  { %v1913_v59 = vrot.slane %v1897_v56, %v6548_v33 }
0x11ba   :  { %v1894_v55 = vpop.permute.xlu0 %1893 }
0x11bb   :  { %v1908_v57 = vrot.slane %v1894_v55, %v6545_v31  ;;  %v7068_v55 = vld [vmem:[%s7748_s4 + $0x60] sm:$0xff] }
0x11bd   :  { %v1909_v2 = vsel %vm646_vm3, %v1908_v57, %v1904_v60 }
0x11be   :  { %v1900_v34 = vpop.permute.xlu0 %1899 }
0x11bf   :  { %v1917_v61 = vrot.slane %v1900_v34, %v6545_v31 }
0x11c1   :  { %v1918_v35 = vsel %vm646_vm3, %v1917_v61, %v1913_v59 }
0x11c2   :  { %v1919_v9 = vsel %vm95_vm2, %v1918_v35, %v1909_v2 }
0x11c3   :  { %v1921_v36 = vsel %vm659_vm4, %v1919_v9, 0.0 }
0x11c4   :  { %1922 = vadd.xlane.f32.xlu0 %v1921_v36 }
0x124d   :  { %v1923_v10 = vpop.xlane.xlu0 %1922 }
0x124e   :  { %v1928_v12 = vrot.slane %v1923_v10, %v6508_v53  ;;  %v1932_v47 = vrot.slane %v1923_v10, %v6559_v51 }
0x1250   :  { %6184 = vrcp.f32 %v1928_v12 }
0x1251   :  { %6186 = vrcp.f32 %v1932_v47 }
0x125d   :  { %v6185_v37 = vpop.eup %6184 }
0x125e   :  { %v1936_v14 = vmul.f32 %v6185_v37, %v6177_v22  ;;  %v1937_v15 = vmul.f32 %v6185_v37, %v6181_v49  ;;  %v6187_v16 = vpop.eup %6186  ;;  %v7045_v22 = vld [vmem:[%s7748_s4 + $0x78] sm:$0xff]  ;;  %v2281_v37 = vrot.slane %v6939_v11, 6 }
0x125f   :  { %v1939_v17 = vmul.f32 %v6187_v16, %v6179_v48  ;;  %v1940_v18 = vmul.f32 %v6187_v16, %v6183_v50  ;;  %v7054_v48 = vld [vmem:[%s7748_s4 + $0x70] sm:$0xff]  ;;  %v7061_v50 = vld [vmem:[%s7748_s4 + $0x68] sm:$0xff] }
0x1260   :  { %1944 = vperm.xlu1 %6134, %v1936_v14  }
0x1264   :  { %1947 = vperm.xlu1 %6134, %v1937_v15  }
0x1268   :  { %2033 = vperm.xlu1 %6134, %v1939_v17  }
0x126c   :  { %2036 = vperm.xlu1 %6134, %v1940_v18  }
0x12db   :  { %v1945_v19 = vpop.permute.xlu1 %1944 }
0x12dc   :  { %v1952_v13 = vrot.slane %v1945_v19, %v6548_v33 }
0x12df   :  { %v1948_v21 = vpop.permute.xlu1 %1947 }
0x12e0   :  { %v1956_v24 = vrot.slane %v1948_v21, %v6545_v31 }
0x12e2   :  { %v1957_v25 = vsel %vm646_vm3, %v1956_v24, %v1952_v13 }
0x12e3   :  { %5850 = vmatmul.mubr.msk.f32.vlgmr.msra.gmra.mxu1 %vm759_vm6, %v1957_v25  ;;  %v2034_v26 = vpop.permute.xlu1 %2033 }
0x12e4   :  { %5853 = vmatpush3.msra.mxu1 %v7010_v27  ;;  %5856 = vmatprep.mubr.msk.f32.mxu1 %vm6347_vm1, %v6346_v1  ;;  %v2041_v38 = vrot.slane %v2034_v26, %v6548_v33 }
0x12e5   :  { %5854 = vmatprep.subr.mxu1 %v6346_v1 }
0x12e6   :  { %5855 = vmatpush3.msra.mxu1 %v6887_v29 }
0x12e7   :  { %v2037_v28 = vpop.permute.xlu1 %2036  ;;  %5870 = vmatprep.subr.mxu1 %v6346_v1 }
0x12e8   :  { %v2045_v3 = vrot.slane %v2037_v28, %v6545_v31 }
0x12ea   :  { %v2046_v30 = vsel %vm646_vm3, %v2045_v3, %v2041_v38 }
0x12eb   :  { %5857 = vmatmul.mubr.msk.f32.vlgmr.msra.gmra.mxu1 %vm759_vm6, %v2046_v30 }
0x12ec   :  { %5871 = vmatpush3.msra.mxu1 %v6731_v32  ;;  %5878 = vmatprep.mubr.msk.f32.mxu1 %vm6347_vm1, %v6346_v1 }
0x12ed   :  { %5872 = vmatprep.subr.mxu1 %v6346_v1 }
0x12ee   :  { %5873 = vmatpush3.msra.mxu1 %v6738_v5 }
0x12ef   :  { %5874 = vmatprep.subr.mxu1 %v6346_v1 }
0x12f0   :  { %5875 = vmatpush3.msra.mxu1 %v6747_v39 }
0x12f1   :  { %5876 = vmatprep.subr.mxu1 %v6346_v1 }
0x12f2   :  { %5877 = vmatpush3.msra.mxu1 %v6754_v41 }
0x12f3   :  { %5879 = vmatmul.mubr.msk.f32.vlgmr.msra.gmra.mxu1 %vm67_vm0, %v6947_v23  ;;  %5892 = vmatprep.subr.mxu1 %v6346_v1 }
0x12f4   :  { %5893 = vmatpush3.msra.mxu1 %v6910_v45  ;;  %5896 = vmatprep.mubr.msk.f32.mxu1 %vm6347_vm1, %v6346_v1 }
0x12f5   :  { %5894 = vmatprep.subr.mxu1 %v6346_v1 }
0x12f6   :  { %5895 = vmatpush3.msra.mxu1 %v6919_v46 }
0x12f7   :  { %5899 = vmatprep.subr.mxu1 %v6346_v1 }
0x13a3   :  { %v2026_v32 = vpop.f32.mrf.mxu1 }
0x13a5   :  { %v5851_v5 = vpop.f32.mrf.mxu1 }
0x13ab   :  { %v2115_v39 = vpop.f32.mrf.mxu1 }
0x13ac   :  { %v2121_v41 = vrot.slane %v2115_v39, 7 }
0x13ad   :  { %v5858_v6 = vpop.f32.mrf.mxu1 }
0x13ae   :  { %v2122_v23 = vsel %vm95_vm2, %v2121_v41, %v2026_v32 }
0x13af   :  { %5868 = vmatmul.mubr.msk.f32.vlgmr.msra.gmra.mxu0 %vm67_vm0, %v2122_v23 }
0x13b0   :  { %5882 = vmatpush3.msra.mxu0 %v7045_v22  ;;  %5889 = vmatprep.mubr.msk.f32.mxu0 %vm6347_vm1, %v6346_v1 }
0x13b1   :  { %5883 = vmatprep.subr.mxu0 %v6346_v1 }
0x13b2   :  { %5884 = vmatpush3.msra.mxu0 %v7054_v48 }
0x13b3   :  { %v2265_v49 = vpop.f32.mrf.mxu1  ;;  %5885 = vmatprep.subr.mxu0 %v6346_v1 }
0x13b4   :  { %5886 = vmatpush3.msra.mxu0 %v7061_v50  ;;  %v2270_v59 = vrot.slane %v2265_v49, 4 }
0x13b5   :  { %v5880_v52 = vpop.f32.mrf.mxu1  ;;  %5887 = vmatprep.subr.mxu0 %v6346_v1 }
0x13b6   :  { %5888 = vmatpush3.msra.mxu0 %v7068_v55 }
0x13b7   :  { %5906 = vmatprep.subr.mxu0 %v6346_v1 }
0x146f   :  { %v2191_v56 = vpop.f32.mrf.mxu0 }
0x1470   :  { %v2196_v57 = vrot.slane %v2191_v56, 4 }
0x1471   :  { %v5869_v34 = vpop.f32.mrf.mxu0 }
0x1472   :  { %v2198_v60 = vadd.f32 %v2196_v57, %v6813_v58 }
0x1474   :  { %v2272_v61 = vadd.f32 %v2270_v59, %v2198_v60 }
0x1476   :  { %6188 = vtanh.f32 %v2272_v61  ;;  %v5461_v35 = vmul.f32 -1.442695, %v2272_v61 }
0x1478   :  { %6190 = vpow2.f32 %v5461_v35 }
0x1483   :  { %v6189_v2 = vpop.eup %6188 }
0x1484   :  { %2285 = vrot.lane.b32.xlu1 %v6189_v2, %s6351_s6 }
0x1485   :  { %v6191_v9 = vpop.eup %6190 }
0x1486   :  { %v2276_v36 = vadd.f32 1.0, %v6191_v9 }
0x1488   :  { %6192 = vrcp.f32 %v2276_v36 }
0x1495   :  { %v6193_v10 = vpop.eup %6192 }
0x1496   :  { %v2283_v14 = vmul.f32 %v6193_v10, %v2281_v37 }
0x14f6   :  { %v2286_v12 = vpop.permute.xlu1 %2285 }
0x14f7   :  { %v2288_v47 = vmul.f32 %v6193_v10, %v2286_v12 }
0x14f9   :  { %2290 = vrot.lane.b32.xlu1 %v2288_v47, %s6350_s15 }
0x156b   :  { %v2291_v15 = vpop.permute.xlu1 %2290 }
0x156c   :  { %v7076_v16 = vadd.f32 %v2291_v15, %v2283_v14 }
0x156e   :  { %6194 = vtanh.f32 %v7076_v16 }
0x157b   :  { %v6195_v17 = vpop.eup %6194 }
0x157c   :  { %2296 = vrot.lane.b32.xlu0 %v6195_v17, %s6351_s6 }
0x15ee   :  { %v2297_v18 = vpop.permute.xlu0 %2296 }
0x15ef   :  { %v7080_v19 = vmul.f32 %v6193_v10, %v2297_v18 }
0x15f1   :  { %v2306_v21 = vrot.slane %v7080_v19, 4 }
0x15f3   :  { %2307 = vrot.lane.b32.xlu1 %v2306_v21, %s6350_s15 }
0x1665   :  { %v7084_v13 = vpop.permute.xlu1 %2307 }
0x1666   :  { %5890 = vmatmul.mubr.msk.f32.vlgmr.msra.gmra.mxu0 %vm67_vm0, %v7084_v13 }
0x1667   :  { %5907 = vmatpush3.msra.mxu0 %v6771_v42  ;;  %5914 = vmatprep.mubr.msk.f32.mxu0 %vm6347_vm1, %v6346_v1 }
0x1668   :  { %5908 = vmatprep.subr.mxu0 %v6346_v1 }
0x1669   :  { %5909 = vmatpush3.msra.mxu0 %v6776_v40 }
0x166a   :  { %5910 = vmatprep.subr.mxu0 %v6346_v1 }
0x166b   :  { %5911 = vmatpush3.msra.mxu0 %v6788_v4 }
0x166c   :  { %5912 = vmatprep.subr.mxu0 %v6346_v1 }
0x166d   :  { %5913 = vmatpush3.msra.mxu0 %v6793_v44 }
0x166e   :  { %5928 = vmatprep.subr.mxu0 %v6346_v1 }
0x1726   :  { %v2377_v11 = vpop.f32.mrf.mxu0 }
0x1727   :  { %v2388_v42 = vrot.slane %v2377_v11, %v6511_v54 }
0x1728   :  { %v5891_v24 = vpop.f32.mrf.mxu0 }
0x1729   :  { %v2389_v25 = vcombine.high %v2388_v42, %v2388_v42  ;;  %v2396_v26 = vrot.slane %v2388_v42, %v6511_v54 }
0x172b   :  { %v2403_v28 = vrot.slane %v2389_v25, %v6511_v54  ;;  %v2407_v40 = vrot.slane %v2396_v26, %v6508_v53 }
0x172d   :  { %v2411_v38 = vrot.slane %v2403_v28, %v6508_v53  ;;  %v2415_v4 = vadd.f32 %v2407_v40, %v6516_v62  ;;  %v2414_v3 = vadd.f32 %v2407_v40, %v6518_v63 }
0x172f   :  { %v2419_v44 = vmax.f32 %v2415_v4, 0.0  ;;  %v2418_v30 = vmax.f32 %v2414_v3, 0.0  ;;  %v2416_v32 = vadd.f32 %v2411_v38, %v6524_v8  ;;  %v2417_v5 = vadd.f32 %v2411_v38, %v6522_v7 }
0x1731   :  { %v2423_v39 = vmul.f32 %v6979_v0, %v2419_v44  ;;  %v2422_v41 = vmul.f32 %v6979_v0, %v2418_v30  ;;  %v2420_v6 = vmax.f32 %v2416_v32, 0.0  ;;  %v2421_v56 = vmax.f32 %v2417_v5, 0.0 }
0x1733   :  { %v2429_v23 = vsel %vm67_vm0, %v2423_v39, 0.0  ;;  %v2426_v49 = vsel %vm67_vm0, %v2422_v41, 0.0  ;;  %v2424_v52 = vmul.f32 %v6979_v0, %v2420_v6  ;;  %v2425_v34 = vmul.f32 %v6979_v0, %v2421_v56 }
0x1734   :  { %2430 = vadd.xlane.f32.xlu0 %v2429_v23  ;;  %2427 = vadd.xlane.f32.xlu1 %v2426_v49 }
0x1735   :  { %v2432_v57 = vsel %vm67_vm0, %v2424_v52, 0.0  ;;  %v2435_v59 = vsel %vm67_vm0, %v2425_v34, 0.0 }
0x1738   :  { %2433 = vadd.xlane.f32.xlu1 %v2432_v57 }
0x173c   :  { %2436 = vadd.xlane.f32.xlu1 %v2435_v59 }
0x17bd   :  { %v2428_v60 = vpop.xlane.xlu1 %2427  ;;  %v2431_v61 = vpop.xlane.xlu0 %2430 }
0x17be   :  { %v2449_v35 = vrot.slane %v2431_v61, %v6545_v31  ;;  %v2445_v9 = vrot.slane %v2428_v60, %v6548_v33 }
0x17c0   :  { %v2450_v47 = vsel %vm646_vm3, %v2449_v35, %v2445_v9 }
0x17c1   :  { %v2434_v2 = vpop.xlane.xlu1 %2433 }
0x17c2   :  { %v2454_v10 = vrot.slane %v2434_v2, %v6548_v33 }
0x17c5   :  { %v2437_v36 = vpop.xlane.xlu1 %2436 }
0x17c6   :  { %v2458_v12 = vrot.slane %v2437_v36, %v6545_v31 }
0x17c8   :  { %v2459_v37 = vsel %vm646_vm3, %v2458_v12, %v2454_v10 }
0x17c9   :  { %v2460_v14 = vsel %vm95_vm2, %v2459_v37, %v2450_v47 }
0x17ca   :  { %v2462_v15 = vsel %vm659_vm4, %v2460_v14, -inf }
0x17cb   :  { %2463 = vmax.xlane.f32.xlu1 %v2462_v15 }
0x1854   :  { %v2464_v17 = vpop.xlane.xlu1 %2463 }
0x1855   :  { %v2469_v18 = vrot.slane %v2464_v17, %v6508_v53  ;;  %v2473_v21 = vrot.slane %v2464_v17, %v6559_v51 }
0x1857   :  { %v2476_v11 = vsub.f32 %v2428_v60, %v2469_v18  ;;  %v2477_v42 = vsub.f32 %v2431_v61, %v2469_v18  ;;  %v2479_v24 = vsub.f32 %v2437_v36, %v2473_v21  ;;  %v2478_v25 = vsub.f32 %v2434_v2, %v2473_v21 }
0x1859   :  { %v2480_v26 = vmul.f32 1.442695, %v2476_v11  ;;  %v2482_v28 = vmul.f32 1.442695, %v2477_v42  ;;  %v2486_v40 = vmul.f32 1.442695, %v2479_v24 }
0x185a   :  { %v2484_v38 = vmul.f32 1.442695, %v2478_v25 }
0x185b   :  { %6196 = vpow2.f32 %v2480_v26  ;;  %v7152_v26 = vld [vmem:[%s7747_s3 + $0x58] sm:$0xff] }
0x185c   :  { %6198 = vpow2.f32 %v2482_v28  ;;  %v7168_v28 = vld [vmem:[%s7747_s3 + $0x48] sm:$0xff] }
0x185d   :  { %6200 = vpow2.f32 %v2486_v40  ;;  %v7175_v40 = vld [vmem:[%s7747_s3 + $0x40] sm:$0xff] }
0x185e   :  { %6202 = vpow2.f32 %v2484_v38 }
0x1868   :  { %v6197_v4 = vpop.eup %6196 }
0x1869   :  { %v6199_v3 = vpop.eup %6198  ;;  %2493 = vperm.xlu0 %6135, %v6197_v4  }
0x186a   :  { %2496 = vperm.xlu1 %6134, %v6199_v3   ;;  %v6201_v44 = vpop.eup %6200 }
0x186b   :  { %v6203_v30 = vpop.eup %6202 }
0x186d   :  { %2502 = vperm.xlu0 %6135, %v6201_v44  }
0x186e   :  { %2499 = vperm.xlu1 %6134, %v6203_v30  }
0x18e4   :  { %v2494_v32 = vpop.permute.xlu0 %2493 }
0x18e5   :  { %v2497_v5 = vpop.permute.xlu1 %2496  ;;  %v2507_v41 = vrot.slane %v2494_v32, %v6548_v33 }
0x18e6   :  { %v2511_v39 = vrot.slane %v2497_v5, %v6545_v31 }
0x18e8   :  { %v2503_v6 = vpop.permute.xlu0 %2502  ;;  %v2512_v56 = vsel %vm646_vm3, %v2511_v39, %v2507_v41 }
0x18e9   :  { %v2500_v23 = vpop.permute.xlu1 %2499  ;;  %v2520_v49 = vrot.slane %v2503_v6, %v6545_v31 }
0x18ea   :  { %v2516_v52 = vrot.slane %v2500_v23, %v6548_v33 }
0x18ec   :  { %v2521_v57 = vsel %vm646_vm3, %v2520_v49, %v2516_v52 }
0x18ed   :  { %v2522_v34 = vsel %vm95_vm2, %v2521_v57, %v2512_v56 }
0x18ee   :  { %v2524_v59 = vsel %vm659_vm4, %v2522_v34, 0.0 }
0x18ef   :  { %2525 = vadd.xlane.f32.xlu1 %v2524_v59 }
0x1978   :  { %v2526_v60 = vpop.xlane.xlu1 %2525 }
0x1979   :  { %v2531_v61 = vrot.slane %v2526_v60, %v6508_v53  ;;  %v2535_v2 = vrot.slane %v2526_v60, %v6559_v51 }
0x197b   :  { %6204 = vrcp.f32 %v2531_v61  ;;  %v2884_v61 = vrot.slane %v7076_v16, 6  ;;  %v7218_v16 = vld [vmem:[%s7747_s3 + $0x38] sm:$0xff] }
0x197c   :  { %6206 = vrcp.f32 %v2535_v2 }
0x1988   :  { %v6205_v35 = vpop.eup %6204 }
0x1989   :  { %v2539_v9 = vmul.f32 %v6205_v35, %v6197_v4  ;;  %v2540_v36 = vmul.f32 %v6205_v35, %v6199_v3  ;;  %v6207_v10 = vpop.eup %6206 }
0x198a   :  { %v2542_v12 = vmul.f32 %v6207_v10, %v6203_v30  ;;  %v2543_v47 = vmul.f32 %v6207_v10, %v6201_v44 }
0x198b   :  { %2547 = vperm.xlu0 %6135, %v2539_v9  }
0x198f   :  { %2550 = vperm.xlu0 %6135, %v2540_v36  }
0x1993   :  { %2636 = vperm.xlu0 %6135, %v2542_v12  }
0x1997   :  { %2639 = vperm.xlu0 %6135, %v2543_v47  }
0x1a06   :  { %v2548_v37 = vpop.permute.xlu0 %2547 }
0x1a07   :  { %v2555_v15 = vrot.slane %v2548_v37, %v6548_v33  ;;  %v7227_v37 = vld [vmem:[%s7747_s3 + $0x30] sm:$0xff] }
0x1a0a   :  { %v2551_v14 = vpop.permute.xlu0 %2550 }
0x1a0b   :  { %v2559_v17 = vrot.slane %v2551_v14, %v6545_v31  ;;  %v7234_v14 = vld [vmem:[%s7747_s3 + $0x28] sm:$0xff] }
0x1a0d   :  { %v2560_v18 = vsel %vm646_vm3, %v2559_v17, %v2555_v15  ;;  %v7241_v15 = vld [vmem:[%s7747_s3 + $0x20] sm:$0xff] }
0x1a0e   :  { %5897 = vmatmul.mubr.msk.f32.vlgmr.msra.gmra.mxu1 %vm759_vm6, %v2560_v18  ;;  %v2637_v21 = vpop.permute.xlu0 %2636 }
0x1a0f   :  { %5900 = vmatpush3.msra.mxu1 %v7010_v27  ;;  %5903 = vmatprep.mubr.msk.f32.mxu1 %vm6347_vm1, %v6346_v1  ;;  %v2644_v42 = vrot.slane %v2637_v21, %v6548_v33 }
0x1a10   :  { %5901 = vmatprep.subr.mxu1 %v6346_v1 }
0x1a11   :  { %5902 = vmatpush3.msra.mxu1 %v6887_v29  ;;  %v7161_v29 = vld [vmem:[%s7747_s3 + $0x50] sm:$0xff] }
0x1a12   :  { %v2640_v11 = vpop.permute.xlu0 %2639  ;;  %5917 = vmatprep.subr.mxu1 %v6346_v1 }
0x1a13   :  { %v2648_v24 = vrot.slane %v2640_v11, %v6545_v31 }
0x1a15   :  { %v2649_v25 = vsel %vm646_vm3, %v2648_v24, %v2644_v42 }
0x1a16   :  { %5904 = vmatmul.mubr.msk.f32.vlgmr.msra.gmra.mxu1 %vm759_vm6, %v2649_v25 }
0x1a17   :  { %5918 = vmatpush3.msra.mxu1 %v7152_v26  ;;  %5925 = vmatprep.mubr.msk.f32.mxu1 %vm6347_vm1, %v6346_v1 }
0x1a18   :  { %5919 = vmatprep.subr.mxu1 %v6346_v1 }
0x1a19   :  { %5920 = vmatpush3.msra.mxu1 %v7161_v29 }
0x1a1a   :  { %5921 = vmatprep.subr.mxu1 %v6346_v1 }
0x1a1b   :  { %5922 = vmatpush3.msra.mxu1 %v7168_v28 }
0x1a1c   :  { %5923 = vmatprep.subr.mxu1 %v6346_v1 }
0x1a1d   :  { %5924 = vmatpush3.msra.mxu1 %v7175_v40 }
0x1a1e   :  { %5926 = vmatmul.mubr.msk.f32.vlgmr.msra.gmra.mxu1 %vm67_vm0, %v7084_v13  ;;  %5939 = vmatprep.subr.mxu1 %v6346_v1 }
0x1a1f   :  { %5940 = vmatpush3.msra.mxu1 %v6910_v45  ;;  %5943 = vmatprep.mubr.msk.f32.mxu1 %vm6347_vm1, %v6346_v1 }
0x1a20   :  { %5941 = vmatprep.subr.mxu1 %v6346_v1 }
0x1a21   :  { %5942 = vmatpush3.msra.mxu1 %v6919_v46 }
0x1a22   :  { %5946 = vmatprep.subr.mxu1 %v6346_v1 }
0x1ace   :  { %v2629_v38 = vpop.f32.mrf.mxu1 }
0x1ad0   :  { %v5898_v4 = vpop.f32.mrf.mxu1 }
0x1ad6   :  { %v2718_v3 = vpop.f32.mrf.mxu1 }
0x1ad7   :  { %v2724_v44 = vrot.slane %v2718_v3, 7 }
0x1ad8   :  { %v5905_v30 = vpop.f32.mrf.mxu1 }
0x1ad9   :  { %v2725_v13 = vsel %vm95_vm2, %v2724_v44, %v2629_v38 }
0x1ada   :  { %5915 = vmatmul.mubr.msk.f32.vlgmr.msra.gmra.mxu0 %vm67_vm0, %v2725_v13 }
0x1adb   :  { %5929 = vmatpush3.msra.mxu0 %v7045_v22  ;;  %5936 = vmatprep.mubr.msk.f32.mxu0 %vm6347_vm1, %v6346_v1 }
0x1adc   :  { %5930 = vmatprep.subr.mxu0 %v6346_v1 }
0x1add   :  { %5931 = vmatpush3.msra.mxu0 %v7054_v48 }
0x1ade   :  { %v2868_v45 = vpop.f32.mrf.mxu1  ;;  %5932 = vmatprep.subr.mxu0 %v6346_v1 }
0x1adf   :  { %5933 = vmatpush3.msra.mxu0 %v7061_v50  ;;  %v2873_v41 = vrot.slane %v2868_v45, 2 }
0x1ae0   :  { %v5927_v46 = vpop.f32.mrf.mxu1  ;;  %5934 = vmatprep.subr.mxu0 %v6346_v1 }
0x1ae1   :  { %5935 = vmatpush3.msra.mxu0 %v7068_v55 }
0x1ae2   :  { %5953 = vmatprep.subr.mxu0 %v6346_v1 }
0x1b9a   :  { %v2794_v32 = vpop.f32.mrf.mxu0 }
0x1b9b   :  { %v2799_v5 = vrot.slane %v2794_v32, 2 }
0x1b9c   :  { %v5916_v39 = vpop.f32.mrf.mxu0 }
0x1b9d   :  { %v2801_v6 = vadd.f32 %v2799_v5, %v6813_v58 }
0x1b9f   :  { %v2875_v23 = vadd.f32 %v2873_v41, %v2801_v6 }
0x1ba1   :  { %6208 = vtanh.f32 %v2875_v23  ;;  %v5467_v52 = vmul.f32 -1.442695, %v2875_v23 }
0x1ba3   :  { %6210 = vpow2.f32 %v5467_v52 }
0x1bae   :  { %v6209_v49 = vpop.eup %6208 }
0x1baf   :  { %2888 = vrot.lane.b32.xlu0 %v6209_v49, %s6351_s6 }
0x1bb0   :  { %v6211_v56 = vpop.eup %6210 }
0x1bb1   :  { %v2879_v57 = vadd.f32 1.0, %v6211_v56 }
0x1bb3   :  { %6212 = vrcp.f32 %v2879_v57 }
0x1bc0   :  { %v6213_v34 = vpop.eup %6212 }
0x1bc1   :  { %v2886_v2 = vmul.f32 %v6213_v34, %v2884_v61 }
0x1c21   :  { %v2889_v59 = vpop.permute.xlu0 %2888 }
0x1c22   :  { %v2891_v60 = vmul.f32 %v6213_v34, %v2889_v59 }
0x1c24   :  { %2893 = vrot.lane.b32.xlu0 %v2891_v60, %s6350_s15 }
0x1c96   :  { %v2894_v35 = vpop.permute.xlu0 %2893 }
0x1c97   :  { %v7203_v58 = vadd.f32 %v2894_v35, %v2886_v2 }
0x1c99   :  { %6214 = vtanh.f32 %v7203_v58 }
0x1ca6   :  { %v6215_v9 = vpop.eup %6214 }
0x1ca7   :  { %2899 = vrot.lane.b32.xlu0 %v6215_v9, %s6351_s6 }
0x1d19   :  { %v2900_v36 = vpop.permute.xlu0 %2899 }
0x1d1a   :  { %v7207_v10 = vmul.f32 %v6213_v34, %v2900_v36 }
0x1d1c   :  { %v2909_v12 = vrot.slane %v7207_v10, 6 }
0x1d1e   :  { %2910 = vrot.lane.b32.xlu0 %v2909_v12, %s6350_s15 }
0x1d90   :  { %v7211_v47 = vpop.permute.xlu0 %2910 }
0x1d91   :  { %5937 = vmatmul.mubr.msk.f32.vlgmr.msra.gmra.mxu0 %vm67_vm0, %v7211_v47 }
0x1d92   :  { %5954 = vmatpush3.msra.mxu0 %v7218_v16  ;;  %5961 = vmatprep.mubr.msk.f32.mxu0 %vm6347_vm1, %v6346_v1 }
0x1d93   :  { %5955 = vmatprep.subr.mxu0 %v6346_v1 }
0x1d94   :  { %5956 = vmatpush3.msra.mxu0 %v7227_v37 }
0x1d95   :  { %5957 = vmatprep.subr.mxu0 %v6346_v1 }
0x1d96   :  { %5958 = vmatpush3.msra.mxu0 %v7234_v14 }
0x1d97   :  { %5959 = vmatprep.subr.mxu0 %v6346_v1 }
0x1d98   :  { %5960 = vmatpush3.msra.mxu0 %v7241_v15 }
0x1d99   :  { %5975 = vmatprep.subr.mxu0 %v6346_v1 }
0x1e51   :  { %v2980_v17 = vpop.f32.mrf.mxu0 }
0x1e52   :  { %v2991_v18 = vrot.slane %v2980_v17, %v6511_v54 }
0x1e53   :  { %v5938_v21 = vpop.f32.mrf.mxu0 }
0x1e54   :  { %v2992_v11 = vcombine.high %v2991_v18, %v2991_v18  ;;  %v2999_v42 = vrot.slane %v2991_v18, %v6511_v54 }
0x1e56   :  { %v3006_v24 = vrot.slane %v2992_v11, %v6511_v54  ;;  %v3010_v25 = vrot.slane %v2999_v42, %v6508_v53 }
0x1e58   :  { %v3014_v38 = vrot.slane %v3006_v24, %v6508_v53  ;;  %v3018_v4 = vadd.f32 %v3010_v25, %v6516_v62  ;;  %v3017_v3 = vadd.f32 %v3010_v25, %v6518_v63 }
0x1e5a   :  { %v3022_v44 = vmax.f32 %v3018_v4, 0.0  ;;  %v3021_v30 = vmax.f32 %v3017_v3, 0.0  ;;  %v3019_v13 = vadd.f32 %v3014_v38, %v6524_v8  ;;  %v3020_v45 = vadd.f32 %v3014_v38, %v6522_v7 }
0x1e5c   :  { %v3026_v46 = vmul.f32 %v6979_v0, %v3022_v44  ;;  %v3025_v32 = vmul.f32 %v6979_v0, %v3021_v30  ;;  %v3023_v5 = vmax.f32 %v3019_v13, 0.0  ;;  %v3024_v23 = vmax.f32 %v3020_v45, 0.0 }
0x1e5e   :  { %v3032_v39 = vsel %vm67_vm0, %v3026_v46, 0.0  ;;  %v3029_v41 = vsel %vm67_vm0, %v3025_v32, 0.0  ;;  %v3027_v6 = vmul.f32 %v6979_v0, %v3023_v5  ;;  %v3028_v52 = vmul.f32 %v6979_v0, %v3024_v23 }
0x1e5f   :  { %3033 = vadd.xlane.f32.xlu1 %v3032_v39  ;;  %3030 = vadd.xlane.f32.xlu0 %v3029_v41 }
0x1e60   :  { %v3035_v49 = vsel %vm67_vm0, %v3027_v6, 0.0  ;;  %v3038_v56 = vsel %vm67_vm0, %v3028_v52, 0.0 }
0x1e63   :  { %3036 = vadd.xlane.f32.xlu1 %v3035_v49 }
0x1e67   :  { %3039 = vadd.xlane.f32.xlu1 %v3038_v56 }
0x1ee8   :  { %v3034_v57 = vpop.xlane.xlu1 %3033  ;;  %v3031_v34 = vpop.xlane.xlu0 %3030 }
0x1ee9   :  { %v3052_v60 = vrot.slane %v3034_v57, %v6545_v31  ;;  %v3048_v61 = vrot.slane %v3031_v34, %v6548_v33 }
0x1eeb   :  { %v3053_v36 = vsel %vm646_vm3, %v3052_v60, %v3048_v61 }
0x1eec   :  { %v3037_v59 = vpop.xlane.xlu1 %3036 }
0x1eed   :  { %v3057_v35 = vrot.slane %v3037_v59, %v6548_v33 }
0x1ef0   :  { %v3040_v2 = vpop.xlane.xlu1 %3039 }
0x1ef1   :  { %v3061_v9 = vrot.slane %v3040_v2, %v6545_v31 }
0x1ef3   :  { %v3062_v0 = vsel %vm646_vm3, %v3061_v9, %v3057_v35 }
0x1ef4   :  { %v3063_v12 = vsel %vm95_vm2, %v3062_v0, %v3053_v36 }
0x1ef5   :  { %v3065_v17 = vsel %vm659_vm4, %v3063_v12, -inf }
0x1ef6   :  { %3066 = vmax.xlane.f32.xlu1 %v3065_v17 }
0x1f7f   :  { %v3067_v18 = vpop.xlane.xlu1 %3066 }
0x1f80   :  { %v3072_v21 = vrot.slane %v3067_v18, %v6508_v53  ;;  %v3076_v11 = vrot.slane %v3067_v18, %v6559_v51 }
0x1f82   :  { %v3079_v42 = vsub.f32 %v3031_v34, %v3072_v21  ;;  %v3080_v24 = vsub.f32 %v3034_v57, %v3072_v21  ;;  %v3081_v25 = vsub.f32 %v3037_v59, %v3076_v11  ;;  %v3082_v3 = vsub.f32 %v3040_v2, %v3076_v11 }
0x1f84   :  { %v3083_v38 = vmul.f32 1.442695, %v3079_v42  ;;  %v3085_v4 = vmul.f32 1.442695, %v3080_v24  ;;  %v3087_v44 = vmul.f32 1.442695, %v3081_v25 }
0x1f85   :  { %v3089_v30 = vmul.f32 1.442695, %v3082_v3 }
0x1f86   :  { %6216 = vpow2.f32 %v3083_v38 }
0x1f87   :  { %6218 = vpow2.f32 %v3085_v4  ;;  %v7293_v4 = vld [vmem:[%s7745_s1 + $0x10] sm:$0xff] }
0x1f88   :  { %6220 = vpow2.f32 %v3087_v44 }
0x1f89   :  { %6222 = vpow2.f32 %v3089_v30 }
0x1f93   :  { %v6217_v13 = vpop.eup %6216 }
0x1f94   :  { %v6219_v45 = vpop.eup %6218  ;;  %3096 = vperm.xlu1 %6134, %v6217_v13  }
0x1f95   :  { %3099 = vperm.xlu0 %6135, %v6219_v45   ;;  %v6221_v46 = vpop.eup %6220 }
0x1f96   :  { %v6223_v32 = vpop.eup %6222 }
0x1f98   :  { %3102 = vperm.xlu1 %6134, %v6221_v46  }
0x1f9c   :  { %3105 = vperm.xlu1 %6134, %v6223_v32  }
0x200f   :  { %v3097_v5 = vpop.permute.xlu1 %3096 }
0x2010   :  { %v3100_v39 = vpop.permute.xlu0 %3099  ;;  %v3110_v23 = vrot.slane %v3097_v5, %v6548_v33 }
0x2011   :  { %v3114_v6 = vrot.slane %v3100_v39, %v6545_v31 }
0x2013   :  { %v3103_v41 = vpop.permute.xlu1 %3102  ;;  %v3115_v57 = vsel %vm646_vm3, %v3114_v6, %v3110_v23 }
0x2014   :  { %v3119_v52 = vrot.slane %v3103_v41, %v6548_v33 }
0x2017   :  { %v3106_v49 = vpop.permute.xlu1 %3105 }
0x2018   :  { %v3123_v56 = vrot.slane %v3106_v49, %v6545_v31 }
0x201a   :  { %v3124_v34 = vsel %vm646_vm3, %v3123_v56, %v3119_v52 }
0x201b   :  { %v3125_v59 = vsel %vm95_vm2, %v3124_v34, %v3115_v57 }
0x201c   :  { %v3127_v60 = vsel %vm659_vm4, %v3125_v59, 0.0 }
0x201d   :  { %3128 = vadd.xlane.f32.xlu1 %v3127_v60 }
0x20a6   :  { %v3129_v61 = vpop.xlane.xlu1 %3128 }
0x20a7   :  { %v3134_v2 = vrot.slane %v3129_v61, %v6508_v53  ;;  %v3138_v35 = vrot.slane %v3129_v61, %v6559_v51 }
0x20a9   :  { %6224 = vrcp.f32 %v3134_v2 }
0x20aa   :  { %6226 = vrcp.f32 %v3138_v35 }
0x20b6   :  { %v6225_v9 = vpop.eup %6224 }
0x20b7   :  { %v3142_v36 = vmul.f32 %v6225_v9, %v6217_v13  ;;  %v3143_v0 = vmul.f32 %v6225_v9, %v6219_v45  ;;  %v6227_v12 = vpop.eup %6226  ;;  %v7316_v13 = vld [vmem:[%s7745_s1 + $0x8] sm:$0xff]  ;;  %v7325_v45 = vld [vmem:[%s7745_s1] sm:$0xff] }
0x20b8   :  { %v3145_v17 = vmul.f32 %v6227_v12, %v6221_v46  ;;  %v3146_v18 = vmul.f32 %v6227_v12, %v6223_v32 }
0x20b9   :  { %3150 = vperm.xlu0 %6135, %v3142_v36  }
0x20bd   :  { %3153 = vperm.xlu0 %6135, %v3143_v0  }
0x20c1   :  { %3239 = vperm.xlu0 %6135, %v3145_v17  }
0x20c5   :  { %3242 = vperm.xlu0 %6135, %v3146_v18  }
0x2134   :  { %v3151_v21 = vpop.permute.xlu0 %3150 }
0x2135   :  { %v3158_v42 = vrot.slane %v3151_v21, %v6548_v33 }
0x2138   :  { %v3154_v11 = vpop.permute.xlu0 %3153 }
0x2139   :  { %v3162_v24 = vrot.slane %v3154_v11, %v6545_v31 }
0x213b   :  { %v3163_v25 = vsel %vm646_vm3, %v3162_v24, %v3158_v42 }
0x213c   :  { %5944 = vmatmul.mubr.msk.f32.vlgmr.msra.gmra.mxu1 %vm759_vm6, %v3163_v25  ;;  %v3240_v38 = vpop.permute.xlu0 %3239 }
0x213d   :  { %5947 = vmatpush3.msra.mxu1 %v7010_v27  ;;  %5950 = vmatprep.mubr.msk.f32.mxu1 %vm6347_vm1, %v6346_v1  ;;  %v3247_v44 = vrot.slane %v3240_v38, %v6548_v33 }
0x213e   :  { %5948 = vmatprep.subr.mxu1 %v6346_v1 }
0x213f   :  { %5949 = vmatpush3.msra.mxu1 %v7293_v4 }
0x2140   :  { %v3243_v3 = vpop.permute.xlu0 %3242  ;;  %5964 = vmatprep.subr.mxu1 %v6346_v1 }
0x2141   :  { %v3251_v30 = vrot.slane %v3243_v3, %v6545_v31 }
0x2143   :  { %v3252_v27 = vsel %vm646_vm3, %v3251_v30, %v3247_v44 }
0x2144   :  { %5951 = vmatmul.mubr.msk.f32.vlgmr.msra.gmra.mxu1 %vm759_vm6, %v3252_v27 }
0x2145   :  { %5965 = vmatpush3.msra.mxu1 %v7152_v26  ;;  %5972 = vmatprep.mubr.msk.f32.mxu1 %vm6347_vm1, %v6346_v1 }
0x2146   :  { %5966 = vmatprep.subr.mxu1 %v6346_v1 }
0x2147   :  { %5967 = vmatpush3.msra.mxu1 %v7161_v29 }
0x2148   :  { %5968 = vmatprep.subr.mxu1 %v6346_v1 }
0x2149   :  { %5969 = vmatpush3.msra.mxu1 %v7168_v28 }
0x214a   :  { %5970 = vmatprep.subr.mxu1 %v6346_v1 }
0x214b   :  { %5971 = vmatpush3.msra.mxu1 %v7175_v40 }
0x214c   :  { %5973 = vmatmul.mubr.msk.f32.vlgmr.msra.gmra.mxu1 %vm67_vm0, %v7211_v47  ;;  %5986 = vmatprep.subr.mxu1 %v6346_v1 }
0x214d   :  { %5987 = vmatpush3.msra.mxu1 %v7316_v13  ;;  %5990 = vmatprep.mubr.msk.f32.mxu1 %vm6347_vm1, %v6346_v1 }
0x214e   :  { %5988 = vmatprep.subr.mxu1 %v6346_v1 }
0x214f   :  { %5989 = vmatpush3.msra.mxu1 %v7325_v45 }
0x2150   :  { %5993 = vmatprep.subr.mxu1 %v6346_v1 }
0x21fc   :  { %v3232_v47 = vpop.f32.mrf.mxu1 }
0x21fe   :  { %v5945_v46 = vpop.f32.mrf.mxu1 }
0x2204   :  { %v3321_v32 = vpop.f32.mrf.mxu1 }
0x2205   :  { %v3327_v5 = vrot.slane %v3321_v32, 7  ;;  %v7378_v32 = vld [vmem:[%s7748_s4 + $0xa0] ss:$0 sm:$0xff] }
0x2206   :  { %v5952_v39 = vpop.f32.mrf.mxu1 }
0x2207   :  { %v3328_v41 = vsel %vm95_vm2, %v3327_v5, %v3232_v47 }
0x2208   :  { %5962 = vmatmul.mubr.msk.f32.vlgmr.msra.gmra.mxu0 %vm67_vm0, %v3328_v41 }
0x2209   :  { %5976 = vmatpush3.msra.mxu0 %v7045_v22  ;;  %5983 = vmatprep.mubr.msk.f32.mxu0 %vm6347_vm1, %v6346_v1 }
0x220a   :  { %5977 = vmatprep.subr.mxu0 %v6346_v1 }
0x220b   :  { %5978 = vmatpush3.msra.mxu0 %v7054_v48 }
0x220c   :  { %v3468_v6 = vpop.f32.mrf.mxu1  ;;  %5979 = vmatprep.subr.mxu0 %v6346_v1 }
0x220d   :  { %5980 = vmatpush3.msra.mxu0 %v7061_v50 }
0x220e   :  { %v5974_v23 = vpop.f32.mrf.mxu1  ;;  %5981 = vmatprep.subr.mxu0 %v6346_v1 }
0x220f   :  { %5982 = vmatpush3.msra.mxu0 %v7068_v55  ;;  %v3481_v55 = vrot.slane %v7203_v58, 6 }
0x2210   :  { %6000 = vmatprep.subr.mxu0 %v6346_v1 }
0x22c8   :  { %v3397_v22 = vpop.f32.mrf.mxu0 }
0x22c9   :  { %v3401_v49 = vadd.f32 %v3397_v22, %v6797_v43 }
0x22ca   :  { %v5963_v52 = vpop.f32.mrf.mxu0 }
0x22cb   :  { %v3472_v56 = vadd.f32 %v3468_v6, %v3401_v49 }
0x22cd   :  { %6228 = vtanh.f32 %v3472_v56  ;;  %v5473_v48 = vmul.f32 -1.442695, %v3472_v56 }
0x22cf   :  { %6230 = vpow2.f32 %v5473_v48 }
0x22da   :  { %v6229_v57 = vpop.eup %6228 }
0x22db   :  { %3485 = vrot.lane.b32.xlu0 %v6229_v57, %s6351_s6 }
0x22dc   :  { %v6231_v34 = vpop.eup %6230 }
0x22dd   :  { %v3476_v50 = vadd.f32 1.0, %v6231_v34 }
0x22df   :  { %6232 = vrcp.f32 %v3476_v50 }
0x22ec   :  { %v6233_v59 = vpop.eup %6232 }
0x22ed   :  { %v3483_v2 = vmul.f32 %v6233_v59, %v3481_v55 }
0x234d   :  { %v3486_v60 = vpop.permute.xlu0 %3485 }
0x234e   :  { %v3488_v61 = vmul.f32 %v6233_v59, %v3486_v60 }
0x2350   :  { %3490 = vrot.lane.b32.xlu0 %v3488_v61, %s6350_s15 }
0x23c2   :  { %v3491_v35 = vpop.permute.xlu0 %3490 }
0x23c3   :  { %v7345_v9 = vadd.f32 %v3491_v35, %v3483_v2 }
0x23c5   :  { %6234 = vtanh.f32 %v7345_v9 }
0x23d2   :  { %v6235_v36 = vpop.eup %6234 }
0x23d3   :  { %3496 = vrot.lane.b32.xlu0 %v6235_v36, %s6351_s6 }
0x2445   :  { %v3497_v0 = vpop.permute.xlu0 %3496 }
0x2446   :  { %v3499_v12 = vmul.f32 %v6233_v59, %v3497_v0 }
0x2448   :  { %3501 = vrot.lane.b32.xlu1 %v3499_v12, %s6350_s15 }
0x24ba   :  { %v7350_v17 = vpop.permute.xlu1 %3501 }
0x24bb   :  { %3504 = vst.msk [vmem:[#allocation3 + $0x8] sm:$0x3] %vm1101_vm7, %v7350_v17  ;;  %5984 = vmatmul.mubr.msk.f32.vlgmr.msra.gmra.mxu0 %vm67_vm0, %v7350_v17 }
0x24bc   :  { %6001 = vmatpush3.msra.mxu0 %v7218_v16  ;;  %6008 = vmatprep.mubr.msk.f32.mxu0 %vm6347_vm1, %v6346_v1 }
0x24bd   :  { %6002 = vmatprep.subr.mxu0 %v6346_v1 }
0x24be   :  { %6003 = vmatpush3.msra.mxu0 %v7227_v37 }
0x24bf   :  { %6004 = vmatprep.subr.mxu0 %v6346_v1 }
0x24c0   :  { %6005 = vmatpush3.msra.mxu0 %v7234_v14 }
0x24c1   :  { %6006 = vmatprep.subr.mxu0 %v6346_v1 }
0x24c2   :  { %6007 = vmatpush3.msra.mxu0 %v7241_v15 }
0x24c3   :  { %6022 = vmatprep.subr.mxu0 %v6346_v1 }
0x257b   :  { %v3573_v58 = vpop.f32.mrf.mxu0 }
0x257c   :  { %v3584_v18 = vrot.slane %v3573_v58, %v6511_v54 }
0x257d   :  { %v5985_v21 = vpop.f32.mrf.mxu0 }
0x257e   :  { %v3585_v11 = vcombine.high %v3584_v18, %v3584_v18  ;;  %v3592_v42 = vrot.slane %v3584_v18, %v6511_v54 }
0x2580   :  { %v3599_v24 = vrot.slane %v3585_v11, %v6511_v54  ;;  %v3603_v25 = vrot.slane %v3592_v42, %v6508_v53 }
0x2582   :  { %v3607_v38 = vrot.slane %v3599_v24, %v6508_v53  ;;  %v3611_v3 = vadd.f32 %v3603_v25, %v6516_v62  ;;  %v3610_v44 = vadd.f32 %v3603_v25, %v6518_v63 }
0x2584   :  { %v3615_v30 = vmax.f32 %v3611_v3, 0.0  ;;  %v3614_v27 = vmax.f32 %v3610_v44, 0.0  ;;  %v3612_v47 = vadd.f32 %v3607_v38, %v6524_v8  ;;  %v3613_v46 = vadd.f32 %v3607_v38, %v6522_v7 }
0x2586   :  { %v3619_v5 = vmul.f32 %v7378_v32, %v3615_v30  ;;  %v3618_v39 = vmul.f32 %v7378_v32, %v3614_v27  ;;  %v3616_v41 = vmax.f32 %v3612_v47, 0.0  ;;  %v3617_v49 = vmax.f32 %v3613_v46, 0.0 }
0x2588   :  { %v3625_v6 = vsel %vm67_vm0, %v3619_v5, 0.0  ;;  %v3622_v23 = vsel %vm67_vm0, %v3618_v39, 0.0  ;;  %v3620_v22 = vmul.f32 %v7378_v32, %v3616_v41  ;;  %v3621_v56 = vmul.f32 %v7378_v32, %v3617_v49 }
0x2589   :  { %3626 = vadd.xlane.f32.xlu1 %v3625_v6  ;;  %3623 = vadd.xlane.f32.xlu0 %v3622_v23 }
0x258a   :  { %v3628_v52 = vsel %vm67_vm0, %v3620_v22, 0.0  ;;  %v3631_v57 = vsel %vm67_vm0, %v3621_v56, 0.0 }
0x258d   :  { %3629 = vadd.xlane.f32.xlu0 %v3628_v52 }
0x2591   :  { %3632 = vadd.xlane.f32.xlu0 %v3631_v57 }
0x2612   :  { %v3624_v48 = vpop.xlane.xlu0 %3623  ;;  %v3627_v34 = vpop.xlane.xlu1 %3626 }
0x2613   :  { %v3645_v59 = vrot.slane %v3627_v34, %v6545_v31  ;;  %v3641_v60 = vrot.slane %v3624_v48, %v6548_v33 }
0x2615   :  { %v3646_v35 = vsel %vm646_vm3, %v3645_v59, %v3641_v60 }
0x2616   :  { %v3630_v50 = vpop.xlane.xlu0 %3629 }
0x2617   :  { %v3650_v55 = vrot.slane %v3630_v50, %v6548_v33 }
0x261a   :  { %v3633_v61 = vpop.xlane.xlu0 %3632 }
0x261b   :  { %v3654_v2 = vrot.slane %v3633_v61, %v6545_v31 }
0x261d   :  { %v3655_v36 = vsel %vm646_vm3, %v3654_v2, %v3650_v55 }
0x261e   :  { %v3656_v0 = vsel %vm95_vm2, %v3655_v36, %v3646_v35 }
0x261f   :  { %v3658_v12 = vsel %vm659_vm4, %v3656_v0, -inf }
0x2620   :  { %3659 = vmax.xlane.f32.xlu0 %v3658_v12 }
0x26a9   :  { %v3660_v58 = vpop.xlane.xlu0 %3659 }
0x26aa   :  { %v3665_v18 = vrot.slane %v3660_v58, %v6508_v53  ;;  %v3669_v21 = vrot.slane %v3660_v58, %v6559_v51 }
0x26ac   :  { %v3672_v11 = vsub.f32 %v3624_v48, %v3665_v18  ;;  %v3673_v42 = vsub.f32 %v3627_v34, %v3665_v18  ;;  %v3674_v24 = vsub.f32 %v3630_v50, %v3669_v21  ;;  %v3675_v25 = vsub.f32 %v3633_v61, %v3669_v21 }
0x26ae   :  { %v3676_v38 = vmul.f32 1.442695, %v3672_v11  ;;  %v3678_v3 = vmul.f32 1.442695, %v3673_v42  ;;  %v3680_v44 = vmul.f32 1.442695, %v3674_v24 }
0x26af   :  { %v3682_v30 = vmul.f32 1.442695, %v3675_v25  ;;  %v7415_v25 = vld [vmem:[%s7745_s1 + $0x18] sm:$0xff] }
0x26b0   :  { %6236 = vpow2.f32 %v3676_v38 }
0x26b1   :  { %6238 = vpow2.f32 %v3678_v3 }
0x26b2   :  { %6240 = vpow2.f32 %v3680_v44 }
0x26b3   :  { %6242 = vpow2.f32 %v3682_v30 }
0x26bd   :  { %v6237_v27 = vpop.eup %6236 }
0x26be   :  { %v6239_v47 = vpop.eup %6238  ;;  %3689 = vperm.xlu0 %6135, %v6237_v27  }
0x26bf   :  { %3692 = vperm.xlu1 %6134, %v6239_v47   ;;  %v6241_v46 = vpop.eup %6240 }
0x26c0   :  { %v6243_v5 = vpop.eup %6242 }
0x26c2   :  { %3695 = vperm.xlu0 %6135, %v6241_v46  }
0x26c3   :  { %3698 = vperm.xlu1 %6134, %v6243_v5  }
0x2739   :  { %v3690_v39 = vpop.permute.xlu0 %3689 }
0x273a   :  { %v3693_v41 = vpop.permute.xlu1 %3692  ;;  %v3703_v23 = vrot.slane %v3690_v39, %v6548_v33  ;;  %v7466_v39 = vld [vmem:[%s7748_s4 + $0x68] sm:$0xff] }
0x273b   :  { %v3707_v6 = vrot.slane %v3693_v41, %v6545_v31 }
0x273d   :  { %v3696_v22 = vpop.permute.xlu0 %3695  ;;  %v3708_v57 = vsel %vm646_vm3, %v3707_v6, %v3703_v23  ;;  %v7473_v6 = vld [vmem:[%s7748_s4 + $0x60] sm:$0xff] }
0x273e   :  { %v3699_v49 = vpop.permute.xlu1 %3698  ;;  %v3712_v52 = vrot.slane %v3696_v22, %v6548_v33 }
0x273f   :  { %v3716_v56 = vrot.slane %v3699_v49, %v6545_v31 }
0x2741   :  { %v3717_v48 = vsel %vm646_vm3, %v3716_v56, %v3712_v52 }
0x2742   :  { %v3718_v34 = vsel %vm95_vm2, %v3717_v48, %v3708_v57 }
0x2743   :  { %v3720_v50 = vsel %vm659_vm4, %v3718_v34, 0.0 }
0x2744   :  { %3721 = vadd.xlane.f32.xlu0 %v3720_v50 }
0x27cd   :  { %v3722_v59 = vpop.xlane.xlu0 %3721 }
0x27ce   :  { %v3727_v60 = vrot.slane %v3722_v59, %v6508_v53  ;;  %v3731_v61 = vrot.slane %v3722_v59, %v6559_v51 }
0x27d0   :  { %6244 = vrcp.f32 %v3727_v60 }
0x27d1   :  { %6246 = vrcp.f32 %v3731_v61 }
0x27dd   :  { %v6245_v55 = vpop.eup %6244 }
0x27de   :  { %v3735_v2 = vmul.f32 %v6245_v55, %v6237_v27  ;;  %v3736_v35 = vmul.f32 %v6245_v55, %v6239_v47  ;;  %v6247_v36 = vpop.eup %6246  ;;  %v7450_v47 = vld [vmem:[%s7748_s4 + $0x78] sm:$0xff] }
0x27df   :  { %v3738_v0 = vmul.f32 %v6247_v36, %v6241_v46  ;;  %v3739_v12 = vmul.f32 %v6247_v36, %v6243_v5  ;;  %v7459_v46 = vld [vmem:[%s7748_s4 + $0x70] sm:$0xff] }
0x27e0   :  { %3743 = vperm.xlu1 %6134, %v3735_v2   ;;  %v4080_v2 = vrot.slane %v7345_v9, 6 }
0x27e4   :  { %3746 = vperm.xlu1 %6134, %v3736_v35  }
0x27e8   :  { %3832 = vperm.xlu1 %6134, %v3738_v0  }
0x27ec   :  { %3835 = vperm.xlu1 %6134, %v3739_v12  }
0x285b   :  { %v3744_v58 = vpop.permute.xlu1 %3743 }
0x285c   :  { %v3751_v21 = vrot.slane %v3744_v58, %v6548_v33 }
0x285f   :  { %v3747_v18 = vpop.permute.xlu1 %3746 }
0x2860   :  { %v3755_v11 = vrot.slane %v3747_v18, %v6545_v31 }
0x2862   :  { %v3756_v42 = vsel %vm646_vm3, %v3755_v11, %v3751_v21 }
0x2863   :  { %5991 = vmatmul.mubr.msk.f32.vlgmr.msra.gmra.mxu1 %vm759_vm6, %v3756_v42  ;;  %v3833_v24 = vpop.permute.xlu1 %3832 }
0x2864   :  { %5994 = vmatpush3.msra.mxu1 %v7415_v25  ;;  %5997 = vmatprep.mubr.msk.f32.mxu1 %vm6347_vm1, %v6346_v1  ;;  %v3840_v3 = vrot.slane %v3833_v24, %v6548_v33 }
0x2865   :  { %5995 = vmatprep.subr.mxu1 %v6346_v1 }
0x2866   :  { %5996 = vmatpush3.msra.mxu1 %v7293_v4 }
0x2867   :  { %v3836_v38 = vpop.permute.xlu1 %3835  ;;  %6011 = vmatprep.subr.mxu1 %v6346_v1 }
0x2868   :  { %v3844_v44 = vrot.slane %v3836_v38, %v6545_v31 }
0x286a   :  { %v3845_v30 = vsel %vm646_vm3, %v3844_v44, %v3840_v3 }
0x286b   :  { %5998 = vmatmul.mubr.msk.f32.vlgmr.msra.gmra.mxu1 %vm759_vm6, %v3845_v30 }
0x286c   :  { %6012 = vmatpush3.msra.mxu1 %v7152_v26  ;;  %6019 = vmatprep.mubr.msk.f32.mxu1 %vm6347_vm1, %v6346_v1 }
0x286d   :  { %6013 = vmatprep.subr.mxu1 %v6346_v1 }
0x286e   :  { %6014 = vmatpush3.msra.mxu1 %v7161_v29 }
0x286f   :  { %6015 = vmatprep.subr.mxu1 %v6346_v1 }
0x2870   :  { %6016 = vmatpush3.msra.mxu1 %v7168_v28 }
0x2871   :  { %6017 = vmatprep.subr.mxu1 %v6346_v1 }
0x2872   :  { %6018 = vmatpush3.msra.mxu1 %v7175_v40 }
0x2873   :  { %6020 = vmatmul.mubr.msk.f32.vlgmr.msra.gmra.mxu1 %vm67_vm0, %v7350_v17  ;;  %6033 = vmatprep.subr.mxu1 %v6346_v1 }
0x2874   :  { %6034 = vmatpush3.msra.mxu1 %v7316_v13  ;;  %6037 = vmatprep.mubr.msk.f32.mxu1 %vm6347_vm1, %v6346_v1 }
0x2875   :  { %6035 = vmatprep.subr.mxu1 %v6346_v1 }
0x2876   :  { %6036 = vmatpush3.msra.mxu1 %v7325_v45 }
0x2877   :  { %6040 = vmatprep.subr.mxu1 %v6346_v1 }
0x2923   :  { %v3825_v26 = vpop.f32.mrf.mxu1 }
0x2925   :  { %v5992_v29 = vpop.f32.mrf.mxu1 }
0x292b   :  { %v3914_v28 = vpop.f32.mrf.mxu1 }
0x292c   :  { %v3920_v40 = vrot.slane %v3914_v28, 7 }
0x292d   :  { %v5999_v27 = vpop.f32.mrf.mxu1 }
0x292e   :  { %v3921_v17 = vsel %vm95_vm2, %v3920_v40, %v3825_v26 }
0x292f   :  { %6009 = vmatmul.mubr.msk.f32.vlgmr.msra.gmra.mxu0 %vm67_vm0, %v3921_v17 }
0x2930   :  { %6023 = vmatpush3.msra.mxu0 %v7450_v47  ;;  %6030 = vmatprep.mubr.msk.f32.mxu0 %vm6347_vm1, %v6346_v1 }
0x2931   :  { %6024 = vmatprep.subr.mxu0 %v6346_v1 }
0x2932   :  { %6025 = vmatpush3.msra.mxu0 %v7459_v46 }
0x2933   :  { %v4064_v5 = vpop.f32.mrf.mxu1  ;;  %6026 = vmatprep.subr.mxu0 %v6346_v1 }
0x2934   :  { %6027 = vmatpush3.msra.mxu0 %v7466_v39  ;;  %v4069_v52 = vrot.slane %v4064_v5, 6 }
0x2935   :  { %v6021_v41 = vpop.f32.mrf.mxu1  ;;  %6028 = vmatprep.subr.mxu0 %v6346_v1 }
0x2936   :  { %6029 = vmatpush3.msra.mxu0 %v7473_v6 }
0x2937   :  { %6047 = vmatprep.subr.mxu0 %v6346_v1 }
0x29ef   :  { %v3990_v23 = vpop.f32.mrf.mxu0 }
0x29f0   :  { %v3995_v22 = vrot.slane %v3990_v23, 6 }
0x29f1   :  { %v6010_v49 = vpop.f32.mrf.mxu0 }
0x29f2   :  { %v3997_v56 = vadd.f32 %v3995_v22, %v6797_v43 }
0x29f4   :  { %v4071_v57 = vadd.f32 %v4069_v52, %v3997_v56 }
0x29f6   :  { %6248 = vtanh.f32 %v4071_v57  ;;  %v5479_v34 = vmul.f32 -1.442695, %v4071_v57 }
0x29f8   :  { %6250 = vpow2.f32 %v5479_v34 }
0x2a03   :  { %v6249_v48 = vpop.eup %6248 }
0x2a04   :  { %4084 = vrot.lane.b32.xlu1 %v6249_v48, %s6351_s6 }
0x2a05   :  { %v6251_v50 = vpop.eup %6250 }
0x2a06   :  { %v4075_v59 = vadd.f32 1.0, %v6251_v50 }
0x2a08   :  { %6252 = vrcp.f32 %v4075_v59 }
0x2a15   :  { %v6253_v60 = vpop.eup %6252 }
0x2a16   :  { %v4082_v35 = vmul.f32 %v6253_v60, %v4080_v2 }
0x2a76   :  { %v4085_v61 = vpop.permute.xlu1 %4084 }
0x2a77   :  { %v4087_v55 = vmul.f32 %v6253_v60, %v4085_v61 }
0x2a79   :  { %4089 = vrot.lane.b32.xlu1 %v4087_v55, %s6350_s15 }
0x2aeb   :  { %v4090_v36 = vpop.permute.xlu1 %4089 }
0x2aec   :  { %v7481_v0 = vadd.f32 %v4090_v36, %v4082_v35 }
0x2aee   :  { %6254 = vtanh.f32 %v7481_v0 }
0x2afb   :  { %v6255_v12 = vpop.eup %6254 }
0x2afc   :  { %4095 = vrot.lane.b32.xlu1 %v6255_v12, %s6351_s6 }
0x2b6e   :  { %v4096_v58 = vpop.permute.xlu1 %4095 }
0x2b6f   :  { %v7485_v18 = vmul.f32 %v6253_v60, %v4096_v58 }
0x2b71   :  { %v4104_v21 = vrot.slane %v7485_v18, 2 }
0x2b73   :  { %4105 = vrot.lane.b32.xlu1 %v4104_v21, %s6350_s15 }
0x2be5   :  { %v7489_v11 = vpop.permute.xlu1 %4105 }
0x2be6   :  { %6031 = vmatmul.mubr.msk.f32.vlgmr.msra.gmra.mxu0 %vm67_vm0, %v7489_v11 }
0x2be7   :  { %6048 = vmatpush3.msra.mxu0 %v7218_v16  ;;  %6055 = vmatprep.mubr.msk.f32.mxu0 %vm6347_vm1, %v6346_v1 }
0x2be8   :  { %6049 = vmatprep.subr.mxu0 %v6346_v1 }
0x2be9   :  { %6050 = vmatpush3.msra.mxu0 %v7227_v37 }
0x2bea   :  { %6051 = vmatprep.subr.mxu0 %v6346_v1 }
0x2beb   :  { %6052 = vmatpush3.msra.mxu0 %v7234_v14 }
0x2bec   :  { %6053 = vmatprep.subr.mxu0 %v6346_v1 }
0x2bed   :  { %6054 = vmatpush3.msra.mxu0 %v7241_v15 }
0x2bee   :  { %6069 = vmatprep.subr.mxu0 %v6346_v1 }
0x2ca6   :  { %v4175_v9 = vpop.f32.mrf.mxu0 }
0x2ca7   :  { %v4186_v16 = vrot.slane %v4175_v9, %v6511_v54 }
0x2ca8   :  { %v6032_v42 = vpop.f32.mrf.mxu0 }
0x2ca9   :  { %v4187_v24 = vcombine.high %v4186_v16, %v4186_v16  ;;  %v4194_v38 = vrot.slane %v4186_v16, %v6511_v54 }
0x2cab   :  { %v4201_v3 = vrot.slane %v4187_v24, %v6511_v54  ;;  %v4205_v37 = vrot.slane %v4194_v38, %v6508_v53 }
0x2cad   :  { %v4209_v44 = vrot.slane %v4201_v3, %v6508_v53  ;;  %v4213_v14 = vadd.f32 %v4205_v37, %v6516_v62  ;;  %v4212_v30 = vadd.f32 %v4205_v37, %v6518_v63 }
0x2caf   :  { %v4217_v15 = vmax.f32 %v4213_v14, 0.0  ;;  %v4216_v26 = vmax.f32 %v4212_v30, 0.0  ;;  %v4214_v29 = vadd.f32 %v4209_v44, %v6524_v8  ;;  %v4215_v28 = vadd.f32 %v4209_v44, %v6522_v7 }
0x2cb1   :  { %v4221_v40 = vmul.f32 %v7378_v32, %v4217_v15  ;;  %v4220_v27 = vmul.f32 %v7378_v32, %v4216_v26  ;;  %v4218_v17 = vmax.f32 %v4214_v29, 0.0  ;;  %v4219_v22 = vmax.f32 %v4215_v28, 0.0 }
0x2cb3   :  { %v4227_v5 = vsel %vm67_vm0, %v4221_v40, 0.0  ;;  %v4224_v41 = vsel %vm67_vm0, %v4220_v27, 0.0  ;;  %v4222_v23 = vmul.f32 %v7378_v32, %v4218_v17  ;;  %v4223_v52 = vmul.f32 %v7378_v32, %v4219_v22 }
0x2cb4   :  { %4228 = vadd.xlane.f32.xlu1 %v4227_v5  ;;  %4225 = vadd.xlane.f32.xlu0 %v4224_v41 }
0x2cb5   :  { %v4230_v49 = vsel %vm67_vm0, %v4222_v23, 0.0  ;;  %v4233_v56 = vsel %vm67_vm0, %v4223_v52, 0.0 }
0x2cb8   :  { %4231 = vadd.xlane.f32.xlu0 %v4230_v49 }
0x2cbc   :  { %4234 = vadd.xlane.f32.xlu0 %v4233_v56 }
0x2d3d   :  { %v4226_v57 = vpop.xlane.xlu0 %4225  ;;  %v4229_v48 = vpop.xlane.xlu1 %4228 }
0x2d3e   :  { %v4247_v50 = vrot.slane %v4229_v48, %v6545_v31  ;;  %v4243_v59 = vrot.slane %v4226_v57, %v6548_v33 }
0x2d40   :  { %v4248_v2 = vsel %vm646_vm3, %v4247_v50, %v4243_v59 }
0x2d41   :  { %v4232_v34 = vpop.xlane.xlu0 %4231 }
0x2d42   :  { %v4252_v61 = vrot.slane %v4232_v34, %v6548_v33 }
0x2d45   :  { %v4235_v60 = vpop.xlane.xlu0 %4234 }
0x2d46   :  { %v4256_v55 = vrot.slane %v4235_v60, %v6545_v31 }
0x2d48   :  { %v4257_v35 = vsel %vm646_vm3, %v4256_v55, %v4252_v61 }
0x2d49   :  { %v4258_v36 = vsel %vm95_vm2, %v4257_v35, %v4248_v2 }
0x2d4a   :  { %v4260_v12 = vsel %vm659_vm4, %v4258_v36, -inf }
0x2d4b   :  { %4261 = vmax.xlane.f32.xlu0 %v4260_v12 }
0x2dd4   :  { %v4262_v58 = vpop.xlane.xlu0 %4261 }
0x2dd5   :  { %v4267_v21 = vrot.slane %v4262_v58, %v6508_v53  ;;  %v4271_v9 = vrot.slane %v4262_v58, %v6559_v51 }
0x2dd7   :  { %v4274_v16 = vsub.f32 %v4226_v57, %v4267_v21  ;;  %v4275_v42 = vsub.f32 %v4229_v48, %v4267_v21  ;;  %v4276_v24 = vsub.f32 %v4232_v34, %v4271_v9  ;;  %v4277_v37 = vsub.f32 %v4235_v60, %v4271_v9 }
0x2dd9   :  { %v4278_v38 = vmul.f32 1.442695, %v4274_v16  ;;  %v4282_v3 = vmul.f32 1.442695, %v4276_v24  ;;  %v4280_v44 = vmul.f32 1.442695, %v4275_v42 }
0x2dda   :  { %v4284_v14 = vmul.f32 1.442695, %v4277_v37  ;;  %v7557_v37 = vld [vmem:[%s7747_s3 + $0x58] sm:$0xff] }
0x2ddb   :  { %6256 = vpow2.f32 %v4278_v38 }
0x2ddc   :  { %6258 = vpow2.f32 %v4282_v3 }
0x2ddd   :  { %6260 = vpow2.f32 %v4280_v44  ;;  %v7573_v44 = vld [vmem:[%s7747_s3 + $0x48] sm:$0xff] }
0x2dde   :  { %6262 = vpow2.f32 %v4284_v14  ;;  %v7580_v14 = vld [vmem:[%s7747_s3 + $0x40] sm:$0xff] }
0x2de8   :  { %v6257_v30 = vpop.eup %6256 }
0x2de9   :  { %4291 = vperm.xlu0 %6135, %v6257_v30   ;;  %v6259_v15 = vpop.eup %6258 }
0x2dea   :  { %4297 = vperm.xlu1 %6134, %v6259_v15   ;;  %v6261_v26 = vpop.eup %6260 }
0x2deb   :  { %v6263_v29 = vpop.eup %6262 }
0x2ded   :  { %4294 = vperm.xlu0 %6135, %v6261_v26  }
0x2df1   :  { %4300 = vperm.xlu0 %6135, %v6263_v29  }
0x2e64   :  { %v4292_v28 = vpop.permute.xlu0 %4291 }
0x2e65   :  { %v4298_v27 = vpop.permute.xlu1 %4297  ;;  %v4305_v23 = vrot.slane %v4292_v28, %v6548_v33 }
0x2e66   :  { %v4314_v41 = vrot.slane %v4298_v27, %v6548_v33 }
0x2e68   :  { %v4295_v40 = vpop.permute.xlu0 %4294 }
0x2e69   :  { %v4309_v17 = vrot.slane %v4295_v40, %v6545_v31 }
0x2e6b   :  { %v4310_v49 = vsel %vm646_vm3, %v4309_v17, %v4305_v23 }
0x2e6c   :  { %v4301_v5 = vpop.permute.xlu0 %4300 }
0x2e6d   :  { %v4318_v22 = vrot.slane %v4301_v5, %v6545_v31 }
0x2e6f   :  { %v4319_v52 = vsel %vm646_vm3, %v4318_v22, %v4314_v41 }
0x2e70   :  { %v4320_v56 = vsel %vm95_vm2, %v4319_v52, %v4310_v49 }
0x2e71   :  { %v4322_v57 = vsel %vm659_vm4, %v4320_v56, 0.0  ;;  %v4682_v56 = vrot.slane %v7481_v0, 6  ;;  %v6326_v0 = vld [vmem:[%s7747_s3 + $0x38] sm:$0xff] }
0x2e72   :  { %4323 = vadd.xlane.f32.xlu0 %v4322_v57 }
0x2efb   :  { %v4324_v48 = vpop.xlane.xlu0 %4323 }
0x2efc   :  { %v4329_v34 = vrot.slane %v4324_v48, %v6508_v53  ;;  %v4333_v50 = vrot.slane %v4324_v48, %v6559_v51 }
0x2efe   :  { %6264 = vrcp.f32 %v4329_v34 }
0x2eff   :  { %6266 = vrcp.f32 %v4333_v50 }
0x2f0b   :  { %v6265_v59 = vpop.eup %6264 }
0x2f0c   :  { %v4337_v60 = vmul.f32 %v6265_v59, %v6257_v30  ;;  %v4338_v61 = vmul.f32 %v6265_v59, %v6261_v26  ;;  %v6267_v55 = vpop.eup %6266 }
0x2f0d   :  { %v4340_v2 = vmul.f32 %v6267_v55, %v6259_v15  ;;  %v4341_v35 = vmul.f32 %v6267_v55, %v6263_v29 }
0x2f0e   :  { %4345 = vperm.xlu1 %6134, %v4337_v60  }
0x2f12   :  { %4348 = vperm.xlu1 %6134, %v4338_v61  }
0x2f16   :  { %4434 = vperm.xlu1 %6134, %v4340_v2   ;;  %v6327_v2 = vld [vmem:[%s7747_s3 + $0x30] sm:$0xff] }
0x2f1a   :  { %4437 = vperm.xlu1 %6134, %v4341_v35   ;;  %v6328_v35 = vld [vmem:[%s7747_s3 + $0x28] sm:$0xff] }
0x2f89   :  { %v4346_v36 = vpop.permute.xlu1 %4345 }
0x2f8a   :  { %v4353_v58 = vrot.slane %v4346_v36, %v6548_v33  ;;  %v6329_v36 = vld [vmem:[%s7747_s3 + $0x20] sm:$0xff] }
0x2f8d   :  { %v4349_v12 = vpop.permute.xlu1 %4348 }
0x2f8e   :  { %v4357_v21 = vrot.slane %v4349_v12, %v6545_v31 }
0x2f90   :  { %v4358_v9 = vsel %vm646_vm3, %v4357_v21, %v4353_v58 }
0x2f91   :  { %6038 = vmatmul.mubr.msk.f32.vlgmr.msra.gmra.mxu1 %vm759_vm6, %v4358_v9  ;;  %v4435_v16 = vpop.permute.xlu1 %4434 }
0x2f92   :  { %6041 = vmatpush3.msra.mxu1 %v7415_v25  ;;  %6044 = vmatprep.mubr.msk.f32.mxu1 %vm6347_vm1, %v6346_v1  ;;  %v4442_v24 = vrot.slane %v4435_v16, %v6548_v33 }
0x2f93   :  { %6042 = vmatprep.subr.mxu1 %v6346_v1 }
0x2f94   :  { %6043 = vmatpush3.msra.mxu1 %v7293_v4  ;;  %v7566_v4 = vld [vmem:[%s7747_s3 + $0x50] sm:$0xff] }
0x2f95   :  { %v4438_v42 = vpop.permute.xlu1 %4437  ;;  %6058 = vmatprep.subr.mxu1 %v6346_v1 }
0x2f96   :  { %v4446_v38 = vrot.slane %v4438_v42, %v6545_v31 }
0x2f98   :  { %v4447_v3 = vsel %vm646_vm3, %v4446_v38, %v4442_v24 }
0x2f99   :  { %6045 = vmatmul.mubr.msk.f32.vlgmr.msra.gmra.mxu1 %vm759_vm6, %v4447_v3 }
0x2f9a   :  { %6059 = vmatpush3.msra.mxu1 %v7557_v37  ;;  %6066 = vmatprep.mubr.msk.f32.mxu1 %vm6347_vm1, %v6346_v1 }
0x2f9b   :  { %6060 = vmatprep.subr.mxu1 %v6346_v1 }
0x2f9c   :  { %6061 = vmatpush3.msra.mxu1 %v7566_v4 }
0x2f9d   :  { %6062 = vmatprep.subr.mxu1 %v6346_v1 }
0x2f9e   :  { %6063 = vmatpush3.msra.mxu1 %v7573_v44 }
0x2f9f   :  { %6064 = vmatprep.subr.mxu1 %v6346_v1 }
0x2fa0   :  { %6065 = vmatpush3.msra.mxu1 %v7580_v14 }
0x2fa1   :  { %6067 = vmatmul.mubr.msk.f32.vlgmr.msra.gmra.mxu1 %vm67_vm0, %v7489_v11  ;;  %6080 = vmatprep.subr.mxu1 %v6346_v1 }
0x2fa2   :  { %6081 = vmatpush3.msra.mxu1 %v7316_v13  ;;  %6084 = vmatprep.mubr.msk.f32.mxu1 %vm6347_vm1, %v6346_v1 }
0x2fa3   :  { %6082 = vmatprep.subr.mxu1 %v6346_v1 }
0x2fa4   :  { %6083 = vmatpush3.msra.mxu1 %v7325_v45 }
0x2fa5   :  { %6087 = vmatprep.subr.mxu1 %v6346_v1 }
0x3051   :  { %v4427_v30 = vpop.f32.mrf.mxu1 }
0x3053   :  { %v6039_v15 = vpop.f32.mrf.mxu1 }
0x3059   :  { %v4516_v26 = vpop.f32.mrf.mxu1 }
0x305a   :  { %v4522_v29 = vrot.slane %v4516_v26, 7 }
0x305b   :  { %v6046_v28 = vpop.f32.mrf.mxu1 }
0x305c   :  { %v4523_v11 = vsel %vm95_vm2, %v4522_v29, %v4427_v30 }
0x305d   :  { %6056 = vmatmul.mubr.msk.f32.vlgmr.msra.gmra.mxu0 %vm67_vm0, %v4523_v11 }
0x305e   :  { %6070 = vmatpush3.msra.mxu0 %v7450_v47  ;;  %6077 = vmatprep.mubr.msk.f32.mxu0 %vm6347_vm1, %v6346_v1 }
0x305f   :  { %6071 = vmatprep.subr.mxu0 %v6346_v1 }
0x3060   :  { %6072 = vmatpush3.msra.mxu0 %v7459_v46 }
0x3061   :  { %v4666_v13 = vpop.f32.mrf.mxu1  ;;  %6073 = vmatprep.subr.mxu0 %v6346_v1 }
0x3062   :  { %6074 = vmatpush3.msra.mxu0 %v7466_v39  ;;  %v4671_v17 = vrot.slane %v4666_v13, 4 }
0x3063   :  { %v6068_v45 = vpop.f32.mrf.mxu1  ;;  %6075 = vmatprep.subr.mxu0 %v6346_v1 }
0x3064   :  { %6076 = vmatpush3.msra.mxu0 %v7473_v6 }
0x3065   :  { %6094 = vmatprep.subr.mxu0 %v6346_v1 }
0x311d   :  { %v4592_v47 = vpop.f32.mrf.mxu0 }
0x311e   :  { %v4597_v40 = vrot.slane %v4592_v47, 4 }
0x311f   :  { %v6057_v27 = vpop.f32.mrf.mxu0 }
0x3120   :  { %v4599_v5 = vadd.f32 %v4597_v40, %v6797_v43 }
0x3122   :  { %v4673_v41 = vadd.f32 %v4671_v17, %v4599_v5 }
0x3124   :  { %6268 = vtanh.f32 %v4673_v41  ;;  %v5485_v23 = vmul.f32 -1.442695, %v4673_v41 }
0x3126   :  { %6270 = vpow2.f32 %v5485_v23 }
0x3131   :  { %v6269_v46 = vpop.eup %6268 }
0x3132   :  { %4686 = vrot.lane.b32.xlu1 %v6269_v46, %s6351_s6 }
0x3133   :  { %v6271_v39 = vpop.eup %6270 }
0x3134   :  { %v4677_v22 = vadd.f32 1.0, %v6271_v39 }
0x3136   :  { %6272 = vrcp.f32 %v4677_v22 }
0x3143   :  { %v6273_v49 = vpop.eup %6272 }
0x3144   :  { %v4684_v57 = vmul.f32 %v6273_v49, %v4682_v56 }
0x31a4   :  { %v4687_v6 = vpop.permute.xlu1 %4686 }
0x31a5   :  { %v4689_v52 = vmul.f32 %v6273_v49, %v4687_v6 }
0x31a7   :  { %4691 = vrot.lane.b32.xlu1 %v4689_v52, %s6350_s15 }
0x3219   :  { %v4692_v48 = vpop.permute.xlu1 %4691 }
0x321a   :  { %v7608_v34 = vadd.f32 %v4692_v48, %v4684_v57 }
0x321c   :  { %6274 = vtanh.f32 %v7608_v34 }
0x3229   :  { %v6275_v50 = vpop.eup %6274 }
0x322a   :  { %4697 = vrot.lane.b32.xlu0 %v6275_v50, %s6351_s6 }
0x329c   :  { %v4698_v59 = vpop.permute.xlu0 %4697 }
0x329d   :  { %v7612_v60 = vmul.f32 %v6273_v49, %v4698_v59 }
0x329f   :  { %v4706_v61 = vrot.slane %v7612_v60, 4 }
0x32a1   :  { %4707 = vrot.lane.b32.xlu1 %v4706_v61, %s6350_s15 }
0x3313   :  { %v7616_v55 = vpop.permute.xlu1 %4707 }
0x3314   :  { %6078 = vmatmul.mubr.msk.f32.vlgmr.msra.gmra.mxu0 %vm67_vm0, %v7616_v55 }
0x3315   :  { %6095 = vmatpush3.msra.mxu0 %v6326_v0  ;;  %6102 = vmatprep.mubr.msk.f32.mxu0 %vm6347_vm1, %v6346_v1 }
0x3316   :  { %6096 = vmatprep.subr.mxu0 %v6346_v1 }
0x3317   :  { %6097 = vmatpush3.msra.mxu0 %v6327_v2 }
0x3318   :  { %6098 = vmatprep.subr.mxu0 %v6346_v1 }
0x3319   :  { %6099 = vmatpush3.msra.mxu0 %v6328_v35 }
0x331a   :  { %6100 = vmatprep.subr.mxu0 %v6346_v1 }
0x331b   :  { %6101 = vmatpush3.msra.mxu0 %v6329_v36 }
0x33d4   :  { %v4777_v12 = vpop.f32.mrf.mxu0 }
0x33d5   :  { %v4788_v58 = vrot.slane %v4777_v12, %v6511_v54 }
0x33d6   :  { %v6079_v21 = vpop.f32.mrf.mxu0 }
0x33d7   :  { %v4789_v9 = vcombine.high %v4788_v58, %v4788_v58  ;;  %v4796_v16 = vrot.slane %v4788_v58, %v6511_v54 }
0x33d9   :  { %v4803_v42 = vrot.slane %v4789_v9, %v6511_v54  ;;  %v4807_v24 = vrot.slane %v4796_v16, %v6508_v53 }
0x33db   :  { %v4811_v38 = vrot.slane %v4803_v42, %v6508_v53  ;;  %v4815_v3 = vadd.f32 %v4807_v24, %v6516_v62  ;;  %v4814_v30 = vadd.f32 %v4807_v24, %v6518_v63 }
0x33dd   :  { %v4819_v15 = vmax.f32 %v4815_v3, 0.0  ;;  %v4818_v26 = vmax.f32 %v4814_v30, 0.0  ;;  %v4816_v29 = vadd.f32 %v4811_v38, %v6524_v8  ;;  %v4817_v28 = vadd.f32 %v4811_v38, %v6522_v7 }
0x33df   :  { %v4823_v11 = vmul.f32 %v7378_v32, %v4819_v15  ;;  %v4822_v13 = vmul.f32 %v7378_v32, %v4818_v26  ;;  %v4820_v45 = vmax.f32 %v4816_v29, 0.0  ;;  %v4821_v62 = vmax.f32 %v4817_v28, 0.0 }
0x33e1   :  { %v4829_v54 = vsel %vm67_vm0, %v4823_v11, 0.0  ;;  %v4826_v47 = vsel %vm67_vm0, %v4822_v13, 0.0  ;;  %v4824_v40 = vmul.f32 %v7378_v32, %v4820_v45  ;;  %v4825_v8 = vmul.f32 %v7378_v32, %v4821_v62 }
0x33e2   :  { %4830 = vadd.xlane.f32.xlu0 %v4829_v54  ;;  %4827 = vadd.xlane.f32.xlu1 %v4826_v47 }
0x33e3   :  { %v4832_v63 = vsel %vm67_vm0, %v4824_v40, 0.0  ;;  %v4835_v7 = vsel %vm67_vm0, %v4825_v8, 0.0 }
0x33e6   :  { %4833 = vadd.xlane.f32.xlu1 %v4832_v63 }
0x33ea   :  { %4836 = vadd.xlane.f32.xlu1 %v4835_v7 }
0x346b   :  { %v4828_v27 = vpop.xlane.xlu1 %4827  ;;  %v4831_v17 = vpop.xlane.xlu0 %4830 }
0x346c   :  { %v4849_v41 = vrot.slane %v4831_v17, %v6545_v31  ;;  %v4845_v46 = vrot.slane %v4828_v27, %v6548_v33 }
0x346e   :  { %v4850_v49 = vsel %vm646_vm3, %v4849_v41, %v4845_v46 }
0x346f   :  { %v4834_v5 = vpop.xlane.xlu1 %4833 }
0x3470   :  { %v4854_v39 = vrot.slane %v4834_v5, %v6548_v33 }
0x3473   :  { %v4837_v23 = vpop.xlane.xlu1 %4836 }
0x3474   :  { %v4858_v22 = vrot.slane %v4837_v23, %v6545_v31 }
0x3476   :  { %v4859_v32 = vsel %vm646_vm3, %v4858_v22, %v4854_v39  ;;  %v6330_v39 = vld [vmem:[%s7745_s1 + $0x10] sm:$0xff] }
0x3477   :  { %v4860_v6 = vsel %vm95_vm2, %v4859_v32, %v4850_v49 }
0x3478   :  { %v4862_v52 = vsel %vm659_vm4, %v4860_v6, -inf }
0x3479   :  { %4863 = vmax.xlane.f32.xlu1 %v4862_v52 }
0x3502   :  { %v4864_v56 = vpop.xlane.xlu1 %4863 }
0x3503   :  { %v4869_v57 = vrot.slane %v4864_v56, %v6508_v53  ;;  %v4873_v48 = vrot.slane %v4864_v56, %v6559_v51 }
0x3505   :  { %v4876_v50 = vsub.f32 %v4828_v27, %v4869_v57  ;;  %v4877_v59 = vsub.f32 %v4831_v17, %v4869_v57  ;;  %v4879_v61 = vsub.f32 %v4837_v23, %v4873_v48  ;;  %v4878_v0 = vsub.f32 %v4834_v5, %v4873_v48 }
0x3507   :  { %v4880_v2 = vmul.f32 1.442695, %v4876_v50  ;;  %v4882_v35 = vmul.f32 1.442695, %v4877_v59  ;;  %v4886_v36 = vmul.f32 1.442695, %v4879_v61 }
0x3508   :  { %v4884_v12 = vmul.f32 1.442695, %v4878_v0 }
0x3509   :  { %6276 = vpow2.f32 %v4880_v2 }
0x350a   :  { %6278 = vpow2.f32 %v4882_v35 }
0x350b   :  { %6280 = vpow2.f32 %v4886_v36 }
0x350c   :  { %6282 = vpow2.f32 %v4884_v12 }
0x3516   :  { %v6277_v58 = vpop.eup %6276 }
0x3517   :  { %v6279_v21 = vpop.eup %6278  ;;  %4893 = vperm.xlu0 %6135, %v6277_v58  }
0x3518   :  { %4896 = vperm.xlu1 %6134, %v6279_v21   ;;  %v6281_v9 = vpop.eup %6280 }
0x3519   :  { %v6283_v16 = vpop.eup %6282 }
0x351b   :  { %4902 = vperm.xlu0 %6135, %v6281_v9  }
0x351c   :  { %4899 = vperm.xlu1 %6134, %v6283_v16  }
0x3592   :  { %v4894_v42 = vpop.permute.xlu0 %4893 }
0x3593   :  { %v4897_v24 = vpop.permute.xlu1 %4896  ;;  %v4907_v3 = vrot.slane %v4894_v42, %v6548_v33  ;;  %v63_v42 = vld [vmem:[%s7747_s3 + $0x70] sm:$0xff] }
0x3594   :  { %v4911_v38 = vrot.slane %v4897_v24, %v6545_v31 }
0x3596   :  { %v4903_v30 = vpop.permute.xlu0 %4902  ;;  %v4912_v28 = vsel %vm646_vm3, %v4911_v38, %v4907_v3 }
0x3597   :  { %v4900_v15 = vpop.permute.xlu1 %4899  ;;  %v4920_v26 = vrot.slane %v4903_v30, %v6545_v31 }
0x3598   :  { %v4916_v29 = vrot.slane %v4900_v15, %v6548_v33 }
0x359a   :  { %v4921_v11 = vsel %vm646_vm3, %v4920_v26, %v4916_v29 }
0x359b   :  { %v4922_v13 = vsel %vm95_vm2, %v4921_v11, %v4912_v28  ;;  %v5492_v28 = vld [vmem:[%s7747_s3 + $0x88] ss:$0 sm:$0xff] }
0x359c   :  { %v4924_v45 = vsel %vm659_vm4, %v4922_v13, 0.0 }
0x359d   :  { %4925 = vadd.xlane.f32.xlu1 %v4924_v45 }
0x35ae   :  { %2904 = vrot.lane.b32.xlu1 %v7207_v10, %s6350_s15 }
0x3626   :  { %v4926_v54 = vpop.xlane.xlu1 %4925 }
0x3627   :  { %v4931_v47 = vrot.slane %v4926_v54, %v6508_v53  ;;  %v4935_v62 = vrot.slane %v4926_v54, %v6559_v51 }
0x3629   :  { %6284 = vrcp.f32 %v4931_v47 }
0x362a   :  { %v2905_v40 = vpop.permute.xlu1 %2904  ;;  %6286 = vrcp.f32 %v4935_v62 }
0x362b   :  { %2908 = vst.msk [vmem:[#allocation3] sm:$0xc0] %vm2907_vm8, %v2905_v40 }
0x3636   :  { %v6285_v63 = vpop.eup %6284 }
0x3637   :  { %v4939_v8 = vmul.f32 %v6285_v63, %v6277_v58  ;;  %v4940_v7 = vmul.f32 %v6285_v63, %v6279_v21  ;;  %v6287_v27 = vpop.eup %6286  ;;  %v5284_v58 = vrot.slane %v7608_v34, 6  ;;  %v64_v34 = vld [vmem:[%s7747_s3 + $0x78] sm:$0xff] }
0x3638   :  { %v4942_v17 = vmul.f32 %v6287_v27, %v6283_v16  ;;  %v4943_v10 = vmul.f32 %v6287_v27, %v6281_v9  ;;  %6116 = vmatprep.subr.mxu0 %v64_v34 }
0x3639   :  { %4947 = vperm.xlu0 %6135, %v4939_v8  }
0x363d   :  { %4950 = vperm.xlu0 %6135, %v4940_v7  }
0x3641   :  { %5036 = vperm.xlu0 %6135, %v4942_v17  }
0x3645   :  { %5039 = vperm.xlu0 %6135, %v4943_v10  }
0x36b4   :  { %v4948_v5 = vpop.permute.xlu0 %4947 }
0x36b5   :  { %v4955_v41 = vrot.slane %v4948_v5, %v6548_v33 }
0x36b8   :  { %v4951_v53 = vpop.permute.xlu0 %4950 }
0x36b9   :  { %v4959_v46 = vrot.slane %v4951_v53, %v6545_v31 }
0x36bb   :  { %v4960_v51 = vsel %vm646_vm3, %v4959_v46, %v4955_v41 }
0x36bc   :  { %6085 = vmatmul.mubr.msk.f32.vlgmr.msra.gmra.mxu1 %vm759_vm6, %v4960_v51  ;;  %v5037_v23 = vpop.permute.xlu0 %5036 }
0x36bd   :  { %6088 = vmatpush3.msra.mxu1 %v7415_v25  ;;  %6091 = vmatprep.mubr.msk.f32.mxu1 %vm6347_vm1, %v6346_v1  ;;  %v5044_v49 = vrot.slane %v5037_v23, %v6548_v33 }
0x36be   :  { %6089 = vmatprep.subr.mxu1 %v6346_v1 }
0x36bf   :  { %6090 = vmatpush3.msra.mxu1 %v6330_v39 }
0x36c0   :  { %v5040_v22 = vpop.permute.xlu0 %5039  ;;  %6105 = vmatprep.subr.mxu1 %v6346_v1 }
0x36c1   :  { %v5048_v32 = vrot.slane %v5040_v22, %v6545_v31 }
0x36c3   :  { %v5049_v6 = vsel %vm646_vm3, %v5048_v32, %v5044_v49 }
0x36c4   :  { %6092 = vmatmul.mubr.msk.f32.vlgmr.msra.gmra.mxu1 %vm759_vm6, %v5049_v6 }
0x36c5   :  { %6106 = vmatpush3.msra.mxu1 %v7557_v37  ;;  %6113 = vmatprep.mubr.msk.f32.mxu1 %vm6347_vm1, %v6346_v1 }
0x36c6   :  { %6107 = vmatprep.subr.mxu1 %v6346_v1 }
0x36c7   :  { %6108 = vmatpush3.msra.mxu1 %v7566_v4 }
0x36c8   :  { %6109 = vmatprep.subr.mxu1 %v6346_v1 }
0x36c9   :  { %6110 = vmatpush3.msra.mxu1 %v7573_v44 }
0x36ca   :  { %6111 = vmatprep.subr.mxu1 %v6346_v1 }
0x36cb   :  { %6112 = vmatpush3.msra.mxu1 %v7580_v14 }
0x36cc   :  { %6114 = vmatmul.mubr.msk.f32.vlgmr.msra.gmra.mxu1 %vm67_vm0, %v7616_v55 }
0x377c   :  { %v5029_v31 = vpop.f32.mrf.mxu1 }
0x377e   :  { %v6086_v33 = vpop.f32.mrf.mxu1 }
0x3784   :  { %v5118_v25 = vpop.f32.mrf.mxu1 }
0x3785   :  { %v5124_v37 = vrot.slane %v5118_v25, 7 }
0x3786   :  { %v6093_v52 = vpop.f32.mrf.mxu1 }
0x3787   :  { %v5125_v56 = vsel %vm95_vm2, %v5124_v37, %v5029_v31 }
0x3788   :  { %6103 = vmatmul.mubr.msk.f32.vlgmr.msra.gmra.mxu0 %vm67_vm0, %v5125_v56 }
0x3789   :  { %6117 = vmatpush3.msra.mxu0 %v64_v34 }
0x378a   :  { %6118 = vmatprep.subr.mxu0 %v63_v42 }
0x378b   :  { %6119 = vmatpush3.msra.mxu0 %v63_v42 }
0x378c   :  { %v5268_v4 = vpop.f32.mrf.mxu1 }
0x378d   :  { %v5273_v1 = vrot.slane %v5268_v4, 2 }
0x378e   :  { %v6115_v57 = vpop.f32.mrf.mxu1 }
0x3848   :  { %v5194_v48 = vpop.f32.mrf.mxu0 }
0x3849   :  { %v5199_v44 = vrot.slane %v5194_v48, 2 }
0x384a   :  { %v6104_v50 = vpop.f32.mrf.mxu0 }
0x384b   :  { %v5201_v14 = vadd.f32 %v5199_v44, %v6797_v43 }
0x384d   :  { %v5275_v59 = vadd.f32 %v5273_v1, %v5201_v14 }
0x384f   :  { %6288 = vtanh.f32 %v5275_v59  ;;  %v5491_v61 = vmul.f32 -1.442695, %v5275_v59 }
0x3851   :  { %6290 = vpow2.f32 %v5491_v61 }
0x385c   :  { %v6289_v55 = vpop.eup %6288 }
0x385d   :  { %5288 = vrot.lane.b32.xlu0 %v6289_v55, %s6351_s6 }
0x385e   :  { %v6291_v0 = vpop.eup %6290 }
0x385f   :  { %v5279_v2 = vadd.f32 1.0, %v6291_v0 }
0x3861   :  { %6292 = vrcp.f32 %v5279_v2 }
0x386e   :  { %v6293_v35 = vpop.eup %6292 }
0x386f   :  { %v5286_v21 = vmul.f32 %v6293_v35, %v5284_v58 }
0x38cf   :  { %v5289_v36 = vpop.permute.xlu0 %5288 }
0x38d0   :  { %v5291_v12 = vmul.f32 %v6293_v35, %v5289_v36 }
0x38d2   :  { %5293 = vrot.lane.b32.xlu0 %v5291_v12, %s6350_s15 }
0x3944   :  { %v5294_v9 = vpop.permute.xlu0 %5293 }
0x3945   :  { %v5296_v43 = vadd.f32 %v5294_v9, %v5286_v21 }
0x3947   :  { %6294 = vtanh.f32 %v5296_v43 }
0x3954   :  { %v6295_v16 = vpop.eup %6294 }
0x3955   :  { %5299 = vrot.lane.b32.xlu0 %v6295_v16, %s6351_s6 }
0x3959   :  { %1698 = vrot.lane.b32.xlu0 %v6943_v20, %s6350_s15  ;;  %v62_v20 = vld [vmem:[%s7747_s3 + $0x68] sm:$0xff] }
0x395a   :  { %6120 = vmatprep.subr.mxu0 %v62_v20 }
0x395b   :  { %6121 = vmatpush3.msra.mxu0 %v62_v20 }
0x395d   :  { %2301 = vrot.lane.b32.xlu0 %v7080_v19, %s6350_s15  ;;  %v61_v19 = vld [vmem:[%s7747_s3 + $0x60] sm:$0xff] }
0x395e   :  { %6122 = vmatprep.subr.mxu0 %v61_v19 }
0x395f   :  { %6123 = vmatpush3.msra.mxu0 %v61_v19 }
0x3961   :  { %4100 = vrot.lane.b32.xlu0 %v7485_v18, %s6350_s15 }
0x3965   :  { %4702 = vrot.lane.b32.xlu0 %v7612_v60, %s6350_s15 }
0x39c7   :  { %v5300_v18 = vpop.permute.xlu0 %5299 }
0x39c8   :  { %v5302_v60 = vmul.f32 %v6293_v35, %v5300_v18 }
0x39ca   :  { %5304 = vrot.lane.b32.xlu0 %v5302_v60, %s6350_s15 }
0x39cb   :  { %v1699_v24 = vpop.permute.xlu0 %1698 }
0x39cc   :  { %1702 = vst.msk [vmem:[#allocation3] sm:$0xc] %vm1701_vm9, %v1699_v24 }
0x39cf   :  { %v2302_v38 = vpop.permute.xlu0 %2301 }
0x39d0   :  { %2305 = vst.msk [vmem:[#allocation3] sm:$0x30] %vm2304_vm10, %v2302_v38 }
0x39d3   :  { %v4101_v3 = vpop.permute.xlu0 %4100 }
0x39d4   :  { %4103 = vst.msk [vmem:[#allocation3 + $0x8] sm:$0xc] %vm1701_vm9, %v4101_v3 }
0x39d7   :  { %v4703_v30 = vpop.permute.xlu0 %4702  ;;  %v5308_v15 = vld [vmem:[#allocation3] sm:$0xff] }
0x39d8   :  { %4705 = vst.msk [vmem:[#allocation3 + $0x8] sm:$0x30] %vm2304_vm10, %v4703_v30  ;;  %6124 = vmatprep.mubr.msk.f32.mxu0 %vm67_vm0, %v5308_v15 }
0x3a3c   :  { %v5305_v26 = vpop.permute.xlu0 %5304 }
0x3a3d   :  { %5307 = vst.msk [vmem:[#allocation3 + $0x8] sm:$0xc0] %vm2907_vm8, %v5305_v26 }
0x3a44   :  { %v5309_v29 = vld [vmem:[#allocation3 + $0x8] sm:$0xff] }
0x3a45   :  { %6125 = vmatmul.mubr.msk.f32.vlgmr.msra.gmra.mxu0 %vm67_vm0, %v5309_v29 }
0x3b05   :  { %v6126_v11 = vpop.f32.mrf.mxu0 }
0x3b06   :  { %v5392_v13 = vadd.f32 %v6126_v11, %v5492_v28 }
0x3b07   :  { %v5386_v45 = vpop.f32.mrf.mxu0 }
0x3b08   :  { %5396 = vst [vmem:[%s7749_s5 + $0x8] sm:$0xff] %v5392_v13  ;;  %v5387_v54 = vadd.f32 %v5492_v28, %v5386_v45 }
0x3b0a   :  { %5395 = vst [vmem:[%s7749_s5] sm:$0xff] %v5387_v54 }

</bundles_post_ra>
